<compile_context>
chip_gen: v7x
topology: tpu7x:2x2x1
jax: 0.10.0
libtpu: 0.0.40
codegen_flags: <defaults>
</compile_context>

<pallas_src>
import math
from functools import partial

import jax
import jax.numpy as jnp
from jax.experimental import pallas as pl
from jax.experimental.pallas import tpu as pltpu

H = 20        # hidden width of InferenceNet
H_PAD = 128   # lane-padded hidden width used inside the kernel
TILE_F = 128  # collocation points processed per grid step


def loss_pinn_kernel(nu_ref, xf_ref, side_ref, u0_ref,
                     w1_ref, b1_ref, w2_ref, b2_ref,
                     w3_ref, b3_ref, w4_ref, b4_ref,
                     loss_ref, accf_ref, accs_ref,
                     *, n_f, n0, nb, tile_f):
    f32 = jnp.float32
    i = pl.program_id(0)
    nt = pl.num_programs(0)

    nu = nu_ref[0, 0]
    w1, b1 = w1_ref[...], b1_ref[...]
    w2, b2 = w2_ref[...], b2_ref[...]
    w3, b3 = w3_ref[...], b3_ref[...]
    w4, b4 = w4_ref[...], b4_ref[...]

    # ------- first tile only: init accumulator + single batched IC/BC pass ----------
    @pl.when(i == 0)
    def _():
        accf_ref[...] = jnp.zeros_like(accf_ref)

        zs = side_ref[...]                                            # (n0+2nb, 2)
        h = jnp.tanh(jnp.dot(zs, w1, preferred_element_type=f32) + b1)
        h = jnp.tanh(jnp.dot(h, w2, preferred_element_type=f32) + b2)
        h = jnp.tanh(jnp.dot(h, w3, preferred_element_type=f32) + b3)
        u_side = jnp.dot(h, w4, preferred_element_type=f32) + b4      # (n0+2nb, 1)

        r0 = u_side[0:n0, :] - u0_ref[...]                            # IC residual
        rb = u_side[n0:n0 + nb, :] - u_side[n0 + nb:n0 + 2 * nb, :]   # periodic BC
        accs_ref[...] = (jnp.sum(r0 * r0, keepdims=True) / n0
                         + jnp.sum(rb * rb, keepdims=True) / nb)

    # ------- PDE residual on this collocation tile (forward-mode derivatives) -------
    z = xf_ref[...]                                                   # (T, 2)
    a = jnp.dot(z, w1, preferred_element_type=f32) + b1               # (T, Hp)
    h = jnp.tanh(a)
    s = 1.0 - h * h
    ax1 = w1[0:1, :]                                                  # da/dx (1, Hp)
    at1 = w1[1:2, :]                                                  # da/dt
    h_x = s * ax1
    h_t = s * at1
    h_xx = -2.0 * h * h_x * ax1                                       # a_xx == 0 here

    # hidden layers 2 and 3: M-stack the 4 streams -> one weight-stationary matmul each
    for (w, b) in ((w2, b2), (w3, b3)):
        stacked = jnp.concatenate([h, h_x, h_t, h_xx], axis=0)        # (4T, Hp)
        pre = jnp.dot(stacked, w, preferred_element_type=f32)         # (4T, Hp)
        a = pre[0:tile_f, :] + b
        a_x = pre[tile_f:2 * tile_f, :]
        a_t = pre[2 * tile_f:3 * tile_f, :]
        a_xx = pre[3 * tile_f:4 * tile_f, :]
        h = jnp.tanh(a)
        s = 1.0 - h * h
        h_x_new = s * a_x
        h_xx = s * a_xx - 2.0 * h * h_x_new * a_x
        h_x = h_x_new
        h_t = s * a_t

    # output layer: fold linearity, one stacked matmul against w4
    g_in = h_t - nu * h_xx                                            # -> u_t - nu*u_xx
    stacked = jnp.concatenate([h, h_x, g_in], axis=0)                 # (3T, Hp)
    out = jnp.dot(stacked, w4, preferred_element_type=f32)            # (3T, 1)
    u = out[0:tile_f, :] + b4
    u_x = out[tile_f:2 * tile_f, :]
    g = out[2 * tile_f:3 * tile_f, :]
    f = g + u * u_x                                                   # u_t + u*u_x - nu*u_xx

    # mask rows padded beyond the true Nf (last tile may be partial)
    row = jax.lax.broadcasted_iota(jnp.int32, (tile_f, 1), 0) + i * tile_f
    f = jnp.where(row < n_f, f, 0.0)

    accf_ref[...] += jnp.sum(f * f, keepdims=True)

    # ------- finalize -----------------------------------------------------------------
    @pl.when(i == nt - 1)
    def _():
        loss_ref[...] = accf_ref[...] / n_f + accs_ref[...]


def init_inference_net(key):
    """Deterministic init matching nn.Linear default (uniform +-1/sqrt(fan_in))."""
    dims = [(2, H), (H, H), (H, H), (H, 1)]
    params = []
    for fan_in, fan_out in dims:
        key, kw, kb = jax.random.split(key, 3)
        bound = 1.0 / math.sqrt(fan_in)
        w = jax.random.uniform(kw, (fan_in, fan_out), jnp.float32, -bound, bound)
        b = jax.random.uniform(kb, (1, fan_out), jnp.float32, -bound, bound)
        params.append((w, b))
    return params


def pad_params(params):
    """Zero-pad hidden width 20 -> 128 (lane-dense, mathematically equivalent)."""
    padded = []
    for w, b in params:
        fi, fo = w.shape
        fip = H_PAD if fi == H else fi
        fop = H_PAD if fo == H else fo
        wp = jnp.zeros((fip, fop), jnp.float32).at[:fi, :fo].set(w)
        bp = jnp.zeros((1, fop), jnp.float32).at[:, :fo].set(b)
        padded.append((wp, bp))
    return padded


def loss_pinn(nu, params_padded, X_f, x0_t0, u0, xb_left_tb, xb_right_tb,
              *, tile_f=TILE_F):
    n_f = X_f.shape[0]
    n0 = x0_t0.shape[0]
    nb = xb_left_tb.shape[0]
    assert xb_right_tb.shape[0] == nb and u0.shape[0] == n0

    nt = (n_f + tile_f - 1) // tile_f
    nf_pad = nt * tile_f
    if nf_pad != n_f:
        X_f = jnp.pad(X_f, ((0, nf_pad - n_f), (0, 0)))

    # one batched side pass: [IC ; BC-left ; BC-right]
    side = jnp.concatenate([x0_t0, xb_left_tb, xb_right_tb], axis=0)  # (n0+2nb, 2)
    n_side = side.shape[0]

    nu_arr = jnp.full((1, 1), nu, jnp.float32)

    flat = []
    for w, b in params_padded:
        flat += [w, b]

    kernel = partial(loss_pinn_kernel, n_f=n_f, n0=n0, nb=nb, tile_f=tile_f)

    const = lambda i: (0, 0)  # noqa: E731  (block resident across the whole grid)
    in_specs = [
        pl.BlockSpec(memory_space=pltpu.MemorySpace.SMEM),      # nu (1,1) scalar
        pl.BlockSpec((tile_f, 2), lambda i: (i, 0)),            # X_f tile
        pl.BlockSpec((n_side, 2), const),                       # IC+BC batch
        pl.BlockSpec((n0, 1), const),                           # u0 target
        pl.BlockSpec((2, H_PAD), const),                        # w1
        pl.BlockSpec((1, H_PAD), const),                        # b1
        pl.BlockSpec((H_PAD, H_PAD), const),                    # w2
        pl.BlockSpec((1, H_PAD), const),                        # b2
        pl.BlockSpec((H_PAD, H_PAD), const),                    # w3
        pl.BlockSpec((1, H_PAD), const),                        # b3
        pl.BlockSpec((H_PAD, 1), const),                        # w4
        pl.BlockSpec((1, 1), const),                            # b4
    ]

    out = pl.pallas_call(
        kernel,
        out_shape=jax.ShapeDtypeStruct((1, 1), jnp.float32),
        grid=(nt,),
        in_specs=in_specs,
        out_specs=pl.BlockSpec((1, 1), const),
        scratch_shapes=[pltpu.VMEM((1, 1), jnp.float32),        # sum(f^2) accumulator
                        pltpu.VMEM((1, 1), jnp.float32)],       # IC+BC loss
        compiler_params=pltpu.CompilerParams(
            dimension_semantics=("arbitrary",),                 # reduction over tiles
            vmem_limit_bytes=32 * 1024 * 1024),
    )(nu_arr, X_f, side, u0, *flat)
    return out[0, 0]


def loss_pinn_reference(nu, params, X_f, x0_t0, u0, xb_l, xb_r):
    """Pure-JAX reference with the same analytic forward-mode derivatives (unpadded)."""
    (w1, b1), (w2, b2), (w3, b3), (w4, b4) = params

    def mlp(z):
        h = jnp.tanh(z @ w1 + b1)
        h = jnp.tanh(h @ w2 + b2)
        h = jnp.tanh(h @ w3 + b3)
        return h @ w4 + b4

    a = X_f @ w1 + b1
    h = jnp.tanh(a)
    s = 1.0 - h * h
    ax, at = w1[0:1, :], w1[1:2, :]
    h_x, h_t = s * ax, s * at
    h_xx = -2.0 * h * h_x * ax
    for (w, b) in ((w2, b2), (w3, b3)):
        a = h @ w + b
        a_x, a_t, a_xx = h_x @ w, h_t @ w, h_xx @ w
        h = jnp.tanh(a)
        s = 1.0 - h * h
        hx_new = s * a_x
        h_xx = s * a_xx - 2.0 * h * hx_new * a_x
        h_x, h_t = hx_new, s * a_t
    u = h @ w4 + b4
    u_x, u_t, u_xx = h_x @ w4, h_t @ w4, h_xx @ w4
    f = u_t + u * u_x - nu * u_xx
    r0 = mlp(x0_t0) - u0
    rb = mlp(xb_l) - mlp(xb_r)
    return jnp.mean(f * f) + jnp.mean(r0 * r0) + jnp.mean(rb * rb)


if __name__ == "__main__":
    key = jax.random.PRNGKey(0)
    kparam, k1, k2, k3, k4 = jax.random.split(key, 5)

    nu = 0.01 / math.pi
    Nf, N0, Nb = 256, 64, 64

    # collocation points: x in [-1,1], t in [0,1]
    xf = jax.random.uniform(k1, (Nf, 1), jnp.float32, -1.0, 1.0)
    tf_ = jax.random.uniform(k2, (Nf, 1), jnp.float32, 0.0, 1.0)
    X_f = jnp.concatenate([xf, tf_], axis=1)                        # (Nf, 2)

    # initial condition points: (x, t=0), u0 = -sin(pi x)
    x0 = jax.random.uniform(k3, (N0, 1), jnp.float32, -1.0, 1.0)
    x0_t0 = jnp.concatenate([x0, jnp.zeros_like(x0)], axis=1)       # (N0, 2)
    u0 = -jnp.sin(jnp.pi * x0)                                      # (N0, 1)

    # boundary points: (x=-1, t) and (x=+1, t)
    tb = jax.random.uniform(k4, (Nb, 1), jnp.float32, 0.0, 1.0)
    xb_left_tb = jnp.concatenate([-jnp.ones_like(tb), tb], axis=1)  # (Nb, 2)
    xb_right_tb = jnp.concatenate([jnp.ones_like(tb), tb], axis=1)  # (Nb, 2)

    params = init_inference_net(kparam)
    params_padded = pad_params(params)

    loss = loss_pinn(nu, params_padded, X_f, x0_t0, u0, xb_left_tb, xb_right_tb)
    loss = jax.block_until_ready(loss)
    assert jnp.isfinite(loss), "loss is not finite"

    ref = loss_pinn_reference(nu, params, X_f, x0_t0, u0, xb_left_tb, xb_right_tb)
    assert jnp.allclose(loss, ref, rtol=1e-3, atol=1e-5), (loss, ref)

    print("KERNEL_OK")
</pallas_src>

<mosaic_0001>
module attributes {stable_mosaic.version = 11 : i64} {
  func.func @loss_pinn_kernel(%arg0: i32, %arg1: memref<1x1xf32, #tpu.memory_space<smem>>, %arg2: memref<128x2xf32, #tpu.memory_space<vmem>>, %arg3: memref<192x2xf32, #tpu.memory_space<vmem>>, %arg4: memref<64x1xf32, #tpu.memory_space<vmem>>, %arg5: memref<2x128xf32, #tpu.memory_space<vmem>>, %arg6: memref<1x128xf32, #tpu.memory_space<vmem>>, %arg7: memref<128x128xf32, #tpu.memory_space<vmem>>, %arg8: memref<1x128xf32, #tpu.memory_space<vmem>>, %arg9: memref<128x128xf32, #tpu.memory_space<vmem>>, %arg10: memref<1x128xf32, #tpu.memory_space<vmem>>, %arg11: memref<128x1xf32, #tpu.memory_space<vmem>>, %arg12: memref<1x1xf32, #tpu.memory_space<vmem>>, %arg13: memref<1x1xf32, #tpu.memory_space<vmem>>, %arg14: memref<1x1xf32, #tpu.memory_space<vmem>>, %arg15: memref<1x1xf32, #tpu.memory_space<vmem>>) attributes {dimension_semantics = [#tpu.dimension_semantics<arbitrary>], iteration_bounds = array<i64: 2>, scalar_prefetch = 0 : i64, scratch_operands = 2 : i64, tpu.core_type = #tpu.core_type<tc>, window_params = [{transform_indices = @transform_0, window_bounds = array<i64: 1, 1>}, {transform_indices = @transform_1, window_bounds = array<i64: 128, 2>}, {pipeline_mode = #tpu.pipeline_mode<synchronous>, transform_indices = @transform_2, window_bounds = array<i64: 192, 2>}, {pipeline_mode = #tpu.pipeline_mode<synchronous>, transform_indices = @transform_3, window_bounds = array<i64: 64, 1>}, {pipeline_mode = #tpu.pipeline_mode<synchronous>, transform_indices = @transform_4, window_bounds = array<i64: 2, 128>}, {pipeline_mode = #tpu.pipeline_mode<synchronous>, transform_indices = @transform_5, window_bounds = array<i64: 1, 128>}, {pipeline_mode = #tpu.pipeline_mode<synchronous>, transform_indices = @transform_6, window_bounds = array<i64: 128, 128>}, {pipeline_mode = #tpu.pipeline_mode<synchronous>, transform_indices = @transform_7, window_bounds = array<i64: 1, 128>}, {pipeline_mode = #tpu.pipeline_mode<synchronous>, transform_indices = @transform_8, window_bounds = array<i64: 128, 128>}, {pipeline_mode = #tpu.pipeline_mode<synchronous>, transform_indices = @transform_9, window_bounds = array<i64: 1, 128>}, {pipeline_mode = #tpu.pipeline_mode<synchronous>, transform_indices = @transform_10, window_bounds = array<i64: 128, 1>}, {pipeline_mode = #tpu.pipeline_mode<synchronous>, transform_indices = @transform_11, window_bounds = array<i64: 1, 1>}, {pipeline_mode = #tpu.pipeline_mode<synchronous>, transform_indices = @transform_12, window_bounds = array<i64: 1, 1>}]} {
    %c0 = arith.constant 0 : index
    %c0_0 = arith.constant 0 : index
    %0 = memref.load %arg1[%c0, %c0_0] : memref<1x1xf32, #tpu.memory_space<smem>>
    %c0_1 = arith.constant 0 : index
    %c0_2 = arith.constant 0 : index
    %1 = vector.load %arg5[%c0_1, %c0_2] : memref<2x128xf32, #tpu.memory_space<vmem>>, vector<2x128xf32>
    %c0_3 = arith.constant 0 : index
    %c0_4 = arith.constant 0 : index
    %2 = vector.load %arg6[%c0_3, %c0_4] : memref<1x128xf32, #tpu.memory_space<vmem>>, vector<1x128xf32>
    %c0_5 = arith.constant 0 : index
    %c0_6 = arith.constant 0 : index
    %3 = vector.load %arg7[%c0_5, %c0_6] : memref<128x128xf32, #tpu.memory_space<vmem>>, vector<128x128xf32>
    %c0_7 = arith.constant 0 : index
    %c0_8 = arith.constant 0 : index
    %4 = vector.load %arg8[%c0_7, %c0_8] : memref<1x128xf32, #tpu.memory_space<vmem>>, vector<1x128xf32>
    %c0_9 = arith.constant 0 : index
    %c0_10 = arith.constant 0 : index
    %5 = vector.load %arg9[%c0_9, %c0_10] : memref<128x128xf32, #tpu.memory_space<vmem>>, vector<128x128xf32>
    %c0_11 = arith.constant 0 : index
    %c0_12 = arith.constant 0 : index
    %6 = vector.load %arg10[%c0_11, %c0_12] : memref<1x128xf32, #tpu.memory_space<vmem>>, vector<1x128xf32>
    %c0_13 = arith.constant 0 : index
    %c0_14 = arith.constant 0 : index
    %7 = vector.load %arg11[%c0_13, %c0_14] : memref<128x1xf32, #tpu.memory_space<vmem>>, vector<128x1xf32>
    %c0_15 = arith.constant 0 : index
    %c0_16 = arith.constant 0 : index
    %8 = vector.load %arg12[%c0_15, %c0_16] : memref<1x1xf32, #tpu.memory_space<vmem>>, vector<1x1xf32>
    %c0_i32 = arith.constant 0 : i32
    %9 = arith.cmpi eq, %arg0, %c0_i32 : i32
    %10 = arith.extui %9 : i1 to i32
    %c0_i32_17 = arith.constant 0 : i32
    %11 = arith.cmpi ne, %10, %c0_i32_17 : i32
    scf.if %11 {
      %cst_36 = arith.constant 0.000000e+00 : f32
      %103 = vector.broadcast %cst_36 : f32 to vector<1x1xf32>
      %c0_37 = arith.constant 0 : index
      %c0_38 = arith.constant 0 : index
      %104 = vector.load %arg14[%c0_37, %c0_38] : memref<1x1xf32, #tpu.memory_space<vmem>>, vector<1x1xf32>
      tpu.vector_store %arg14[%c0_37, %c0_38], %103 {strides = array<i32>} : memref<1x1xf32, #tpu.memory_space<vmem>>, vector<1x1xf32>,
      %c0_39 = arith.constant 0 : index
      %c0_40 = arith.constant 0 : index
      %105 = vector.load %arg3[%c0_39, %c0_40] : memref<192x2xf32, #tpu.memory_space<vmem>>, vector<192x2xf32>
      %cst_41 = arith.constant dense<0.000000e+00> : vector<192x128xf32>
      %106 = tpu.matmul %105, %1, %cst_41 {dimension_numbers = #tpu.dot_dimension_numbers<[1], [0], [0], [1], [0, 0, 1, 1], [], []>} : vector<192x2xf32>, vector<2x128xf32>, vector<192x128xf32> -> vector<192x128xf32>
      %107 = vector.broadcast %2 : vector<1x128xf32> to vector<192x128xf32>
      %108 = arith.addf %106, %107 : vector<192x128xf32>
      %109 = math.tanh %108 : vector<192x128xf32>
      %cst_42 = arith.constant dense<0.000000e+00> : vector<192x128xf32>
      %110 = tpu.matmul %109, %3, %cst_42 {dimension_numbers = #tpu.dot_dimension_numbers<[1], [0], [0], [1], [0, 0, 1, 1], [], []>} : vector<192x128xf32>, vector<128x128xf32>, vector<192x128xf32> -> vector<192x128xf32>
      %111 = vector.broadcast %4 : vector<1x128xf32> to vector<192x128xf32>
      %112 = arith.addf %110, %111 : vector<192x128xf32>
      %113 = math.tanh %112 : vector<192x128xf32>
      %cst_43 = arith.constant dense<0.000000e+00> : vector<192x128xf32>
      %114 = tpu.matmul %113, %5, %cst_43 {dimension_numbers = #tpu.dot_dimension_numbers<[1], [0], [0], [1], [0, 0, 1, 1], [], []>} : vector<192x128xf32>, vector<128x128xf32>, vector<192x128xf32> -> vector<192x128xf32>
      %115 = vector.broadcast %6 : vector<1x128xf32> to vector<192x128xf32>
      %116 = arith.addf %114, %115 : vector<192x128xf32>
      %117 = math.tanh %116 : vector<192x128xf32>
      %cst_44 = arith.constant dense<0.000000e+00> : vector<192x1xf32>
      %118 = tpu.matmul %117, %7, %cst_44 {dimension_numbers = #tpu.dot_dimension_numbers<[1], [0], [0], [1], [0, 0, 1, 1], [], []>} : vector<192x128xf32>, vector<128x1xf32>, vector<192x1xf32> -> vector<192x1xf32>
      %119 = vector.broadcast %8 : vector<1x1xf32> to vector<192x1xf32>
      %120 = arith.addf %118, %119 : vector<192x1xf32>
      %121 = vector.extract_strided_slice %120 {offsets = [0, 0], sizes = [64, 1], strides = [1, 1]} : vector<192x1xf32> to vector<64x1xf32>
      %c0_45 = arith.constant 0 : index
      %c0_46 = arith.constant 0 : index
      %122 = vector.load %arg4[%c0_45, %c0_46] : memref<64x1xf32, #tpu.memory_space<vmem>>, vector<64x1xf32>
      %123 = arith.subf %121, %122 : vector<64x1xf32>
      %124 = vector.extract_strided_slice %120 {offsets = [64, 0], sizes = [64, 1], strides = [1, 1]} : vector<192x1xf32> to vector<64x1xf32>
      %125 = vector.extract_strided_slice %120 {offsets = [128, 0], sizes = [64, 1], strides = [1, 1]} : vector<192x1xf32> to vector<64x1xf32>
      %126 = arith.subf %124, %125 : vector<64x1xf32>
      %127 = arith.mulf %123, %123 : vector<64x1xf32>
      %128 = vector.shape_cast %127 : vector<64x1xf32> to vector<1x64x1xf32>
      %cst_47 = arith.constant dense<0.000000e+00> : vector<1xf32>
      %129 = vector.multi_reduction <add>, %128, %cst_47 [1, 2] : vector<1x64x1xf32> to vector<1xf32>
      %130 = vector.shape_cast %129 : vector<1xf32> to vector<1x1x1xf32>
      %131 = vector.extract %130[0, 0, 0] : f32 from vector<1x1x1xf32>
      %132 = vector.broadcast %131 : f32 to vector<1x1xf32>
      %cst_48 = arith.constant 6.400000e+01 : f32
      %133 = vector.broadcast %cst_48 : f32 to vector<1x1xf32>
      %134 = arith.divf %132, %133 : vector<1x1xf32>
      %135 = arith.mulf %126, %126 : vector<64x1xf32>
      %136 = vector.shape_cast %135 : vector<64x1xf32> to vector<1x64x1xf32>
      %cst_49 = arith.constant dense<0.000000e+00> : vector<1xf32>
      %137 = vector.multi_reduction <add>, %136, %cst_49 [1, 2] : vector<1x64x1xf32> to vector<1xf32>
      %138 = vector.shape_cast %137 : vector<1xf32> to vector<1x1x1xf32>
      %139 = vector.extract %138[0, 0, 0] : f32 from vector<1x1x1xf32>
      %140 = vector.broadcast %139 : f32 to vector<1x1xf32>
      %cst_50 = arith.constant 6.400000e+01 : f32
      %141 = vector.broadcast %cst_50 : f32 to vector<1x1xf32>
      %142 = arith.divf %140, %141 : vector<1x1xf32>
      %143 = arith.addf %134, %142 : vector<1x1xf32>
      %c0_51 = arith.constant 0 : index
      %c0_52 = arith.constant 0 : index
      %144 = vector.load %arg15[%c0_51, %c0_52] : memref<1x1xf32, #tpu.memory_space<vmem>>, vector<1x1xf32>
      tpu.vector_store %arg15[%c0_51, %c0_52], %143 {strides = array<i32>} : memref<1x1xf32, #tpu.memory_space<vmem>>, vector<1x1xf32>,
    } else {
    }
    %c0_18 = arith.constant 0 : index
    %c0_19 = arith.constant 0 : index
    %12 = vector.load %arg2[%c0_18, %c0_19] : memref<128x2xf32, #tpu.memory_space<vmem>>, vector<128x2xf32>
    %cst = arith.constant dense<0.000000e+00> : vector<128x128xf32>
    %13 = tpu.matmul %12, %1, %cst {dimension_numbers = #tpu.dot_dimension_numbers<[1], [0], [0], [1], [0, 0, 1, 1], [], []>} : vector<128x2xf32>, vector<2x128xf32>, vector<128x128xf32> -> vector<128x128xf32>
    %14 = vector.broadcast %2 : vector<1x128xf32> to vector<128x128xf32>
    %15 = arith.addf %13, %14 : vector<128x128xf32>
    %16 = math.tanh %15 : vector<128x128xf32>
    %17 = arith.mulf %16, %16 : vector<128x128xf32>
    %cst_20 = arith.constant 1.000000e+00 : f32
    %18 = vector.broadcast %cst_20 : f32 to vector<128x128xf32>
    %19 = arith.subf %18, %17 : vector<128x128xf32>
    %20 = vector.extract_strided_slice %1 {offsets = [0, 0], sizes = [1, 128], strides = [1, 1]} : vector<2x128xf32> to vector<1x128xf32>
    %21 = vector.extract_strided_slice %1 {offsets = [1, 0], sizes = [1, 128], strides = [1, 1]} : vector<2x128xf32> to vector<1x128xf32>
    %22 = vector.broadcast %20 : vector<1x128xf32> to vector<128x128xf32>
    %23 = arith.mulf %19, %22 : vector<128x128xf32>
    %24 = vector.broadcast %21 : vector<1x128xf32> to vector<128x128xf32>
    %25 = arith.mulf %19, %24 : vector<128x128xf32>
    %cst_21 = arith.constant -2.000000e+00 : f32
    %26 = vector.broadcast %cst_21 : f32 to vector<128x128xf32>
    %27 = arith.mulf %26, %16 : vector<128x128xf32>
    %28 = arith.mulf %27, %23 : vector<128x128xf32>
    %29 = vector.broadcast %20 : vector<1x128xf32> to vector<128x128xf32>
    %30 = arith.mulf %28, %29 : vector<128x128xf32>
    %31 = tpu.concatenate %16, %23, %25, %30 in 0 : vector<128x128xf32>, vector<128x128xf32>, vector<128x128xf32>, vector<128x128xf32> -> vector<512x128xf32>
    %cst_22 = arith.constant dense<0.000000e+00> : vector<512x128xf32>
    %32 = tpu.matmul %31, %3, %cst_22 {dimension_numbers = #tpu.dot_dimension_numbers<[1], [0], [0], [1], [0, 0, 1, 1], [], []>} : vector<512x128xf32>, vector<128x128xf32>, vector<512x128xf32> -> vector<512x128xf32>
    %33 = vector.extract_strided_slice %32 {offsets = [0, 0], sizes = [128, 128], strides = [1, 1]} : vector<512x128xf32> to vector<128x128xf32>
    %34 = vector.broadcast %4 : vector<1x128xf32> to vector<128x128xf32>
    %35 = arith.addf %33, %34 : vector<128x128xf32>
    %36 = vector.extract_strided_slice %32 {offsets = [128, 0], sizes = [128, 128], strides = [1, 1]} : vector<512x128xf32> to vector<128x128xf32>
    %37 = vector.extract_strided_slice %32 {offsets = [256, 0], sizes = [128, 128], strides = [1, 1]} : vector<512x128xf32> to vector<128x128xf32>
    %38 = vector.extract_strided_slice %32 {offsets = [384, 0], sizes = [128, 128], strides = [1, 1]} : vector<512x128xf32> to vector<128x128xf32>
    %39 = math.tanh %35 : vector<128x128xf32>
    %40 = arith.mulf %39, %39 : vector<128x128xf32>
    %cst_23 = arith.constant 1.000000e+00 : f32
    %41 = vector.broadcast %cst_23 : f32 to vector<128x128xf32>
    %42 = arith.subf %41, %40 : vector<128x128xf32>
    %43 = arith.mulf %42, %36 : vector<128x128xf32>
    %44 = arith.mulf %42, %38 : vector<128x128xf32>
    %cst_24 = arith.constant 2.000000e+00 : f32
    %45 = vector.broadcast %cst_24 : f32 to vector<128x128xf32>
    %46 = arith.mulf %45, %39 : vector<128x128xf32>
    %47 = arith.mulf %46, %43 : vector<128x128xf32>
    %48 = arith.mulf %47, %36 : vector<128x128xf32>
    %49 = arith.subf %44, %48 : vector<128x128xf32>
    %50 = arith.mulf %42, %37 : vector<128x128xf32>
    %51 = tpu.concatenate %39, %43, %50, %49 in 0 : vector<128x128xf32>, vector<128x128xf32>, vector<128x128xf32>, vector<128x128xf32> -> vector<512x128xf32>
    %cst_25 = arith.constant dense<0.000000e+00> : vector<512x128xf32>
    %52 = tpu.matmul %51, %5, %cst_25 {dimension_numbers = #tpu.dot_dimension_numbers<[1], [0], [0], [1], [0, 0, 1, 1], [], []>} : vector<512x128xf32>, vector<128x128xf32>, vector<512x128xf32> -> vector<512x128xf32>
    %53 = vector.extract_strided_slice %52 {offsets = [0, 0], sizes = [128, 128], strides = [1, 1]} : vector<512x128xf32> to vector<128x128xf32>
    %54 = vector.broadcast %6 : vector<1x128xf32> to vector<128x128xf32>
    %55 = arith.addf %53, %54 : vector<128x128xf32>
    %56 = vector.extract_strided_slice %52 {offsets = [128, 0], sizes = [128, 128], strides = [1, 1]} : vector<512x128xf32> to vector<128x128xf32>
    %57 = vector.extract_strided_slice %52 {offsets = [256, 0], sizes = [128, 128], strides = [1, 1]} : vector<512x128xf32> to vector<128x128xf32>
    %58 = vector.extract_strided_slice %52 {offsets = [384, 0], sizes = [128, 128], strides = [1, 1]} : vector<512x128xf32> to vector<128x128xf32>
    %59 = math.tanh %55 : vector<128x128xf32>
    %60 = arith.mulf %59, %59 : vector<128x128xf32>
    %cst_26 = arith.constant 1.000000e+00 : f32
    %61 = vector.broadcast %cst_26 : f32 to vector<128x128xf32>
    %62 = arith.subf %61, %60 : vector<128x128xf32>
    %63 = arith.mulf %62, %56 : vector<128x128xf32>
    %64 = arith.mulf %62, %58 : vector<128x128xf32>
    %cst_27 = arith.constant 2.000000e+00 : f32
    %65 = vector.broadcast %cst_27 : f32 to vector<128x128xf32>
    %66 = arith.mulf %65, %59 : vector<128x128xf32>
    %67 = arith.mulf %66, %63 : vector<128x128xf32>
    %68 = arith.mulf %67, %56 : vector<128x128xf32>
    %69 = arith.subf %64, %68 : vector<128x128xf32>
    %70 = arith.mulf %62, %57 : vector<128x128xf32>
    %71 = vector.broadcast %0 : f32 to vector<128x128xf32>
    %72 = arith.mulf %71, %69 : vector<128x128xf32>
    %73 = arith.subf %70, %72 : vector<128x128xf32>
    %74 = tpu.concatenate %59, %63, %73 in 0 : vector<128x128xf32>, vector<128x128xf32>, vector<128x128xf32> -> vector<384x128xf32>
    %cst_28 = arith.constant dense<0.000000e+00> : vector<384x1xf32>
    %75 = tpu.matmul %74, %7, %cst_28 {dimension_numbers = #tpu.dot_dimension_numbers<[1], [0], [0], [1], [0, 0, 1, 1], [], []>} : vector<384x128xf32>, vector<128x1xf32>, vector<384x1xf32> -> vector<384x1xf32>
    %76 = vector.extract_strided_slice %75 {offsets = [0, 0], sizes = [128, 1], strides = [1, 1]} : vector<384x1xf32> to vector<128x1xf32>
    %77 = vector.broadcast %8 : vector<1x1xf32> to vector<128x1xf32>
    %78 = arith.addf %76, %77 : vector<128x1xf32>
    %79 = vector.extract_strided_slice %75 {offsets = [128, 0], sizes = [128, 1], strides = [1, 1]} : vector<384x1xf32> to vector<128x1xf32>
    %80 = vector.extract_strided_slice %75 {offsets = [256, 0], sizes = [128, 1], strides = [1, 1]} : vector<384x1xf32> to vector<128x1xf32>
    %81 = arith.mulf %78, %79 : vector<128x1xf32>
    %82 = arith.addf %80, %81 : vector<128x1xf32>
    %83 = tpu.iota {dimensions = array<i32: 0>} : vector<128x1xi32>
    %c128_i32 = arith.constant 128 : i32
    %84 = arith.muli %arg0, %c128_i32 : i32
    %85 = vector.broadcast %84 : i32 to vector<128x1xi32>
    %86 = arith.addi %83, %85 : vector<128x1xi32>
    %c256_i32 = arith.constant 256 : i32
    %87 = vector.broadcast %c256_i32 : i32 to vector<128x1xi32>
    %88 = arith.cmpi slt, %86, %87 : vector<128x1xi32>
    %cst_29 = arith.constant 0.000000e+00 : f32
    %89 = vector.broadcast %cst_29 : f32 to vector<128x1xf32>
    %90 = arith.select %88, %82, %89 : vector<128x1xi1>, vector<128x1xf32>
    %c0_30 = arith.constant 0 : index
    %c0_31 = arith.constant 0 : index
    %91 = vector.load %arg14[%c0_30, %c0_31] : memref<1x1xf32, #tpu.memory_space<vmem>>, vector<1x1xf32>
    %92 = arith.mulf %90, %90 : vector<128x1xf32>
    %93 = vector.shape_cast %92 : vector<128x1xf32> to vector<1x128x1xf32>
    %cst_32 = arith.constant dense<0.000000e+00> : vector<1xf32>
    %94 = vector.multi_reduction <add>, %93, %cst_32 [1, 2] : vector<1x128x1xf32> to vector<1xf32>
    %95 = vector.shape_cast %94 : vector<1xf32> to vector<1x1x1xf32>
    %96 = vector.extract %95[0, 0, 0] : f32 from vector<1x1x1xf32>
    %97 = vector.broadcast %96 : f32 to vector<1x1xf32>
    %98 = arith.addf %91, %97 : vector<1x1xf32>
    %c0_33 = arith.constant 0 : index
    %c0_34 = arith.constant 0 : index
    %99 = vector.load %arg14[%c0_33, %c0_34] : memref<1x1xf32, #tpu.memory_space<vmem>>, vector<1x1xf32>
    tpu.vector_store %arg14[%c0_33, %c0_34], %98 {strides = array<i32>} : memref<1x1xf32, #tpu.memory_space<vmem>>, vector<1x1xf32>,
    %c1_i32 = arith.constant 1 : i32
    %100 = arith.cmpi eq, %arg0, %c1_i32 : i32
    %101 = arith.extui %100 : i1 to i32
    %c0_i32_35 = arith.constant 0 : i32
    %102 = arith.cmpi ne, %101, %c0_i32_35 : i32
    scf.if %102 {
      %c0_36 = arith.constant 0 : index
      %c0_37 = arith.constant 0 : index
      %103 = vector.load %arg14[%c0_36, %c0_37] : memref<1x1xf32, #tpu.memory_space<vmem>>, vector<1x1xf32>
      %cst_38 = arith.constant 2.560000e+02 : f32
      %104 = vector.broadcast %cst_38 : f32 to vector<1x1xf32>
      %105 = arith.divf %103, %104 : vector<1x1xf32>
      %c0_39 = arith.constant 0 : index
      %c0_40 = arith.constant 0 : index
      %106 = vector.load %arg15[%c0_39, %c0_40] : memref<1x1xf32, #tpu.memory_space<vmem>>, vector<1x1xf32>
      %107 = arith.addf %105, %106 : vector<1x1xf32>
      %c0_41 = arith.constant 0 : index
      %c0_42 = arith.constant 0 : index
      %108 = vector.load %arg13[%c0_41, %c0_42] : memref<1x1xf32, #tpu.memory_space<vmem>>, vector<1x1xf32>
      tpu.vector_store %arg13[%c0_41, %c0_42], %107 {strides = array<i32>} : memref<1x1xf32, #tpu.memory_space<vmem>>, vector<1x1xf32>,
    } else {
    }
    return
  }
  func.func @transform_0(%arg0: i32) -> (i32, i32) {
    %c0_i32 = arith.constant 0 : i32
    %c0_i32_0 = arith.constant 0 : i32
    %c0_i32_1 = arith.constant 0 : i32
    return %c0_i32, %c0_i32_0 : i32, i32
  }
  func.func @transform_1(%arg0: i32) -> (i32, i32) {
    %c0_i32 = arith.constant 0 : i32
    %c0_i32_0 = arith.constant 0 : i32
    return %arg0, %c0_i32 : i32, i32
  }
  func.func @transform_2(%arg0: i32) -> (i32, i32) {
    %c0_i32 = arith.constant 0 : i32
    %c0_i32_0 = arith.constant 0 : i32
    %c0_i32_1 = arith.constant 0 : i32
    return %c0_i32, %c0_i32_0 : i32, i32
  }
  func.func @transform_3(%arg0: i32) -> (i32, i32) {
    %c0_i32 = arith.constant 0 : i32
    %c0_i32_0 = arith.constant 0 : i32
    %c0_i32_1 = arith.constant 0 : i32
    return %c0_i32, %c0_i32_0 : i32, i32
  }
  func.func @transform_4(%arg0: i32) -> (i32, i32) {
    %c0_i32 = arith.constant 0 : i32
    %c0_i32_0 = arith.constant 0 : i32
    %c0_i32_1 = arith.constant 0 : i32
    return %c0_i32, %c0_i32_0 : i32, i32
  }
  func.func @transform_5(%arg0: i32) -> (i32, i32) {
    %c0_i32 = arith.constant 0 : i32
    %c0_i32_0 = arith.constant 0 : i32
    %c0_i32_1 = arith.constant 0 : i32
    return %c0_i32, %c0_i32_0 : i32, i32
  }
  func.func @transform_6(%arg0: i32) -> (i32, i32) {
    %c0_i32 = arith.constant 0 : i32
    %c0_i32_0 = arith.constant 0 : i32
    %c0_i32_1 = arith.constant 0 : i32
    return %c0_i32, %c0_i32_0 : i32, i32
  }
  func.func @transform_7(%arg0: i32) -> (i32, i32) {
    %c0_i32 = arith.constant 0 : i32
    %c0_i32_0 = arith.constant 0 : i32
    %c0_i32_1 = arith.constant 0 : i32
    return %c0_i32, %c0_i32_0 : i32, i32
  }
  func.func @transform_8(%arg0: i32) -> (i32, i32) {
    %c0_i32 = arith.constant 0 : i32
    %c0_i32_0 = arith.constant 0 : i32
    %c0_i32_1 = arith.constant 0 : i32
    return %c0_i32, %c0_i32_0 : i32, i32
  }
  func.func @transform_9(%arg0: i32) -> (i32, i32) {
    %c0_i32 = arith.constant 0 : i32
    %c0_i32_0 = arith.constant 0 : i32
    %c0_i32_1 = arith.constant 0 : i32
    return %c0_i32, %c0_i32_0 : i32, i32
  }
  func.func @transform_10(%arg0: i32) -> (i32, i32) {
    %c0_i32 = arith.constant 0 : i32
    %c0_i32_0 = arith.constant 0 : i32
    %c0_i32_1 = arith.constant 0 : i32
    return %c0_i32, %c0_i32_0 : i32, i32
  }
  func.func @transform_11(%arg0: i32) -> (i32, i32) {
    %c0_i32 = arith.constant 0 : i32
    %c0_i32_0 = arith.constant 0 : i32
    %c0_i32_1 = arith.constant 0 : i32
    return %c0_i32, %c0_i32_0 : i32, i32
  }
  func.func @transform_12(%arg0: i32) -> (i32, i32) {
    %c0_i32 = arith.constant 0 : i32
    %c0_i32_0 = arith.constant 0 : i32
    %c0_i32_1 = arith.constant 0 : i32
    return %c0_i32, %c0_i32_0 : i32, i32
  }
}

</mosaic_0001>

<bundles_post_ra>
// kernel: tpu_custom_call.1
= control target key start
LH: loop header
LB: loop body
LE: loop exit
PB: predicated region body
PF: predicated region fallthrough
CT: control target
= control target key end

     0   :  { %s6889_s0 = inlined_call_operand.<no memory space> [shape: f32[1,1], index: 0, kind: input, shape index: {}]   ;;  %s6890_s1 = inlined_call_operand.vmem [shape: f32[256,2], index: 1, kind: input, shape index: {}]   ;;  %s6891_s2 = inlined_call_operand.vmem [shape: f32[192,2], index: 2, kind: input, shape index: {}]   ;;  %s6892_s3 = inlined_call_operand.vmem [shape: f32[64,1], index: 3, kind: input, shape index: {}]   ;;  %s6893_s4 = inlined_call_operand.vmem [shape: f32[2,128], index: 4, kind: input, shape index: {}]   ;;  %s6894_s5 = inlined_call_operand.vmem [shape: f32[1,128], index: 5, kind: input, shape index: {}]   ;;  %s6895_s6 = inlined_call_operand.vmem [shape: f32[128,128], index: 6, kind: input, shape index: {}]   ;;  %s6896_s7 = inlined_call_operand.vmem [shape: f32[1,128], index: 7, kind: input, shape index: {}]   ;;  %s6897_s8 = inlined_call_operand.vmem [shape: f32[128,128], index: 8, kind: input, shape index: {}]   ;;  %s6898_s9 = inlined_call_operand.vmem [shape: f32[1,128], index: 9, kind: input, shape index: {}]   ;;  %s6899_s10 = inlined_call_operand.vmem [shape: f32[128,1], index: 10, kind: input, shape index: {}]   ;;  %s6900_s11 = inlined_call_operand.<no memory space> [shape: f32[1,1], index: 11, kind: input, shape index: {}]   ;;  %s6901_s12 = inlined_call_operand.hbm [shape: f32[1,1], index: 12, kind: output, shape index: {}]  }
   0x1   :  { %17 = sst [smem:[#allocation4]] %s6889_s0  ;;  %v18_v0 = vstv %s6900_s11 }
   0x2   :  { %19 = vst [vmem:[#allocation5] sm:$0x1] %v18_v0 }
   0x3   :  { %20 = vsyncpa [#allocation7], 0  ;;  %s5231_s25 = smov 0  }
   0x4 LB: > { %s5237_s26 = sadd.s32 4294967295, %s5156_s25   ;;  %p3568_p0 = scmp.ge.s32.totalorder %s5156_s25, 1  ;;  %s5156_s25 = sphi %s5231_s25, %s26_s25  }
   0x5   : > { %p362_p1 = scmp.lt.s32.totalorder %s5156_s25, 3 }
   0x7   : > { %p363_p2 = pnand %p3568_p0, %p362_p1 }
   0x9   : > { %366 = sbr.rel (%p363_p2) target bundleno = 2468 (0x9a4), region = 68 }
  0x10   : > { %s3569_s0 = sshll.u32 %s5237_s26, 4  ;;  %s5242_s11 = sld [smem:[#allocation4]]  ;;  %v5247_v1 = vld [vmem:[%s6893_s4] sm:$0x3]  ;;  %v5262_v4 = vld [vmem:[%s6895_s6 + $0x8] sm:$0xff]  ;;  %v5267_v5 = vld [vmem:[%s6895_s6 + $0x10] sm:$0xff] }
  0x11   : > { %v5252_v2 = vld [vmem:[%s6895_s6] sm:$0xff]  ;;  %p400_p3 = scmp.lt.s32.totalorder %s3569_s0, 31  ;;  %v5272_v6 = vld [vmem:[%s6895_s6 + $0x18] sm:$0xff]  ;;  %v5282_v8 = vld [vmem:[%s6895_s6 + $0x28] sm:$0xff]  ;;  %p3571_p4 = scmp.ne.s32.totalorder %s5237_s26, 0 }
  0x12   : > { %v5257_v3 = vld [vmem:[%s6894_s5] sm:$0x1]  ;;  %v5287_v9 = vld [vmem:[%s6895_s6 + $0x30] sm:$0xff]  ;;  %v5292_v10 = vld [vmem:[%s6895_s6 + $0x38] sm:$0xff]  ;;  %vm568_vm0 = vcmask (!%p3571_p4), 1041408   ;;  %vm495_vm1 = vcmask (!%p3571_p4), 15360   ;;  %v4634_v56 = vpack.c.bf16 (!%p3571_p4), %v5262_v4, %v5252_v2  ;;  %v4638_v57 = vpack.c.bf16 (!%p3571_p4), %v5272_v6, %v5267_v5 }
  0x13   : > { %v5277_v7 = vld [vmem:[%s6895_s6 + $0x20] sm:$0xff]  ;;  %s6997_s0 = smov (!%p400_p3, %s3569_s0), 31  ;;  %v5302_v12 = vld [vmem:[%s6895_s6 + $0x48] sm:$0xff]  ;;  %v5307_v13 = vld [vmem:[%s6895_s6 + $0x50] sm:$0xff]  ;;  %4006 = vmatprep.subr.msk.mxu0 (!%p3571_p4), %vm568_vm0, %v5247_v1  ;;  %v4646_v63 = vpack.c.bf16 (!%p3571_p4), %v5292_v10, %v5287_v9  ;;  %vm1434_vm2 = vcmask (!%p3571_p4), 7168   ;;  %vm463_vm3 = vcmask (!%p3571_p4), 0  }
  0x14   : > { %v5297_v11 = vld [vmem:[%s6895_s6 + $0x40] sm:$0xff]  ;;  %v5312_v14 = vld [vmem:[%s6895_s6 + $0x58] sm:$0xff]  ;;  %s3570_s21 = sshll.u32 %s6997_s0, 3  ;;  %v5322_v16 = vld [vmem:[%s6895_s6 + $0x68] sm:$0xff]  ;;  %4007 = vmatpush3.msk.msra.mxu0 (!%p3571_p4), %vm568_vm0, %v5247_v1  ;;  %4635 = vmatprep.subr.bf16.mxu1 (!%p3571_p4), %v4634_v56  ;;  %v4642_v60 = vpack.c.bf16 (!%p3571_p4), %v5282_v8, %v5277_v7 }
  0x15   : > { %v5317_v15 = vld [vmem:[%s6895_s6 + $0x60] sm:$0xff]  ;;  %v5327_v17 = vld [vmem:[%s6895_s6 + $0x70] sm:$0xff]  ;;  %s5332_s14 = scalar_lea.vmem %s6890_s1, %s3570_s21  ;;  %v5337_v18 = vld [vmem:[%s6895_s6 + $0x78] sm:$0xff]  ;;  %4637 = vmatpush3.bf16.msra.mxu1 (!%p3571_p4), %v4634_v56 }
  0x16   : > { %v5342_v19 = vld [vmem:[%s6896_s7] sm:$0x1]  ;;  %v5352_v21 = vld [vmem:[%s6897_s8 + $0x8] sm:$0xff]  ;;  %v5357_v22 = vld [vmem:[%s6897_s8 + $0x10] sm:$0xff]  ;;  %4639 = vmatprep.subr.bf16.mxu1 (!%p3571_p4), %v4638_v57 }
  0x17   : > { %v5347_v20 = vld [vmem:[%s6897_s8] sm:$0xff]  ;;  %v5362_v23 = vld [vmem:[%s6897_s8 + $0x18] sm:$0xff]  ;;  %v5372_v25 = vld [vmem:[%s6897_s8 + $0x28] sm:$0xff] }
  0x18   : > { %v5367_v24 = vld [vmem:[%s6897_s8 + $0x20] sm:$0xff]  ;;  %v5377_v26 = vld [vmem:[%s6897_s8 + $0x30] sm:$0xff]  ;;  %v5382_v27 = vld [vmem:[%s6897_s8 + $0x38] sm:$0xff] }
  0x19   : > { %v5387_v28 = vld [vmem:[%s6897_s8 + $0x40] sm:$0xff]  ;;  %v5392_v29 = vld [vmem:[%s6897_s8 + $0x48] sm:$0xff]  ;;  %v5397_v30 = vld [vmem:[%s6897_s8 + $0x50] sm:$0xff]  ;;  %4641 = vmatpush3.bf16.msra.mxu1 (!%p3571_p4), %v4638_v57 }
  0x1a   : > { %6938 = vst [vmem:[#allocation9_spill] sm:$0xff] %v5387_v28  ;;  %6939 = vst [vmem:[#allocation10_spill] sm:$0xff] %v5392_v29  ;;  %v5402_v31 = vld [vmem:[%s6897_s8 + $0x58] sm:$0xff]  ;;  %v5407_v32 = vld [vmem:[%s6897_s8 + $0x60] sm:$0xff]  ;;  %4643 = vmatprep.subr.bf16.mxu1 (!%p3571_p4), %v4642_v60 }
  0x1b   : > { %6940 = vst [vmem:[#allocation11_spill] sm:$0xff] %v5397_v30  ;;  %6941 = vst [vmem:[#allocation12_spill] sm:$0xff] %v5402_v31  ;;  %v5412_v33 = vld [vmem:[%s6897_s8 + $0x68] sm:$0xff]  ;;  %v5417_v34 = vld [vmem:[%s6897_s8 + $0x70] sm:$0xff] }
  0x1c   : > { %v5422_v35 = vld [vmem:[%s6897_s8 + $0x78] sm:$0xff]  ;;  %v5427_v36 = vld [vmem:[%s6898_s9] sm:$0x1]  ;;  %v5437_v38 = vld [vmem:[%s6899_s10 + $0x8] sm:$0xff] }
  0x1d   : > { %6942 = vst [vmem:[#allocation13_spill] sm:$0xff] %v5427_v36  ;;  %v5432_v37 = vld [vmem:[%s6899_s10] sm:$0xff]  ;;  %v5442_v39 = vld [vmem:[%s6899_s10 + $0x10] sm:$0xff]  ;;  %v5447_v40 = vld [vmem:[%s6899_s10 + $0x18] sm:$0xff]  ;;  %4645 = vmatpush3.bf16.msra.mxu1 (!%p3571_p4), %v4642_v60 }
  0x1e   : > { %v5452_v41 = vld [vmem:[%s6899_s10 + $0x20] sm:$0xff]  ;;  %v5457_v42 = vld [vmem:[%s6899_s10 + $0x28] sm:$0xff]  ;;  %v5462_v43 = vld [vmem:[%s6899_s10 + $0x30] sm:$0xff]  ;;  %4647 = vmatprep.subr.bf16.mxu1 (!%p3571_p4), %v4646_v63 }
  0x1f   : > { %6943 = vst [vmem:[#allocation14_spill] sm:$0xff] %v5452_v41  ;;  %6944 = vst [vmem:[#allocation15_spill] sm:$0xff] %v5457_v42  ;;  %v5467_v44 = vld [vmem:[%s6899_s10 + $0x38] sm:$0xff]  ;;  %v5472_v45 = vld [vmem:[%s6899_s10 + $0x40] sm:$0xff]  ;;  %462 = sbr.rel (%p3571_p4) target bundleno = 1197 (0x4ad), region = 72 }
  0x20   : > { %6945 = vst [vmem:[#allocation16_spill] sm:$0xff] %v5462_v43  ;;  %6946 = vst [vmem:[#allocation17_spill] sm:$0xff] %v5467_v44  ;;  %v5477_v46 = vld [vmem:[%s6899_s10 + $0x48] sm:$0xff]  ;;  %v5482_v47 = vld [vmem:[%s6899_s10 + $0x50] sm:$0xff] }
  0x21   : > { %6947 = vst [vmem:[#allocation18_spill] sm:$0xff] %v5472_v45  ;;  %6948 = vst [vmem:[#allocation19_spill] sm:$0xff] %v5477_v46  ;;  %v5487_v48 = vld [vmem:[%s6899_s10 + $0x58] sm:$0xff]  ;;  %v5492_v49 = vld [vmem:[%s6899_s10 + $0x60] sm:$0xff]  ;;  %4649 = vmatpush3.bf16.msra.mxu1 (!%p3571_p4), %v4646_v63 }
  0x22   : > { %6949 = vst [vmem:[#allocation20_spill] sm:$0xff] %v5482_v47  ;;  %6950 = vst [vmem:[#allocation21_spill] sm:$0xff] %v5487_v48  ;;  %v5497_v50 = vld [vmem:[%s6899_s10 + $0x68] sm:$0xff]  ;;  %v5502_v51 = vld [vmem:[%s6899_s10 + $0x70] sm:$0xff] }
  0x23   : > { %6951 = vst [vmem:[#allocation22_spill] sm:$0xff] %v5492_v49  ;;  %6952 = vst [vmem:[#allocation23_spill] sm:$0xff] %v5497_v50  ;;  %v5507_v52 = vld [vmem:[%s6899_s10 + $0x78] sm:$0xff]  ;;  %v5509_v53 = vld [vmem:[#allocation5] sm:$0x1] }
  0x24   : > { %6953 = vst [vmem:[#allocation24_spill] sm:$0xff] %v5502_v51  ;;  %6954 = vst [vmem:[#allocation25_spill] sm:$0xff] %v5507_v52  ;;  %v465_v54 = vld [vmem:[%s6891_s2] sm:$0xff] (!%p3571_p4)  ;;  %v466_v55 = vld [vmem:[%s6891_s2 + $0x8] sm:$0xff] (!%p3571_p4) }
  0x25   : > { %6955 = vst [vmem:[#allocation26_spill] sm:$0xff] %v5509_v53  ;;  %4008 = vmatprep.mubr.msk.f32.mxu0 (!%p3571_p4), %vm495_vm1, %v465_v54  ;;  %v467_v58 = vld [vmem:[%s6891_s2 + $0x10] sm:$0xff] (!%p3571_p4)  ;;  %v468_v59 = vld [vmem:[%s6891_s2 + $0x18] sm:$0xff] (!%p3571_p4)  ;;  %v469_v61 = vld [vmem:[%s6891_s2 + $0x20] sm:$0xff] (!%p3571_p4) }
  0x26   : > { %4009 = vmatmul.mubr.msk.f32.vlgmr.msra.gmra.mrb[0].mxu0 %vm495_vm1, %v466_v55  ;;  %v470_v62 = vld [vmem:[%s6891_s2 + $0x28] sm:$0xff]  ;;  %v471_v0 = vld [vmem:[%s6891_s2 + $0x30] sm:$0xff]  ;;  %v472_v54 = vld [vmem:[%s6891_s2 + $0x38] sm:$0xff] }
  0x27   : > { %4011 = vmatprep.mubr.msk.f32.mxu0 %vm495_vm1, %v467_v58  ;;  %v473_v55 = vld [vmem:[%s6891_s2 + $0x40] sm:$0xff]  ;;  %v474_v56 = vld [vmem:[%s6891_s2 + $0x48] sm:$0xff]  ;;  %v475_v57 = vld [vmem:[%s6891_s2 + $0x50] sm:$0xff] }
  0x28   : > { %v476_v58 = vld [vmem:[%s6891_s2 + $0x58] sm:$0xff]  ;;  %v478_v60 = vld [vmem:[%s6891_s2 + $0x68] sm:$0xff]  ;;  %v481_v63 = vld [vmem:[%s6891_s2 + $0x80] sm:$0xff] }
  0x2a   : > { %4012 = vmatmul.mubr.msk.f32.gmra.mrb[2].mxu0 %vm495_vm1, %v468_v59  ;;  %v477_v59 = vld [vmem:[%s6891_s2 + $0x60] sm:$0xff] }
  0x2b   : > { %4014 = vmatprep.mubr.msk.f32.mxu0 %vm495_vm1, %v469_v61  ;;  %v479_v61 = vld [vmem:[%s6891_s2 + $0x70] sm:$0xff] }
  0x2e   : > { %4015 = vmatmul.mubr.msk.f32.gmra.mrb[4].mxu0 %vm495_vm1, %v470_v62  ;;  %v480_v62 = vld [vmem:[%s6891_s2 + $0x78] sm:$0xff] }
  0x2f   : > { %4017 = vmatprep.mubr.msk.f32.mxu0 %vm495_vm1, %v471_v0  ;;  %v482_v0 = vld [vmem:[%s6891_s2 + $0x88] sm:$0xff] }
  0x32   : > { %4018 = vmatmul.mubr.msk.f32.gmra.mrb[6].mxu0 %vm495_vm1, %v472_v54  ;;  %v483_v54 = vld [vmem:[%s6891_s2 + $0x90] sm:$0xff] }
  0x33   : > { %4020 = vmatprep.mubr.msk.f32.mxu0 %vm495_vm1, %v473_v55  ;;  %v484_v55 = vld [vmem:[%s6891_s2 + $0x98] sm:$0xff] }
  0x36   : > { %4021 = vmatmul.mubr.msk.f32.gmra.mrb[8].mxu0 %vm495_vm1, %v474_v56  ;;  %v485_v56 = vld [vmem:[%s6891_s2 + $0xa0] sm:$0xff] }
  0x37   : > { %4023 = vmatprep.mubr.msk.f32.mxu0 %vm495_vm1, %v475_v57  ;;  %v486_v57 = vld [vmem:[%s6891_s2 + $0xa8] sm:$0xff] }
  0x3a   : > { %4024 = vmatmul.mubr.msk.f32.gmra.mrb[10].mxu0 %vm495_vm1, %v476_v58  ;;  %v487_v58 = vld [vmem:[%s6891_s2 + $0xb0] sm:$0xff] }
  0x3b   : > { %4026 = vmatprep.mubr.msk.f32.mxu0 %vm495_vm1, %v477_v59  ;;  %v488_v59 = vld [vmem:[%s6891_s2 + $0xb8] sm:$0xff] }
  0x3e   : > { %4027 = vmatmul.mubr.msk.f32.gmra.mrb[12].mxu0 %vm495_vm1, %v478_v60  ;;  %v4650_v60 = vpack.c.bf16 %v5302_v12, %v5297_v11 }
  0x3f   : > { %4029 = vmatprep.mubr.msk.f32.mxu0 %vm495_vm1, %v479_v61  ;;  %v4654_v61 = vpack.c.bf16 %v5312_v14, %v5307_v13 }
  0x40   : > { %4651 = vmatprep.subr.bf16.mxu1 %v4650_v60 }
  0x41   : > { %4653 = vmatpush3.bf16.msra.mxu1 %v4650_v60 }
  0x42   : > { %4030 = vmatmul.mubr.msk.f32.gmra.mrb[14].mxu0 %vm495_vm1, %v480_v62  ;;  %4655 = vmatprep.subr.bf16.mxu1 %v4654_v61  ;;  %v4658_v62 = vpack.c.bf16 %v5322_v16, %v5317_v15 }
  0x43   : > { %4032 = vmatprep.mubr.msk.f32.mxu0 %vm495_vm1, %v481_v63  ;;  %v4662_v63 = vpack.c.bf16 %v5337_v18, %v5327_v17 }
  0x45   : > { %4657 = vmatpush3.bf16.msra.mxu1 %v4654_v61 }
  0x46   : > { %4033 = vmatmul.mubr.msk.f32.gmra.mrb[16].mxu0 %vm495_vm1, %v482_v0  ;;  %4659 = vmatprep.subr.bf16.mxu1 %v4658_v62  ;;  %v4666_v0 = vpack.c.bf16 %v5352_v21, %v5347_v20 }
  0x47   : > { %4035 = vmatprep.mubr.msk.f32.mxu0 %vm495_vm1, %v483_v54  ;;  %v4670_v54 = vpack.c.bf16 %v5362_v23, %v5357_v22 }
  0x48   : > { %4667 = vmatprep.subr.bf16.mxu0 %v4666_v0 }
  0x49   : > { %4661 = vmatpush3.bf16.msra.mxu1 %v4658_v62  ;;  %4669 = vmatpush3.bf16.msra.mxu0 %v4666_v0 }
  0x4a   : > { %4036 = vmatmul.mubr.msk.f32.gmra.mrb[18].mxu0 %vm495_vm1, %v484_v55  ;;  %4663 = vmatprep.subr.bf16.mxu1 %v4662_v63  ;;  %v4674_v55 = vpack.c.bf16 %v5372_v25, %v5367_v24 }
  0x4b   : > { %4038 = vmatprep.mubr.msk.f32.mxu0 %vm495_vm1, %v485_v56  ;;  %4671 = vmatprep.subr.bf16.mxu0 %v4670_v54  ;;  %v4678_v56 = vpack.c.bf16 %v5382_v27, %v5377_v26 }
  0x4d   : > { %4665 = vmatpush3.bf16.msra.mxu1 %v4662_v63  ;;  %4673 = vmatpush3.bf16.msra.mxu0 %v4670_v54 }
  0x4e   : > { %4039 = vmatmul.mubr.msk.f32.gmra.mrb[20].mxu0 %vm495_vm1, %v486_v57  ;;  %4675 = vmatprep.subr.bf16.mxu0 %v4674_v55  ;;  %v4682_v57 = vpack.c.bf16 %v5392_v29, %v5387_v28 }
  0x4f   : > { %4041 = vmatprep.mubr.msk.f32.mxu0 %vm495_vm1, %v487_v58  ;;  %v4686_v58 = vpack.c.bf16 %v5402_v31, %v5397_v30 }
  0x51   : > { %4677 = vmatpush3.bf16.msra.mxu0 %v4674_v55 }
  0x52   : > { %4042 = vmatmul.mubr.msk.f32.gmra.mrb[22].mxu0 %vm495_vm1, %v488_v59  ;;  %4679 = vmatprep.subr.bf16.mxu0 %v4678_v56  ;;  %v490_v59 = vlaneseq }
  0x54   : > { %v491_v60 = vshrl.u32 %v490_v59, 7 }
  0x55   : > { %4681 = vmatpush3.bf16.msra.mxu0 %v4678_v56 }
  0x56   : > { %4683 = vmatprep.subr.bf16.mxu0 %v4682_v57  ;;  %v5638_v61 = vsub.s32 0, %v491_v60 }
  0x58   : > { %v5642_v62 = vrot.slane %v5257_v3, %v5638_v61 }
  0x59   : > { %4685 = vmatpush3.bf16.msra.mxu0 %v4682_v57 }
  0x5a   : > { %4687 = vmatprep.subr.bf16.mxu0 %v4686_v58 }
  0x5d   : > { %4689 = vmatpush3.bf16.msra.mxu0 %v4686_v58 }
  0xf9   : > { %v4010_v63 = vpop.f32.mrb[0].mxu0 }
  0xfa   : > { %v644_v0 = vadd.f32 %v4010_v63, %v5642_v62  ;;  %v638_v54 = vpop.f32.mrb[1].mxu0 }
  0xfb   : > { %v639_v55 = vadd.f32 %v638_v54, %v5642_v62 }
  0xfd   : > { %4880 = vtanh.f32 %v639_v55  ;;  %v4013_v56 = vpop.f32.mrb[2].mxu0 }
  0xfe   : > { %4882 = vtanh.f32 %v644_v0  ;;  %v654_v57 = vadd.f32 %v4013_v56, %v5642_v62  ;;  %v648_v58 = vpop.f32.mrb[3].mxu0 }
  0xff   : > { %v649_v59 = vadd.f32 %v648_v58, %v5642_v62 }
 0x101   : > { %4884 = vtanh.f32 %v649_v59  ;;  %v4016_v60 = vpop.f32.mrb[4].mxu0 }
 0x102   : > { %4886 = vtanh.f32 %v654_v57  ;;  %v664_v31 = vadd.f32 %v4016_v60, %v5642_v62  ;;  %v658_v30 = vpop.f32.mrb[5].mxu0 }
 0x103   : > { %v659_v29 = vadd.f32 %v658_v30, %v5642_v62 }
 0x105   : > { %4888 = vtanh.f32 %v659_v29  ;;  %v4019_v63 = vpop.f32.mrb[6].mxu0 }
 0x106   : > { %4890 = vtanh.f32 %v664_v31  ;;  %v674_v54 = vadd.f32 %v4019_v63, %v5642_v62  ;;  %v668_v55 = vpop.f32.mrb[7].mxu0 }
 0x107   : > { %v4881_v0 = vpop.eup %4880  ;;  %v669_v56 = vadd.f32 %v668_v55, %v5642_v62 }
 0x108   : > { %v4883_v28 = vpop.eup %4882  ;;  %4076 = vmatprep.mubr.f32.mxu1 %v4881_v0 }
 0x109   : > { %4892 = vtanh.f32 %v669_v56  ;;  %v4022_v58 = vpop.f32.mrb[8].mxu0  ;;  %4077 = vmatmul.mubr.f32.vlgmr.msra.gmra.mrb[0].mxu1 %v4883_v28 }
 0x10a   : > { %4894 = vtanh.f32 %v674_v54  ;;  %v684_v57 = vadd.f32 %v4022_v58, %v5642_v62  ;;  %v678_v59 = vpop.f32.mrb[9].mxu0 }
 0x10b   : > { %v4885_v60 = vpop.eup %4884  ;;  %v679_v29 = vadd.f32 %v678_v59, %v5642_v62 }
 0x10c   : > { %v4887_v30 = vpop.eup %4886  ;;  %4079 = vmatprep.mubr.f32.mxu1 %v4885_v60 }
 0x10d   : > { %4896 = vtanh.f32 %v679_v29  ;;  %v4025_v31 = vpop.f32.mrb[10].mxu0  ;;  %4080 = vmatmul.mubr.f32.gmra.mrb[2].mxu1 %v4887_v30 }
 0x10e   : > { %4898 = vtanh.f32 %v684_v57  ;;  %v694_v63 = vadd.f32 %v4025_v31, %v5642_v62  ;;  %v688_v55 = vpop.f32.mrb[11].mxu0 }
 0x10f   : > { %v4889_v0 = vpop.eup %4888  ;;  %v689_v56 = vadd.f32 %v688_v55, %v5642_v62 }
 0x110   : > { %v4891_v28 = vpop.eup %4890  ;;  %4082 = vmatprep.mubr.f32.mxu1 %v4889_v0 }
 0x111   : > { %4900 = vtanh.f32 %v689_v56  ;;  %v4028_v54 = vpop.f32.mrb[12].mxu0  ;;  %4083 = vmatmul.mubr.f32.gmra.mrb[4].mxu1 %v4891_v28 }
 0x112   : > { %4902 = vtanh.f32 %v694_v63  ;;  %v704_v58 = vadd.f32 %v4028_v54, %v5642_v62  ;;  %v698_v59 = vpop.f32.mrb[13].mxu0 }
 0x113   : > { %v4893_v60 = vpop.eup %4892  ;;  %v699_v29 = vadd.f32 %v698_v59, %v5642_v62 }
 0x114   : > { %v4895_v30 = vpop.eup %4894  ;;  %4085 = vmatprep.mubr.f32.mxu1 %v4893_v60 }
 0x115   : > { %4904 = vtanh.f32 %v699_v29  ;;  %v4031_v57 = vpop.f32.mrb[14].mxu0  ;;  %4086 = vmatmul.mubr.f32.gmra.mrb[6].mxu1 %v4895_v30 }
 0x116   : > { %4906 = vtanh.f32 %v704_v58  ;;  %v714_v31 = vadd.f32 %v4031_v57, %v5642_v62  ;;  %v708_v55 = vpop.f32.mrb[15].mxu0 }
 0x117   : > { %v4897_v0 = vpop.eup %4896  ;;  %v709_v56 = vadd.f32 %v708_v55, %v5642_v62 }
 0x118   : > { %v4899_v28 = vpop.eup %4898  ;;  %4088 = vmatprep.mubr.f32.mxu1 %v4897_v0 }
 0x119   : > { %4908 = vtanh.f32 %v709_v56  ;;  %v4034_v63 = vpop.f32.mrb[16].mxu0  ;;  %4089 = vmatmul.mubr.f32.gmra.mrb[8].mxu1 %v4899_v28 }
 0x11a   : > { %4910 = vtanh.f32 %v714_v31  ;;  %v724_v54 = vadd.f32 %v4034_v63, %v5642_v62  ;;  %v718_v59 = vpop.f32.mrb[17].mxu0 }
 0x11b   : > { %v4901_v60 = vpop.eup %4900  ;;  %v719_v29 = vadd.f32 %v718_v59, %v5642_v62 }
 0x11c   : > { %v4903_v30 = vpop.eup %4902  ;;  %4091 = vmatprep.mubr.f32.mxu1 %v4901_v60 }
 0x11d   : > { %4912 = vtanh.f32 %v719_v29  ;;  %v4037_v58 = vpop.f32.mrb[18].mxu0  ;;  %4092 = vmatmul.mubr.f32.gmra.mrb[10].mxu1 %v4903_v30 }
 0x11e   : > { %4914 = vtanh.f32 %v724_v54  ;;  %v734_v57 = vadd.f32 %v4037_v58, %v5642_v62  ;;  %v728_v55 = vpop.f32.mrb[19].mxu0 }
 0x11f   : > { %v4905_v0 = vpop.eup %4904  ;;  %v729_v56 = vadd.f32 %v728_v55, %v5642_v62 }
 0x120   : > { %v4907_v28 = vpop.eup %4906  ;;  %4094 = vmatprep.mubr.f32.mxu1 %v4905_v0 }
 0x121   : > { %4916 = vtanh.f32 %v729_v56  ;;  %v4040_v31 = vpop.f32.mrb[20].mxu0  ;;  %4095 = vmatmul.mubr.f32.gmra.mrb[12].mxu1 %v4907_v28 }
 0x122   : > { %4918 = vtanh.f32 %v734_v57  ;;  %v744_v63 = vadd.f32 %v4040_v31, %v5642_v62  ;;  %v738_v59 = vpop.f32.mrb[21].mxu0 }
 0x123   : > { %v4909_v60 = vpop.eup %4908  ;;  %v739_v29 = vadd.f32 %v738_v59, %v5642_v62 }
 0x124   : > { %v4911_v30 = vpop.eup %4910  ;;  %4097 = vmatprep.mubr.f32.mxu1 %v4909_v60 }
 0x125   : > { %4920 = vtanh.f32 %v739_v29  ;;  %v4043_v54 = vpop.f32.mrb[22].mxu0  ;;  %4098 = vmatmul.mubr.f32.gmra.mrb[14].mxu1 %v4911_v30  ;;  %v4694_v30 = vpack.c.bf16 %v5422_v35, %v5417_v34 }
 0x126   : > { %4922 = vtanh.f32 %v744_v63  ;;  %v754_v58 = vadd.f32 %v4043_v54, %v5642_v62  ;;  %v748_v55 = vpop.f32.mrb[23].mxu0  ;;  %v4698_v54 = vpack.c.bf16 %v5437_v38, %v5432_v37 }
 0x127   : > { %v4913_v0 = vpop.eup %4912  ;;  %v749_v56 = vadd.f32 %v748_v55, %v5642_v62  ;;  %v4690_v62 = vpack.c.bf16 %v5412_v33, %v5407_v32  ;;  %v4706_v55 = vpack.c.bf16 %v5457_v42, %v5452_v41 }
 0x128   : > { %v4915_v28 = vpop.eup %4914  ;;  %4100 = vmatprep.mubr.f32.mxu1 %v4913_v0  ;;  %4826 = vmatprep.subr.bf16.mxu1 %v4698_v54  ;;  %v5680_v0 = vpack.c.bf16 %v5467_v44, %v5462_v43 }
 0x129   : > { %4924 = vtanh.f32 %v749_v56  ;;  %4101 = vmatmul.mubr.f32.gmra.mrb[16].mxu1 %v4915_v28  ;;  %4691 = vmatprep.subr.bf16.mxu0 %v4690_v62  ;;  %v5686_v56 = vrot.slane %v5342_v19, %v5638_v61 }
 0x12a   : > { %4926 = vtanh.f32 %v754_v58  ;;  %4693 = vmatpush3.bf16.msra.mxu0 %v4690_v62  ;;  %v4702_v58 = vpack.c.bf16 %v5447_v40, %v5442_v39  ;;  %4834 = vmatpush3.bf16.msra.mxu1 %v4698_v54 }
 0x12b   : > { %v4917_v57 = vpop.eup %4916  ;;  %4695 = vmatprep.subr.bf16.mxu0 %v4694_v30 }
 0x12c   : > { %v4919_v31 = vpop.eup %4918  ;;  %4103 = vmatprep.mubr.f32.mxu1 %v4917_v57  ;;  %4827 = vmatprep.subr.bf16.mxu1 %v4702_v58 }
 0x12d   : > { %4104 = vmatmul.mubr.f32.gmra.mrb[18].mxu1 %v4919_v31 }
 0x12e   : > { %4697 = vmatpush3.bf16.msra.mxu0 %v4694_v30  ;;  %4835 = vmatpush3.bf16.msra.mxu1 %v4702_v58 }
 0x12f   : > { %v4921_v59 = vpop.eup %4920  ;;  %4699 = vmatprep.subr.bf16.mxu0 %v4698_v54  ;;  %4828 = vmatprep.subr.bf16.mxu1 %v4706_v55 }
 0x130   : > { %v4923_v60 = vpop.eup %4922  ;;  %4106 = vmatprep.mubr.f32.mxu1 %v4921_v59 }
 0x131   : > { %4107 = vmatmul.mubr.f32.gmra.mrb[20].mxu1 %v4923_v60 }
 0x132   : > { %4836 = vmatpush3.bf16.msra.mxu1 %v4706_v55 }
 0x133   : > { %v4925_v63 = vpop.eup %4924  ;;  %4829 = vmatprep.subr.bf16.mxu1 %v5680_v0 }
 0x134   : > { %v4927_v29 = vpop.eup %4926  ;;  %4109 = vmatprep.mubr.f32.mxu1 %v4925_v63 }
 0x135   : > { %4110 = vmatmul.mubr.f32.gmra.mrb[22].mxu1 %v4927_v29 }
 0x136   : > { %4837 = vmatpush3.bf16.msra.mxu1 %v5680_v0 }
 0x1dc   : > { %v4078_v28 = vpop.f32.mrb[0].mxu1 }
 0x1dd   : > { %v859_v57 = vadd.f32 %v4078_v28, %v5686_v56  ;;  %v853_v31 = vpop.f32.mrb[1].mxu1 }
 0x1de   : > { %v854_v59 = vadd.f32 %v853_v31, %v5686_v56 }
 0x1e0   : > { %4928 = vtanh.f32 %v854_v59  ;;  %v4081_v60 = vpop.f32.mrb[2].mxu1 }
 0x1e1   : > { %4930 = vtanh.f32 %v859_v57  ;;  %v869_v63 = vadd.f32 %v4081_v60, %v5686_v56  ;;  %v863_v29 = vpop.f32.mrb[3].mxu1 }
 0x1e2   : > { %v864_v62 = vadd.f32 %v863_v29, %v5686_v56 }
 0x1e4   : > { %4932 = vtanh.f32 %v864_v62  ;;  %v4084_v30 = vpop.f32.mrb[4].mxu1 }
 0x1e5   : > { %4934 = vtanh.f32 %v869_v63  ;;  %v879_v44 = vadd.f32 %v4084_v30, %v5686_v56  ;;  %v873_v43 = vpop.f32.mrb[5].mxu1 }
 0x1e6   : > { %v874_v42 = vadd.f32 %v873_v43, %v5686_v56 }
 0x1e8   : > { %4936 = vtanh.f32 %v874_v42  ;;  %v4087_v28 = vpop.f32.mrb[6].mxu1 }
 0x1e9   : > { %4938 = vtanh.f32 %v879_v44  ;;  %v889_v31 = vadd.f32 %v4087_v28, %v5686_v56  ;;  %v883_v59 = vpop.f32.mrb[7].mxu1 }
 0x1ea   : > { %v4929_v57 = vpop.eup %4928  ;;  %v884_v60 = vadd.f32 %v883_v59, %v5686_v56 }
 0x1eb   : > { %v4931_v41 = vpop.eup %4930  ;;  %4144 = vmatprep.mubr.f32.mxu0 %v4929_v57 }
 0x1ec   : > { %4940 = vtanh.f32 %v884_v60  ;;  %v4090_v29 = vpop.f32.mrb[8].mxu1  ;;  %4145 = vmatmul.mubr.f32.vlgmr.msra.gmra.mrb[24].mxu0 %v4931_v41 }
 0x1ed   : > { %4942 = vtanh.f32 %v889_v31  ;;  %v899_v63 = vadd.f32 %v4090_v29, %v5686_v56  ;;  %v893_v62 = vpop.f32.mrb[9].mxu1  ;;  %4701 = vmatpush3.bf16.msra.mxu0 %v4698_v54 }
 0x1ee   : > { %v4933_v43 = vpop.eup %4932  ;;  %v894_v42 = vadd.f32 %v893_v62, %v5686_v56  ;;  %4703 = vmatprep.subr.bf16.mxu0 %v4702_v58 }
 0x1ef   : > { %v4935_v44 = vpop.eup %4934  ;;  %4147 = vmatprep.mubr.f32.mxu0 %v4933_v43 }
 0x1f0   : > { %4944 = vtanh.f32 %v894_v42  ;;  %v4093_v30 = vpop.f32.mrb[10].mxu1  ;;  %4148 = vmatmul.mubr.f32.gmra.mrb[26].mxu0 %v4935_v44 }
 0x1f1   : > { %4946 = vtanh.f32 %v899_v63  ;;  %v909_v28 = vadd.f32 %v4093_v30, %v5686_v56  ;;  %v903_v59 = vpop.f32.mrb[11].mxu1  ;;  %4705 = vmatpush3.bf16.msra.mxu0 %v4702_v58 }
 0x1f2   : > { %v4937_v41 = vpop.eup %4936  ;;  %v904_v31 = vadd.f32 %v903_v59, %v5686_v56  ;;  %4707 = vmatprep.subr.bf16.mxu0 %v4706_v55 }
 0x1f3   : > { %v4939_v57 = vpop.eup %4938  ;;  %4150 = vmatprep.mubr.f32.mxu0 %v4937_v41 }
 0x1f4   : > { %4948 = vtanh.f32 %v904_v31  ;;  %v4096_v54 = vpop.f32.mrb[12].mxu1  ;;  %4151 = vmatmul.mubr.f32.gmra.mrb[28].mxu0 %v4939_v57 }
 0x1f5   : > { %4950 = vtanh.f32 %v909_v28  ;;  %v919_v60 = vadd.f32 %v4096_v54, %v5686_v56  ;;  %v913_v29 = vpop.f32.mrb[13].mxu1  ;;  %4709 = vmatpush3.bf16.msra.mxu0 %v4706_v55 }
 0x1f6   : > { %v4941_v62 = vpop.eup %4940  ;;  %v914_v63 = vadd.f32 %v913_v29, %v5686_v56  ;;  %4711 = vmatprep.subr.bf16.mxu0 %v5680_v0 }
 0x1f7   : > { %v4943_v58 = vpop.eup %4942  ;;  %4153 = vmatprep.mubr.f32.mxu0 %v4941_v62 }
 0x1f8   : > { %4952 = vtanh.f32 %v914_v63  ;;  %v4099_v43 = vpop.f32.mrb[14].mxu1  ;;  %4154 = vmatmul.mubr.f32.gmra.mrb[30].mxu0 %v4943_v58 }
 0x1f9   : > { %4954 = vtanh.f32 %v919_v60  ;;  %v929_v42 = vadd.f32 %v4099_v43, %v5686_v56  ;;  %v923_v44 = vpop.f32.mrb[15].mxu1  ;;  %4713 = vmatpush3.bf16.msra.mxu0 %v5680_v0 }
 0x1fa   : > { %v4945_v30 = vpop.eup %4944  ;;  %v924_v28 = vadd.f32 %v923_v44, %v5686_v56 }
 0x1fb   : > { %v4947_v55 = vpop.eup %4946  ;;  %4156 = vmatprep.mubr.f32.mxu0 %v4945_v30 }
 0x1fc   : > { %4956 = vtanh.f32 %v924_v28  ;;  %v4102_v59 = vpop.f32.mrb[16].mxu1  ;;  %4157 = vmatmul.mubr.f32.gmra.mrb[32].mxu0 %v4947_v55 }
 0x1fd   : > { %4958 = vtanh.f32 %v929_v42  ;;  %v939_v41 = vadd.f32 %v4102_v59, %v5686_v56  ;;  %v933_v31 = vpop.f32.mrb[17].mxu1 }
 0x1fe   : > { %v4949_v57 = vpop.eup %4948  ;;  %v934_v54 = vadd.f32 %v933_v31, %v5686_v56 }
 0x1ff   : > { %v4951_v60 = vpop.eup %4950  ;;  %4159 = vmatprep.mubr.f32.mxu0 %v4949_v57 }
 0x200   : > { %4960 = vtanh.f32 %v934_v54  ;;  %v4105_v29 = vpop.f32.mrb[18].mxu1  ;;  %4160 = vmatmul.mubr.f32.gmra.mrb[34].mxu0 %v4951_v60 }
 0x201   : > { %4962 = vtanh.f32 %v939_v41  ;;  %v949_v0 = vadd.f32 %v4105_v29, %v5686_v56  ;;  %v943_v62 = vpop.f32.mrb[19].mxu1 }
 0x202   : > { %v4953_v63 = vpop.eup %4952  ;;  %v944_v58 = vadd.f32 %v943_v62, %v5686_v56 }
 0x203   : > { %v4955_v43 = vpop.eup %4954  ;;  %4162 = vmatprep.mubr.f32.mxu0 %v4953_v63 }
 0x204   : > { %4964 = vtanh.f32 %v944_v58  ;;  %v4108_v42 = vpop.f32.mrb[20].mxu1  ;;  %4163 = vmatmul.mubr.f32.gmra.mrb[36].mxu0 %v4955_v43 }
 0x205   : > { %4966 = vtanh.f32 %v949_v0  ;;  %v959_v44 = vadd.f32 %v4108_v42, %v5686_v56  ;;  %v953_v30 = vpop.f32.mrb[21].mxu1 }
 0x206   : > { %v4957_v28 = vpop.eup %4956  ;;  %v954_v55 = vadd.f32 %v953_v30, %v5686_v56  ;;  %v4722_v30 = vpack.c.bf16 %v5497_v50, %v5492_v49 }
 0x207   : > { %v4959_v59 = vpop.eup %4958  ;;  %4165 = vmatprep.mubr.f32.mxu0 %v4957_v28  ;;  %v4726_v28 = vpack.c.bf16 %v5507_v52, %v5502_v51 }
 0x208   : > { %4968 = vtanh.f32 %v954_v55  ;;  %v4111_v41 = vpop.f32.mrb[22].mxu1  ;;  %4166 = vmatmul.mubr.f32.gmra.mrb[38].mxu0 %v4959_v59  ;;  %v5724_v55 = vrot.slane %v5427_v36, %v5638_v61 }
 0x209   : > { %4970 = vtanh.f32 %v959_v44  ;;  %v969_v31 = vadd.f32 %v4111_v41, %v5686_v56  ;;  %v963_v57 = vpop.f32.mrb[23].mxu1  ;;  %v4718_v44 = vpack.c.bf16 %v5487_v48, %v5482_v47 }
 0x20a   : > { %v4961_v54 = vpop.eup %4960  ;;  %v964_v60 = vadd.f32 %v963_v57, %v5686_v56  ;;  %v4714_v56 = vpack.c.bf16 %v5477_v46, %v5472_v45 }
 0x20b   : > { %v4963_v29 = vpop.eup %4962  ;;  %4168 = vmatprep.mubr.f32.mxu0 %v4961_v54 }
 0x20c   : > { %4972 = vtanh.f32 %v964_v60  ;;  %4169 = vmatmul.mubr.f32.gmra.mrb[40].mxu0 %v4963_v29  ;;  %4715 = vmatprep.subr.bf16.mxu0 %v4714_v56 }
 0x20d   : > { %4974 = vtanh.f32 %v969_v31  ;;  %4830 = vmatprep.subr.bf16.mxu1 %v4714_v56  ;;  %4717 = vmatpush3.bf16.msra.mxu0 %v4714_v56 }
 0x20e   : > { %v4965_v0 = vpop.eup %4964  ;;  %4838 = vmatpush3.bf16.msra.mxu1 %v4714_v56  ;;  %4719 = vmatprep.subr.bf16.mxu0 %v4718_v44 }
 0x20f   : > { %v4967_v62 = vpop.eup %4966  ;;  %4171 = vmatprep.mubr.f32.mxu0 %v4965_v0  ;;  %4831 = vmatprep.subr.bf16.mxu1 %v4718_v44 }
 0x210   : > { %4172 = vmatmul.mubr.f32.gmra.mrb[42].mxu0 %v4967_v62 }
 0x211   : > { %4721 = vmatpush3.bf16.msra.mxu0 %v4718_v44 }
 0x212   : > { %v4969_v63 = vpop.eup %4968  ;;  %4839 = vmatpush3.bf16.msra.mxu1 %v4718_v44  ;;  %4723 = vmatprep.subr.bf16.mxu0 %v4722_v30 }
 0x213   : > { %v4971_v58 = vpop.eup %4970  ;;  %4174 = vmatprep.mubr.f32.mxu0 %v4969_v63  ;;  %4832 = vmatprep.subr.bf16.mxu1 %v4722_v30 }
 0x214   : > { %4175 = vmatmul.mubr.f32.gmra.mrb[44].mxu0 %v4971_v58 }
 0x215   : > { %4725 = vmatpush3.bf16.msra.mxu0 %v4722_v30 }
 0x216   : > { %v4973_v43 = vpop.eup %4972  ;;  %4840 = vmatpush3.bf16.msra.mxu1 %v4722_v30  ;;  %4727 = vmatprep.subr.bf16.mxu0 %v4726_v28 }
 0x217   : > { %v4975_v42 = vpop.eup %4974  ;;  %4177 = vmatprep.mubr.f32.mxu0 %v4973_v43  ;;  %4833 = vmatprep.subr.bf16.mxu1 %v4726_v28 }
 0x218   : > { %4178 = vmatmul.mubr.f32.gmra.mrb[46].mxu0 %v4975_v42 }
 0x219   : > { %4729 = vmatpush3.bf16.msra.mxu0 %v4726_v28 }
 0x21a   : > { %4841 = vmatpush3.bf16.msra.mxu1 %v4726_v28 }
 0x2bf   : > { %v4146_v59 = vpop.f32.mrb[24].mxu0 }
 0x2c0   : > { %v1074_v41 = vadd.f32 %v4146_v59, %v5724_v55  ;;  %v1068_v31 = vpop.f32.mrb[25].mxu0 }
 0x2c1   : > { %v1069_v57 = vadd.f32 %v1068_v31, %v5724_v55 }
 0x2c3   : > { %4976 = vtanh.f32 %v1069_v57  ;;  %v4149_v54 = vpop.f32.mrb[26].mxu0 }
 0x2c4   : > { %4978 = vtanh.f32 %v1074_v41  ;;  %v1084_v60 = vadd.f32 %v4149_v54, %v5724_v55  ;;  %v1078_v29 = vpop.f32.mrb[27].mxu0 }
 0x2c5   : > { %v1079_v0 = vadd.f32 %v1078_v29, %v5724_v55 }
 0x2c7   : > { %4980 = vtanh.f32 %v1079_v0  ;;  %v4152_v62 = vpop.f32.mrb[28].mxu0 }
 0x2c8   : > { %4982 = vtanh.f32 %v1084_v60  ;;  %v1094_v63 = vadd.f32 %v4152_v62, %v5724_v55  ;;  %v1088_v58 = vpop.f32.mrb[29].mxu0 }
 0x2c9   : > { %v1089_v43 = vadd.f32 %v1088_v58, %v5724_v55 }
 0x2cb   : > { %4984 = vtanh.f32 %v1089_v43  ;;  %v4155_v42 = vpop.f32.mrb[30].mxu0 }
 0x2cc   : > { %4986 = vtanh.f32 %v1094_v63  ;;  %v1104_v56 = vadd.f32 %v4155_v42, %v5724_v55  ;;  %v1098_v44 = vpop.f32.mrb[31].mxu0 }
 0x2cd   : > { %v4977_v30 = vpop.eup %4976  ;;  %v1099_v28 = vadd.f32 %v1098_v44, %v5724_v55 }
 0x2ce   : > { %v4979_v59 = vpop.eup %4978  ;;  %4212 = vmatprep.mubr.f32.mxu0 %v4977_v30 }
 0x2cf   : > { %4988 = vtanh.f32 %v1099_v28  ;;  %v4158_v41 = vpop.f32.mrb[32].mxu0  ;;  %4213 = vmatmul.mubr.f32.vlgmr.msra.gmra.mrb[48].mxu0 %v4979_v59 }
 0x2d0   : > { %4990 = vtanh.f32 %v1104_v56  ;;  %v1114_v31 = vadd.f32 %v4158_v41, %v5724_v55  ;;  %v1108_v57 = vpop.f32.mrb[33].mxu0 }
 0x2d1   : > { %v4981_v54 = vpop.eup %4980  ;;  %v1109_v60 = vadd.f32 %v1108_v57, %v5724_v55 }
 0x2d2   : > { %v4983_v29 = vpop.eup %4982  ;;  %4215 = vmatprep.mubr.f32.mxu0 %v4981_v54 }
 0x2d3   : > { %4992 = vtanh.f32 %v1109_v60  ;;  %v4161_v0 = vpop.f32.mrb[34].mxu0  ;;  %4216 = vmatmul.mubr.f32.gmra.mrb[50].mxu0 %v4983_v29 }
 0x2d4   : > { %4994 = vtanh.f32 %v1114_v31  ;;  %v1124_v62 = vadd.f32 %v4161_v0, %v5724_v55  ;;  %v1118_v63 = vpop.f32.mrb[35].mxu0 }
 0x2d5   : > { %v4985_v58 = vpop.eup %4984  ;;  %v1119_v43 = vadd.f32 %v1118_v63, %v5724_v55 }
 0x2d6   : > { %v4987_v42 = vpop.eup %4986  ;;  %4218 = vmatprep.mubr.f32.mxu0 %v4985_v58 }
 0x2d7   : > { %4996 = vtanh.f32 %v1119_v43  ;;  %v4164_v56 = vpop.f32.mrb[36].mxu0  ;;  %4219 = vmatmul.mubr.f32.gmra.mrb[52].mxu0 %v4987_v42 }
 0x2d8   : > { %4998 = vtanh.f32 %v1124_v62  ;;  %v1134_v44 = vadd.f32 %v4164_v56, %v5724_v55  ;;  %v1128_v30 = vpop.f32.mrb[37].mxu0 }
 0x2d9   : > { %v4989_v28 = vpop.eup %4988  ;;  %v1129_v59 = vadd.f32 %v1128_v30, %v5724_v55 }
 0x2da   : > { %v4991_v41 = vpop.eup %4990  ;;  %4221 = vmatprep.mubr.f32.mxu1 %v4989_v28 }
 0x2db   : > { %5000 = vtanh.f32 %v1129_v59  ;;  %v4167_v31 = vpop.f32.mrb[38].mxu0  ;;  %4222 = vmatmul.mubr.f32.vlgmr.msra.gmra.mrb[24].mxu1 %v4991_v41 }
 0x2dc   : > { %5002 = vtanh.f32 %v1134_v44  ;;  %v1144_v57 = vadd.f32 %v4167_v31, %v5724_v55  ;;  %v1138_v54 = vpop.f32.mrb[39].mxu0 }
 0x2dd   : > { %v4993_v60 = vpop.eup %4992  ;;  %v1139_v29 = vadd.f32 %v1138_v54, %v5724_v55 }
 0x2de   : > { %v4995_v0 = vpop.eup %4994  ;;  %4224 = vmatprep.mubr.f32.mxu1 %v4993_v60 }
 0x2df   : > { %5004 = vtanh.f32 %v1139_v29  ;;  %v4170_v62 = vpop.f32.mrb[40].mxu0  ;;  %4225 = vmatmul.mubr.f32.gmra.mrb[26].mxu1 %v4995_v0 }
 0x2e0   : > { %5006 = vtanh.f32 %v1144_v57  ;;  %v1154_v63 = vadd.f32 %v4170_v62, %v5724_v55  ;;  %v1148_v58 = vpop.f32.mrb[41].mxu0 }
 0x2e1   : > { %v4997_v43 = vpop.eup %4996  ;;  %v1149_v42 = vadd.f32 %v1148_v58, %v5724_v55 }
 0x2e2   : > { %v4999_v56 = vpop.eup %4998  ;;  %4227 = vmatprep.mubr.f32.mxu1 %v4997_v43 }
 0x2e3   : > { %5008 = vtanh.f32 %v1149_v42  ;;  %v4173_v44 = vpop.f32.mrb[42].mxu0  ;;  %4228 = vmatmul.mubr.f32.gmra.mrb[28].mxu1 %v4999_v56 }
 0x2e4   : > { %5010 = vtanh.f32 %v1154_v63  ;;  %v1164_v30 = vadd.f32 %v4173_v44, %v5724_v55  ;;  %v1158_v28 = vpop.f32.mrb[43].mxu0 }
 0x2e5   : > { %v5001_v59 = vpop.eup %5000  ;;  %v1159_v41 = vadd.f32 %v1158_v28, %v5724_v55 }
 0x2e6   : > { %v5003_v31 = vpop.eup %5002  ;;  %4230 = vmatprep.mubr.f32.mxu1 %v5001_v59 }
 0x2e7   : > { %5012 = vtanh.f32 %v1159_v41  ;;  %v4176_v57 = vpop.f32.mrb[44].mxu0  ;;  %4231 = vmatmul.mubr.f32.gmra.mrb[30].mxu1 %v5003_v31 }
 0x2e8   : > { %5014 = vtanh.f32 %v1164_v30  ;;  %v1174_v54 = vadd.f32 %v4176_v57, %v5724_v55  ;;  %v1168_v60 = vpop.f32.mrb[45].mxu0 }
 0x2e9   : > { %v5005_v29 = vpop.eup %5004  ;;  %v1169_v0 = vadd.f32 %v1168_v60, %v5724_v55  ;;  %v1403_v60 = vld [vmem:[%s6892_s3 + $0x8] sm:$0xff] }
 0x2ea   : > { %v5007_v62 = vpop.eup %5006  ;;  %4233 = vmatprep.mubr.f32.mxu1 %v5005_v29 }
 0x2eb   : > { %5016 = vtanh.f32 %v1169_v0  ;;  %v4179_v63 = vpop.f32.mrb[46].mxu0  ;;  %4234 = vmatmul.mubr.f32.gmra.mrb[32].mxu1 %v5007_v62  ;;  %v1402_v62 = vld [vmem:[%s6892_s3] sm:$0xff] }
 0x2ec   : > { %5018 = vtanh.f32 %v1174_v54  ;;  %v1184_v58 = vadd.f32 %v4179_v63, %v5724_v55  ;;  %v1178_v43 = vpop.f32.mrb[47].mxu0 }
 0x2ed   : > { %v5009_v42 = vpop.eup %5008  ;;  %v1179_v56 = vadd.f32 %v1178_v43, %v5724_v55  ;;  %v5752_v55 = vrot.slane %v5509_v53, %v5638_v61  ;;  %v1405_v61 = vld [vmem:[%s6892_s3 + $0x18] sm:$0xff] }
 0x2ee   : > { %v5011_v44 = vpop.eup %5010  ;;  %4236 = vmatprep.mubr.f32.mxu1 %v5009_v42 }
 0x2ef   : > { %5020 = vtanh.f32 %v1179_v56  ;;  %4237 = vmatmul.mubr.f32.gmra.mrb[34].mxu1 %v5011_v44 }
 0x2f0   : > { %5022 = vtanh.f32 %v1184_v58 }
 0x2f1   : > { %v5013_v30 = vpop.eup %5012 }
 0x2f2   : > { %v5015_v28 = vpop.eup %5014  ;;  %4239 = vmatprep.mubr.f32.mxu1 %v5013_v30 }
 0x2f3   : > { %4240 = vmatmul.mubr.f32.gmra.mrb[36].mxu1 %v5015_v28  ;;  %v1404_v28 = vld [vmem:[%s6892_s3 + $0x10] sm:$0xff] }
 0x2f5   : > { %v5017_v59 = vpop.eup %5016 }
 0x2f6   : > { %v5019_v41 = vpop.eup %5018  ;;  %4242 = vmatprep.mubr.f32.mxu1 %v5017_v59 }
 0x2f7   : > { %4243 = vmatmul.mubr.f32.gmra.mrb[38].mxu1 %v5019_v41 }
 0x2f9   : > { %v5021_v31 = vpop.eup %5020 }
 0x2fa   : > { %v5023_v57 = vpop.eup %5022  ;;  %4245 = vmatprep.mubr.f32.mxu1 %v5021_v31 }
 0x2fb   : > { %4246 = vmatmul.mubr.f32.gmra.mrb[40].mxu1 %v5023_v57 }
 0x3a2   : > { %v4214_v54 = vpop.f32.mrb[48].mxu0 }
 0x3a3   : > { %v1289_v29 = vadd.f32 %v4214_v54, %v5752_v55  ;;  %v1283_v0 = vpop.f32.mrb[49].mxu0 }
 0x3a4   : > { %v1284_v63 = vadd.f32 %v1283_v0, %v5752_v55  ;;  %v1407_v0 = vld [vmem:[%s6892_s3 + $0x28] sm:$0xff] }
 0x3a5   : > { %v1411_v58 = vsub.f32 %v1289_v29, %v1403_v60 }
 0x3a6   : > { %v1410_v43 = vsub.f32 %v1284_v63, %v1402_v62  ;;  %v4217_v42 = vpop.f32.mrb[50].mxu0 }
 0x3a7   : > { %v1427_v56 = vmul.f32 %v1411_v58, %v1411_v58  ;;  %v1299_v44 = vadd.f32 %v4217_v42, %v5752_v55  ;;  %v1293_v30 = vpop.f32.mrb[51].mxu0 }
 0x3a8   : > { %v1426_v59 = vmul.f32 %v1410_v43, %v1410_v43  ;;  %v1294_v41 = vadd.f32 %v1293_v30, %v5752_v55  ;;  %v1406_v43 = vld [vmem:[%s6892_s3 + $0x20] sm:$0xff] }
 0x3a9   : > { %v1436_v31 = vsel %vm1434_vm2, %v1427_v56, 0.0  ;;  %v1413_v57 = vsub.f32 %v1299_v44, %v1405_v61 }
 0x3aa   : > { %v1435_v54 = vsel %vm1434_vm2, %v1426_v59, 0.0  ;;  %v1412_v60 = vsub.f32 %v1294_v41, %v1404_v28  ;;  %v4220_v29 = vpop.f32.mrb[52].mxu0  ;;  %v1409_v41 = vld [vmem:[%s6892_s3 + $0x38] sm:$0xff] }
 0x3ab   : > { %v1437_v62 = vadd.f32 %v1436_v31, %v1435_v54  ;;  %v1309_v63 = vadd.f32 %v4220_v29, %v5752_v55  ;;  %v1303_v58 = vpop.f32.mrb[53].mxu0  ;;  %v1429_v42 = vmul.f32 %v1413_v57, %v1413_v57  ;;  %v1408_v57 = vld [vmem:[%s6892_s3 + $0x30] sm:$0xff] }
 0x3ac   : > { %v1428_v30 = vmul.f32 %v1412_v60, %v1412_v60  ;;  %v1304_v61 = vadd.f32 %v1303_v58, %v5752_v55 }
 0x3ad   : > { %v1415_v56 = vsub.f32 %v1309_v63, %v1407_v0  ;;  %v1440_v60 = vsel %vm1434_vm2, %v1429_v42, 0.0 }
 0x3ae   : > { %v1438_v44 = vsel %vm1434_vm2, %v1428_v30, 0.0  ;;  %v1414_v28 = vsub.f32 %v1304_v61, %v1406_v43  ;;  %v4223_v59 = vpop.f32.mrb[24].mxu1 }
 0x3af   : > { %v1439_v31 = vadd.f32 %v1438_v44, %v1437_v62  ;;  %v1319_v54 = vadd.f32 %v4223_v59, %v5752_v55  ;;  %v1313_v29 = vpop.f32.mrb[25].mxu1  ;;  %v1431_v58 = vmul.f32 %v1415_v56, %v1415_v56 }
 0x3b0   : > { %v1430_v0 = vmul.f32 %v1414_v28, %v1414_v28  ;;  %v1314_v63 = vadd.f32 %v1313_v29, %v5752_v55 }
 0x3b1   : > { %v1417_v43 = vsub.f32 %v1319_v54, %v1409_v41  ;;  %v1441_v30 = vadd.f32 %v1440_v60, %v1439_v31  ;;  %v1444_v51 = vsel %vm1434_vm2, %v1431_v58, 0.0 }
 0x3b2   : > { %v1442_v61 = vsel %vm1434_vm2, %v1430_v0, 0.0  ;;  %v1416_v53 = vsub.f32 %v1314_v63, %v1408_v57  ;;  %v4226_v36 = vpop.f32.mrb[26].mxu1 }
 0x3b3   : > { %v1323_v62 = vpop.f32.mrb[27].mxu1  ;;  %v1443_v44 = vadd.f32 %v1442_v61, %v1441_v30  ;;  %v1433_v52 = vmul.f32 %v1417_v43, %v1417_v43 }
 0x3b4   : > { %v1432_v59 = vmul.f32 %v1416_v53, %v1416_v53  ;;  %v1329_v53 = vadd.f32 %v4226_v36, %v5752_v55 }
 0x3b5   : > { %v1445_v50 = vadd.f32 %v1444_v51, %v1443_v44  ;;  %v1448_v29 = vsel %vm1434_vm2, %v1433_v52, 0.0  ;;  %v1324_v51 = vadd.f32 %v1323_v62, %v5752_v55 }
 0x3b6   : > { %v4229_v49 = vpop.f32.mrb[28].mxu1  ;;  %v1446_v42 = vsel %vm1434_vm2, %v1432_v59, 0.0 }
 0x3b7   : > { %v1333_v56 = vpop.f32.mrb[29].mxu1  ;;  %v1447_v28 = vadd.f32 %v1446_v42, %v1445_v50  ;;  %v1339_v52 = vadd.f32 %v4229_v49, %v5752_v55 }
 0x3b9   : > { %v1449_v41 = vadd.f32 %v1448_v29, %v1447_v28  ;;  %v1334_v28 = vadd.f32 %v1333_v56, %v5752_v55 }
 0x3ba   : > { %v4232_v31 = vpop.f32.mrb[30].mxu1 }
 0x3bb   : > { %v1343_v54 = vpop.f32.mrb[31].mxu1  ;;  %1450 = vadd.xlane.f32.xlu0 %v1449_v41 }
 0x3be   : > { %v4235_v57 = vpop.f32.mrb[32].mxu1 }
 0x3bf   : > { %v1353_v60 = vpop.f32.mrb[33].mxu1 }
 0x3c2   : > { %v4238_v0 = vpop.f32.mrb[34].mxu1 }
 0x3c3   : > { %v1369_v63 = vadd.f32 %v4238_v0, %v5752_v55  ;;  %v1363_v58 = vpop.f32.mrb[35].mxu1 }
 0x3c4   : > { %v1364_v43 = vadd.f32 %v1363_v58, %v5752_v55 }
 0x3c5   : > { %v1419_v30 = vsub.f32 %v1329_v53, %v1369_v63  ;;  %v1349_v63 = vadd.f32 %v4232_v31, %v5752_v55 }
 0x3c6   : > { %v1418_v50 = vsub.f32 %v1324_v51, %v1364_v43  ;;  %v4241_v61 = vpop.f32.mrb[36].mxu1 }
 0x3c7   : > { %v1463_v44 = vmul.f32 %v1419_v30, %v1419_v30  ;;  %v1379_v59 = vadd.f32 %v4241_v61, %v5752_v55  ;;  %v1373_v42 = vpop.f32.mrb[37].mxu1  ;;  %v1344_v30 = vadd.f32 %v1343_v54, %v5752_v55 }
 0x3c8   : > { %v1462_v29 = vmul.f32 %v1418_v50, %v1418_v50  ;;  %v1374_v36 = vadd.f32 %v1373_v42, %v5752_v55 }
 0x3c9   : > { %v1471_v41 = vsel %vm1434_vm2, %v1463_v44, 0.0  ;;  %v1421_v0 = vsub.f32 %v1339_v52, %v1379_v59 }
 0x3ca   : > { %v1470_v62 = vsel %vm1434_vm2, %v1462_v29, 0.0  ;;  %v1420_v58 = vsub.f32 %v1334_v28, %v1374_v36  ;;  %v4244_v53 = vpop.f32.mrb[38].mxu1  ;;  %v1359_v28 = vadd.f32 %v4235_v57, %v5752_v55  ;;  %v1354_v29 = vadd.f32 %v1353_v60, %v5752_v55 }
 0x3cb   : > { %v1472_v51 = vadd.f32 %v1471_v41, %v1470_v62  ;;  %v1389_v49 = vadd.f32 %v4244_v53, %v5752_v55  ;;  %v1383_v43 = vpop.f32.mrb[39].mxu1  ;;  %v1465_v61 = vmul.f32 %v1421_v0, %v1421_v0 }
 0x3cc   : > { %v1464_v56 = vmul.f32 %v1420_v58, %v1420_v58  ;;  %v1384_v50 = vadd.f32 %v1383_v43, %v5752_v55 }
 0x3cd   : > { %v1423_v42 = vsub.f32 %v1349_v63, %v1389_v49  ;;  %v1475_v62 = vsel %vm1434_vm2, %v1465_v61, 0.0 }
 0x3ce   : > { %v1473_v44 = vsel %vm1434_vm2, %v1464_v56, 0.0  ;;  %v1422_v52 = vsub.f32 %v1344_v30, %v1384_v50  ;;  %v4247_v59 = vpop.f32.mrb[40].mxu1 }
 0x3cf   : > { %v1474_v31 = vadd.f32 %v1473_v44, %v1472_v51  ;;  %v1399_v36 = vadd.f32 %v4247_v59, %v5752_v55  ;;  %v1393_v41 = vpop.f32.mrb[41].mxu1  ;;  %v1467_v54 = vmul.f32 %v1423_v42, %v1423_v42 }
 0x3d0   : > { %v1466_v0 = vmul.f32 %v1422_v52, %v1422_v52  ;;  %v1394_v58 = vadd.f32 %v1393_v41, %v5752_v55  ;;  %v5158_v55 = vmov 0.0  }
 0x3d1   : > { %v1476_v53 = vadd.f32 %v1475_v62, %v1474_v31  ;;  %v1425_v63 = vsub.f32 %v1359_v28, %v1399_v36  ;;  %v1479_v57 = vsel %vm1434_vm2, %v1467_v54, 0.0  ;;  %464 = vst.msk [vmem:[#allocation2] sm:$0x1] %vm463_vm3, %v5158_v55 }
 0x3d2   : > { %v1477_v49 = vsel %vm1434_vm2, %v1466_v0, 0.0  ;;  %v1424_v43 = vsub.f32 %v1354_v29, %v1394_v58 }
 0x3d3   : > { %v1478_v30 = vadd.f32 %v1477_v49, %v1476_v53  ;;  %v1469_v56 = vmul.f32 %v1425_v63, %v1425_v63 }
 0x3d4   : > { %v1468_v60 = vmul.f32 %v1424_v43, %v1424_v43 }
 0x3d5   : > { %v1480_v51 = vadd.f32 %v1479_v57, %v1478_v30  ;;  %v1483_v61 = vsel %vm1434_vm2, %v1469_v56, 0.0 }
 0x3d6   : > { %v1481_v50 = vsel %vm1434_vm2, %v1468_v60, 0.0 }
 0x3d7   : > { %v1482_v44 = vadd.f32 %v1481_v50, %v1480_v51 }
 0x3d9   : > { %v1484_v42 = vadd.f32 %v1483_v61, %v1482_v44 }
 0x3db   : > { %1485 = vadd.xlane.f32.xlu0 %v1484_v42 }
 0x448   : > { %v1451_v52 = vpop.xlane.xlu0 %1450 }
 0x449   : > { %v1452_v59 = vrot.slane %v1451_v52, 4 }
 0x44b   : > { %v1453_v28 = vadd.f32 %v1452_v59, %v1451_v52 }
 0x44d   : > { %v1454_v29 = vrot.slane %v1453_v28, 2 }
 0x44f   : > { %v1455_v31 = vadd.f32 %v1454_v29, %v1453_v28 }
 0x451   : > { %v1456_v36 = vrot.slane %v1455_v31, 1 }
 0x453   : > { %v1457_v41 = vadd.f32 %v1456_v36, %v1455_v31 }
 0x455   : > { %4858 = vpush %v1457_v41 }
 0x468   : > { %v1486_v62 = vpop.xlane.xlu0 %1485 }
 0x469   : > { %v1487_v54 = vrot.slane %v1486_v62, 4 }
 0x46b   : > { %v1488_v0 = vadd.f32 %v1487_v54, %v1486_v62 }
 0x46d   : > { %v1489_v58 = vrot.slane %v1488_v0, 2 }
 0x46f   : > { %v1490_v53 = vadd.f32 %v1489_v58, %v1488_v0 }
 0x471   : > { %v1491_v63 = vrot.slane %v1490_v53, 1 }
 0x473   : > { %v1492_v49 = vadd.f32 %v1491_v63, %v1490_v53 }
 0x475   : > { %4860 = vpush %v1492_v49 }
 0x486   : > { %s4859_s20 = spop %4858 }
 0x487   : > { %v1459_v43 = vstv %s4859_s20 }
 0x488   : > { %v1461_v57 = vmul.f32 0.015625, %v1459_v43 }
 0x4a6   : > { %s4861_s22 = spop %4860 }
 0x4a7   : > { %v1494_v30 = vstv %s4861_s22 }
 0x4a8   : > { %v1495_v56 = vmul.f32 0.015625, %v1494_v30 }
 0x4aa   : > { %v1496_v60 = vadd.f32 %v1495_v56, %v1461_v57 }
 0x4ac   : > { %1497 = vst.msk [vmem:[#allocation3] sm:$0x1] %vm463_vm3, %v1496_v60 }
 0x4ad PF: > { %vm1569_vm4 = vcmask 1041408   ;;  %v1498_v51 = vld [vmem:[%s5332_s14] sm:$0xff]  ;;  %vm1520_vm5 = vcmask 15360   ;;  %v1499_v50 = vld [vmem:[%s5332_s14 + $0x8] sm:$0xff]  ;;  %v4730_v44 = vpack.c.bf16 %v5262_v4, %v5252_v2  ;;  %v1500_v61 = vld [vmem:[%s5332_s14 + $0x10] sm:$0xff]  ;;  %v4734_v42 = vpack.c.bf16 %v5272_v6, %v5267_v5  ;;  %p3615_p5 = scmp.ne.s32.totalorder %s5237_s26, 1 }
 0x4ae   : > { %4248 = vmatprep.subr.msk.mxu0 %vm1569_vm4, %v5247_v1  ;;  %4250 = vmatprep.mubr.msk.f32.mxu0 %vm1520_vm5, %v1498_v51  ;;  %v1501_v55 = vld [vmem:[%s5332_s14 + $0x18] sm:$0xff]  ;;  %v1502_v2 = vld [vmem:[%s5332_s14 + $0x20] sm:$0xff]  ;;  %v4738_v4 = vpack.c.bf16 %v5282_v8, %v5277_v7  ;;  %v1503_v5 = vld [vmem:[%s5332_s14 + $0x28] sm:$0xff]  ;;  %v4742_v52 = vpack.c.bf16 %v5292_v10, %v5287_v9  ;;  %v4746_v59 = vpack.c.bf16 %v5302_v12, %v5297_v11  ;;  %v1515_v54 = vlaneseq }
 0x4af   : > { %4249 = vmatpush3.msk.msra.mxu0 %vm1569_vm4, %v5247_v1  ;;  %4842 = vmatprep.subr.bf16.mxu1 %v4730_v44  ;;  %v1504_v6 = vld [vmem:[%s5332_s14 + $0x30] sm:$0xff]  ;;  %v1505_v7 = vld [vmem:[%s5332_s14 + $0x38] sm:$0xff]  ;;  %v1506_v8 = vld [vmem:[%s5332_s14 + $0x40] sm:$0xff]  ;;  %v4750_v36 = vpack.c.bf16 %v5312_v14, %v5307_v13  ;;  %v4754_v41 = vpack.c.bf16 %v5322_v16, %v5317_v15  ;;  %v4758_v62 = vpack.c.bf16 %v5337_v18, %v5327_v17  ;;  %vm3464_vm8 = vcmask 7168  }
 0x4b0   : > { %4251 = vmatmul.mubr.msk.f32.vlgmr.msra.gmra.mrb[0].mxu0 %vm1520_vm5, %v1499_v50  ;;  %4731 = vmatprep.subr.bf16.mxu0 %v4730_v44  ;;  %v1507_v9 = vld [vmem:[%s5332_s14 + $0x48] sm:$0xff]  ;;  %v1508_v10 = vld [vmem:[%s5332_s14 + $0x50] sm:$0xff]  ;;  %v1509_v11 = vld [vmem:[%s5332_s14 + $0x58] sm:$0xff]  ;;  %v4762_v13 = vpack.c.bf16 %v5352_v21, %v5347_v20  ;;  %v5872_v14 = vshrl.u32 %v1515_v54, 7 }
 0x4b1   : > { %4253 = vmatprep.mubr.msk.f32.mxu0 %vm1520_vm5, %v1500_v61  ;;  %4733 = vmatpush3.bf16.msra.mxu0 %v4730_v44  ;;  %v1510_v12 = vld [vmem:[%s5332_s14 + $0x60] sm:$0xff]  ;;  %v1511_v28 = vld [vmem:[%s5332_s14 + $0x68] sm:$0xff]  ;;  %v1512_v29 = vld [vmem:[%s5332_s14 + $0x70] sm:$0xff] }
 0x4b2   : > { %4735 = vmatprep.subr.bf16.mxu0 %v4734_v42  ;;  %4850 = vmatpush3.bf16.msra.mxu1 %v4730_v44  ;;  %v1513_v31 = vld [vmem:[%s5332_s14 + $0x78] sm:$0xff]  ;;  %6956 = vst [vmem:[#allocation27_spill] sm:$0xff] %v5872_v14  ;;  %v5875_v15 = vsub.s32 0, %v5872_v14 }
 0x4b3   : > { %4843 = vmatprep.subr.bf16.mxu1 %v4734_v42 }
 0x4b4   : > { %4254 = vmatmul.mubr.msk.f32.gmra.mrb[2].mxu0 %vm1520_vm5, %v1501_v55  ;;  %6957 = vst [vmem:[#allocation28_spill] sm:$0xff] %v5875_v15  ;;  %v5879_v16 = vrot.slane %v5257_v3, %v5875_v15  ;;  %v5890_v44 = vrot.slane %v5247_v1, %v5875_v15  ;;  %v4766_v55 = vpack.c.bf16 %v5362_v23, %v5357_v22 }
 0x4b5   : > { %4256 = vmatprep.mubr.msk.f32.mxu0 %vm1520_vm5, %v1502_v2  ;;  %4737 = vmatpush3.bf16.msra.mxu0 %v4734_v42 }
 0x4b6   : > { %4739 = vmatprep.subr.bf16.mxu0 %v4738_v4  ;;  %4851 = vmatpush3.bf16.msra.mxu1 %v4734_v42 }
 0x4b7   : > { %4844 = vmatprep.subr.bf16.mxu1 %v4738_v4 }
 0x4b8   : > { %4257 = vmatmul.mubr.msk.f32.gmra.mrb[4].mxu0 %vm1520_vm5, %v1503_v5 }
 0x4b9   : > { %4259 = vmatprep.mubr.msk.f32.mxu0 %vm1520_vm5, %v1504_v6  ;;  %4741 = vmatpush3.bf16.msra.mxu0 %v4738_v4 }
 0x4ba   : > { %4743 = vmatprep.subr.bf16.mxu0 %v4742_v52  ;;  %4852 = vmatpush3.bf16.msra.mxu1 %v4738_v4 }
 0x4bb   : > { %4845 = vmatprep.subr.bf16.mxu1 %v4742_v52 }
 0x4bc   : > { %4260 = vmatmul.mubr.msk.f32.gmra.mrb[6].mxu0 %vm1520_vm5, %v1505_v7 }
 0x4bd   : > { %4262 = vmatprep.mubr.msk.f32.mxu0 %vm1520_vm5, %v1506_v8  ;;  %4745 = vmatpush3.bf16.msra.mxu0 %v4742_v52 }
 0x4be   : > { %4747 = vmatprep.subr.bf16.mxu0 %v4746_v59  ;;  %4853 = vmatpush3.bf16.msra.mxu1 %v4742_v52 }
 0x4bf   : > { %4846 = vmatprep.subr.bf16.mxu1 %v4746_v59 }
 0x4c0   : > { %4263 = vmatmul.mubr.msk.f32.gmra.mrb[8].mxu0 %vm1520_vm5, %v1507_v9 }
 0x4c1   : > { %4265 = vmatprep.mubr.msk.f32.mxu0 %vm1520_vm5, %v1508_v10  ;;  %4749 = vmatpush3.bf16.msra.mxu0 %v4746_v59 }
 0x4c2   : > { %4854 = vmatpush3.bf16.msra.mxu1 %v4746_v59  ;;  %4751 = vmatprep.subr.bf16.mxu0 %v4750_v36  ;;  %v4770_v59 = vpack.c.bf16 %v5372_v25, %v5367_v24 }
 0x4c3   : > { %4847 = vmatprep.subr.bf16.mxu1 %v4750_v36 }
 0x4c4   : > { %4266 = vmatmul.mubr.msk.f32.gmra.mrb[10].mxu0 %vm1520_vm5, %v1509_v11 }
 0x4c5   : > { %4268 = vmatprep.mubr.msk.f32.mxu0 %vm1520_vm5, %v1510_v12  ;;  %4753 = vmatpush3.bf16.msra.mxu0 %v4750_v36 }
 0x4c6   : > { %4855 = vmatpush3.bf16.msra.mxu1 %v4750_v36  ;;  %4755 = vmatprep.subr.bf16.mxu0 %v4754_v41 }
 0x4c7   : > { %4848 = vmatprep.subr.bf16.mxu1 %v4754_v41 }
 0x4c8   : > { %4269 = vmatmul.mubr.msk.f32.gmra.mrb[12].mxu0 %vm1520_vm5, %v1511_v28 }
 0x4c9   : > { %4271 = vmatprep.mubr.msk.f32.mxu0 %vm1520_vm5, %v1512_v29  ;;  %4757 = vmatpush3.bf16.msra.mxu0 %v4754_v41 }
 0x4ca   : > { %4856 = vmatpush3.bf16.msra.mxu1 %v4754_v41  ;;  %4759 = vmatprep.subr.bf16.mxu0 %v4758_v62 }
 0x4cb   : > { %4849 = vmatprep.subr.bf16.mxu1 %v4758_v62 }
 0x4cc   : > { %4272 = vmatmul.mubr.msk.f32.gmra.mrb[14].mxu0 %vm1520_vm5, %v1513_v31 }
 0x4cd   : > { %4761 = vmatpush3.bf16.msra.mxu0 %v4758_v62 }
 0x4ce   : > { %4857 = vmatpush3.bf16.msra.mxu1 %v4758_v62  ;;  %4763 = vmatprep.subr.bf16.mxu0 %v4762_v13 }
 0x583   : > { %v4252_v0 = vpop.f32.mrb[0].mxu0 }
 0x584   : > { %v1645_v17 = vadd.f32 %v4252_v0, %v5879_v16  ;;  %v1639_v18 = vpop.f32.mrb[1].mxu0  ;;  %v4774_v0 = vpack.c.bf16 %v5382_v27, %v5377_v26 }
 0x585   : > { %v1640_v58 = vadd.f32 %v1639_v18, %v5879_v16 }
 0x586   : > { %5024 = vtanh.f32 %v1645_v17 }
 0x587   : > { %5026 = vtanh.f32 %v1640_v58  ;;  %v4255_v53 = vpop.f32.mrb[2].mxu0 }
 0x588   : > { %v1655_v20 = vadd.f32 %v4255_v53, %v5879_v16  ;;  %v1649_v21 = vpop.f32.mrb[3].mxu0 }
 0x589   : > { %v1650_v63 = vadd.f32 %v1649_v21, %v5879_v16 }
 0x58a   : > { %5028 = vtanh.f32 %v1655_v20 }
 0x58b   : > { %5030 = vtanh.f32 %v1650_v63  ;;  %v4258_v49 = vpop.f32.mrb[4].mxu0 }
 0x58c   : > { %v1665_v3 = vadd.f32 %v4258_v49, %v5879_v16  ;;  %v1659_v43 = vpop.f32.mrb[5].mxu0 }
 0x58d   : > { %v1660_v30 = vadd.f32 %v1659_v43, %v5879_v16 }
 0x58e   : > { %5032 = vtanh.f32 %v1665_v3 }
 0x58f   : > { %5034 = vtanh.f32 %v1660_v30  ;;  %v4261_v57 = vpop.f32.mrb[6].mxu0 }
 0x590   : > { %v5025_v56 = vpop.eup %5024  ;;  %v1675_v60 = vadd.f32 %v4261_v57, %v5879_v16  ;;  %v1669_v51 = vpop.f32.mrb[7].mxu0 }
 0x591   : > { %v5027_v50 = vpop.eup %5026  ;;  %v1670_v61 = vadd.f32 %v1669_v51, %v5879_v16  ;;  %v5893_v42 = vmul.f32 %v5025_v56, %v5025_v56  ;;  %v1807_v11 = vmul.f32 -2.0, %v5025_v56 }
 0x592   : > { %5036 = vtanh.f32 %v1675_v60  ;;  %4306 = vmatprep.mubr.f32.mxu0 %v5027_v50  ;;  %v5897_v2 = vmul.f32 %v5027_v50, %v5027_v50  ;;  %v1806_v25 = vmul.f32 -2.0, %v5027_v50 }
 0x593   : > { %5038 = vtanh.f32 %v1670_v61  ;;  %v4264_v4 = vpop.f32.mrb[8].mxu0  ;;  %4307 = vmatmul.mubr.f32.vlgmr.msra.gmra.mrb[16].mxu0 %v5025_v56  ;;  %v6925_v5 = vsub.f32 1.0, %v5893_v42 }
 0x594   : > { %v5029_v6 = vpop.eup %5028  ;;  %v1685_v52 = vadd.f32 %v4264_v4, %v5879_v16  ;;  %v1679_v7 = vpop.f32.mrb[9].mxu0  ;;  %v6926_v8 = vsub.f32 1.0, %v5897_v2  ;;  %4765 = vmatpush3.bf16.msra.mxu0 %v4762_v13  ;;  %v6959_v4 = vld [vmem:[#allocation10_spill] sm:$0xff] }
 0x595   : > { %v5031_v22 = vpop.eup %5030  ;;  %v1680_v23 = vadd.f32 %v1679_v7, %v5879_v16  ;;  %v5908_v9 = vmul.f32 %v5890_v44, %v6925_v5  ;;  %v5910_v10 = vmul.f32 %v5029_v6, %v5029_v6  ;;  %4767 = vmatprep.subr.bf16.mxu0 %v4766_v55  ;;  %v1809_v21 = vmul.f32 -2.0, %v5029_v6 }
 0x596   : > { %5040 = vtanh.f32 %v1685_v52  ;;  %4309 = vmatprep.mubr.f32.mxu0 %v5031_v22  ;;  %v5915_v12 = vmul.f32 %v5890_v44, %v6926_v8  ;;  %v5917_v24 = vmul.f32 %v5031_v22, %v5031_v22  ;;  %v1808_v20 = vmul.f32 -2.0, %v5031_v22 }
 0x597   : > { %5042 = vtanh.f32 %v1680_v23  ;;  %v4267_v28 = vpop.f32.mrb[10].mxu0  ;;  %4310 = vmatmul.mubr.f32.gmra.mrb[18].mxu0 %v5029_v6  ;;  %v6921_v29 = vsub.f32 1.0, %v5910_v10  ;;  %v5921_v31 = vmul.f32 %v1807_v11, %v5908_v9 }
 0x598   : > { %v5923_v36 = vpop.eup %5032  ;;  %v1695_v41 = vadd.f32 %v4267_v28, %v5879_v16  ;;  %v1689_v62 = vpop.f32.mrb[11].mxu0  ;;  %v6923_v54 = vsub.f32 1.0, %v5917_v24  ;;  %v5928_v13 = vmul.f32 %v1806_v25, %v5915_v12  ;;  %4769 = vmatpush3.bf16.msra.mxu0 %v4766_v55  ;;  %v6958_v55 = vld [vmem:[#allocation9_spill] sm:$0xff] }
 0x599   : > { %v5035_v17 = vpop.eup %5034  ;;  %v1690_v18 = vadd.f32 %v1689_v62, %v5879_v16  ;;  %v5936_v58 = vmul.f32 %v5890_v44, %v6921_v29  ;;  %v5940_v53 = vmul.f32 %v5923_v36, %v5923_v36  ;;  %4771 = vmatprep.subr.bf16.mxu0 %v4770_v59  ;;  %v4778_v6 = vpack.c.bf16 %v6959_v4, %v6958_v55  ;;  %v6961_v62 = vld [vmem:[#allocation12_spill] sm:$0xff] }
 0x59a   : > { %5044 = vtanh.f32 %v1695_v41  ;;  %4312 = vmatprep.mubr.f32.mxu0 %v5035_v17  ;;  %v5945_v26 = vmul.f32 %v5890_v44, %v6923_v54  ;;  %v5947_v27 = vmul.f32 %v5035_v17, %v5035_v17  ;;  %v6960_v41 = vld [vmem:[#allocation11_spill] sm:$0xff] }
 0x59b   : > { %5046 = vtanh.f32 %v1690_v18  ;;  %v4270_v63 = vpop.f32.mrb[12].mxu0  ;;  %4313 = vmatmul.mubr.f32.gmra.mrb[20].mxu0 %v5923_v36  ;;  %v5956_v56 = vmul.f32 %v1809_v21, %v5936_v58  ;;  %v6918_v61 = vsub.f32 1.0, %v5940_v53  ;;  %v4782_v18 = vpack.c.bf16 %v6961_v62, %v6960_v41 }
 0x59c   : > { %v5037_v49 = vpop.eup %5036  ;;  %v1705_v3 = vadd.f32 %v4270_v63, %v5879_v16  ;;  %v1699_v43 = vpop.f32.mrb[13].mxu0  ;;  %v6920_v30 = vsub.f32 1.0, %v5947_v27  ;;  %v5953_v57 = vmul.f32 %v1808_v20, %v5945_v26  ;;  %4773 = vmatpush3.bf16.msra.mxu0 %v4770_v59 }
 0x59d   : > { %v5039_v60 = vpop.eup %5038  ;;  %v1700_v51 = vadd.f32 %v1699_v43, %v5879_v16  ;;  %v5959_v50 = vmul.f32 %v5037_v49, %v5037_v49  ;;  %4775 = vmatprep.subr.bf16.mxu0 %v4774_v0  ;;  %v1810_v43 = vmul.f32 -2.0, %v5035_v17 }
 0x59e   : > { %5048 = vtanh.f32 %v1705_v3  ;;  %4315 = vmatprep.mubr.f32.mxu0 %v5039_v60  ;;  %v5964_v52 = vmul.f32 %v5039_v60, %v5039_v60  ;;  %v5970_v22 = vmul.f32 %v5890_v44, %v6920_v30  ;;  %v5982_v3 = vmul.f32 %v5890_v44, %v6918_v61 }
 0x59f   : > { %5050 = vtanh.f32 %v1700_v51  ;;  %v4273_v7 = vpop.f32.mrb[14].mxu0  ;;  %4316 = vmatmul.mubr.f32.gmra.mrb[22].mxu0 %v5037_v49  ;;  %v6916_v59 = vsub.f32 1.0, %v5959_v50  ;;  %v1812_v51 = vmul.f32 -2.0, %v5039_v60  ;;  %v1811_v60 = vmul.f32 -2.0, %v5923_v36 }
 0x5a0   : > { %v5041_v23 = vpop.eup %5040  ;;  %v1715_v11 = vadd.f32 %v4273_v7, %v5879_v16  ;;  %v1709_v25 = vpop.f32.mrb[15].mxu0  ;;  %v6917_v28 = vsub.f32 1.0, %v5964_v52  ;;  %4777 = vmatpush3.bf16.msra.mxu0 %v4774_v0  ;;  %v5994_v17 = vmul.f32 %v1810_v43, %v5970_v22 }
 0x5a1   : > { %v5043_v20 = vpop.eup %5042  ;;  %v1710_v21 = vadd.f32 %v1709_v25, %v5879_v16  ;;  %v5977_v63 = vmul.f32 %v5041_v23, %v5041_v23  ;;  %4779 = vmatprep.subr.bf16.mxu0 %v4778_v6  ;;  %v1777_v16 = vmul.f32 %v5890_v44, %v6916_v59  ;;  %v1815_v29 = vmul.f32 -2.0, %v5041_v23 }
 0x5a2   : > { %5052 = vtanh.f32 %v1715_v11  ;;  %4318 = vmatprep.mubr.f32.mxu0 %v5043_v20  ;;  %v1776_v0 = vmul.f32 %v5890_v44, %v6917_v28  ;;  %v5987_v55 = vmul.f32 %v5043_v20, %v5043_v20 }
 0x5a3   : > { %5054 = vtanh.f32 %v1710_v21  ;;  %4319 = vmatmul.mubr.f32.gmra.mrb[24].mxu0 %v5041_v23  ;;  %v6922_v4 = vsub.f32 1.0, %v5977_v63  ;;  %v1813_v21 = vmul.f32 -2.0, %v5037_v49 }
 0x5a4   : > { %v5045_v7 = vpop.eup %5044  ;;  %v5996_v11 = vmul.f32 %v1812_v51, %v1776_v0  ;;  %4339 = vmatprep.mubr.f32.mxu1 %v1776_v0  ;;  %v6919_v25 = vsub.f32 1.0, %v5987_v55  ;;  %4781 = vmatpush3.bf16.msra.mxu0 %v4778_v6  ;;  %v6008_v51 = vmul.f32 %v1811_v60, %v5982_v3  ;;  %v1814_v0 = vmul.f32 -2.0, %v5043_v20 }
 0x5a5   : > { %v5047_v41 = vpop.eup %5046  ;;  %4340 = vmatmul.mubr.f32.vlgmr.msra.gmra.mrb[0].mxu1 %v1777_v16  ;;  %v6000_v62 = vmul.f32 %v5045_v7, %v5045_v7  ;;  %v1779_v36 = vmul.f32 %v5890_v44, %v6922_v4  ;;  %v1829_v28 = vmul.f32 %v1813_v21, %v1777_v16  ;;  %4783 = vmatprep.subr.bf16.mxu0 %v4782_v18  ;;  %v1817_v8 = vmul.f32 -2.0, %v5045_v7 }
 0x5a6   : > { %4321 = vmatprep.mubr.f32.mxu0 %v5047_v41  ;;  %v1778_v43 = vmul.f32 %v5890_v44, %v6919_v25  ;;  %v6005_v59 = vmul.f32 %v5047_v41, %v5047_v41 }
 0x5a7   : > { %4322 = vmatmul.mubr.f32.gmra.mrb[26].mxu0 %v5045_v7  ;;  %v6928_v6 = vsub.f32 1.0, %v6000_v62  ;;  %v6018_v20 = vmul.f32 %v1829_v28, %v5890_v44 }
 0x5a8   : > { %v5049_v49 = vpop.eup %5048  ;;  %4342 = vmatprep.mubr.f32.mxu1 %v1778_v43  ;;  %v6924_v61 = vsub.f32 1.0, %v6005_v59  ;;  %v1830_v25 = vmul.f32 %v1814_v0, %v1778_v43  ;;  %4785 = vmatpush3.bf16.msra.mxu0 %v4782_v18  ;;  %v1816_v43 = vmul.f32 -2.0, %v5047_v41  ;;  %v1831_v0 = vmul.f32 %v1815_v29, %v1779_v36 }
 0x5a9   : > { %v5051_v30 = vpop.eup %5050  ;;  %4343 = vmatmul.mubr.f32.gmra.mrb[2].mxu1 %v1779_v36  ;;  %v6015_v60 = vmul.f32 %v5049_v49, %v5049_v49  ;;  %v1781_v18 = vmul.f32 %v5890_v44, %v6928_v6  ;;  %v1819_v29 = vmul.f32 -2.0, %v5049_v49 }
 0x5aa   : > { %4324 = vmatprep.mubr.f32.mxu0 %v5051_v30  ;;  %v1780_v16 = vmul.f32 %v5890_v44, %v6924_v61  ;;  %v6023_v21 = vmul.f32 %v5051_v30, %v5051_v30  ;;  %v6026_v4 = vmul.f32 %v1830_v25, %v5890_v44  ;;  %v1788_v61 = vsub.s32 1, %v5872_v14 }
 0x5ab   : > { %4325 = vmatmul.mubr.f32.gmra.mrb[28].mxu0 %v5049_v49  ;;  %v6931_v28 = vsub.f32 1.0, %v6015_v60  ;;  %v6040_v6 = vmul.f32 %v1831_v0, %v5890_v44 }
 0x5ac   : > { %v5053_v23 = vpop.eup %5052  ;;  %4345 = vmatprep.mubr.f32.mxu1 %v1780_v16  ;;  %v6934_v54 = vsub.f32 1.0, %v6023_v21  ;;  %v1832_v5 = vmul.f32 %v1816_v43, %v1780_v16  ;;  %v1818_v16 = vmul.f32 -2.0, %v5051_v30  ;;  %v1789_v49 = vrot.slane %v5247_v1, %v1788_v61 }
 0x5ad   : > { %v5055_v48 = vpop.eup %5054  ;;  %4346 = vmatmul.mubr.f32.gmra.mrb[4].mxu1 %v1781_v18  ;;  %v1783_v25 = vmul.f32 %v5890_v44, %v6931_v28  ;;  %v6037_v41 = vmul.f32 %v5053_v23, %v5053_v23  ;;  %v1833_v28 = vmul.f32 %v1817_v8, %v1781_v18  ;;  %v1821_v30 = vmul.f32 -2.0, %v5053_v23 }
 0x5ae   : > { %4327 = vmatprep.mubr.f32.mxu0 %v5055_v48  ;;  %v1782_v36 = vmul.f32 %v5890_v44, %v6934_v54  ;;  %v1748_v14 = vmul.f32 %v5055_v48, %v5055_v48  ;;  %v6046_v7 = vmul.f32 %v1832_v5, %v5890_v44 }
 0x5af   : > { %4328 = vmatmul.mubr.f32.gmra.mrb[30].mxu0 %v5053_v23  ;;  %v1765_v43 = vsub.f32 1.0, %v6037_v41  ;;  %v1835_v47 = vmul.f32 %v1819_v29, %v1783_v25  ;;  %v6053_v45 = vmul.f32 %v1833_v28, %v5890_v44 }
 0x5b0   : > { %4330 = vmatprep.mubr.f32.mxu0 %v5915_v12  ;;  %4348 = vmatprep.mubr.f32.mxu1 %v1782_v36  ;;  %v1764_v0 = vsub.f32 1.0, %v1748_v14  ;;  %v1834_v46 = vmul.f32 %v1818_v16, %v1782_v36  ;;  %v1820_v12 = vmul.f32 -2.0, %v5055_v48  ;;  %v6962_v14 = vsub.f32 1.0, %v5897_v2 }
 0x5b1   : > { %4349 = vmatmul.mubr.f32.gmra.mrb[6].mxu1 %v1783_v25  ;;  %v1785_v54 = vmul.f32 %v5890_v44, %v1765_v43  ;;  %v6056_v5 = vmul.f32 %v1835_v47, %v5890_v44  ;;  %v6965_v2 = vsub.f32 1.0, %v5910_v10  ;;  %v6966_v25 = vsub.f32 1.0, %v5947_v27 }
 0x5b2   : > { %v1784_v8 = vmul.f32 %v5890_v44, %v1764_v0  ;;  %v6060_v18 = vmul.f32 %v1834_v46, %v5890_v44  ;;  %v1790_v61 = vmul.f32 %v1789_v49, %v6962_v14  ;;  %v6963_v46 = vsub.f32 1.0, %v5893_v42 }
 0x5b3   : > { %4331 = vmatmul.mubr.f32.gmra.mrb[32].mxu0 %v5908_v9  ;;  %v1837_v1 = vmul.f32 %v1821_v30, %v1785_v54  ;;  %v6964_v9 = vsub.f32 1.0, %v5917_v24  ;;  %v1794_v41 = vmul.f32 %v1789_v49, %v6966_v25  ;;  %v6967_v42 = vsub.f32 1.0, %v5940_v53 }
 0x5b4   : > { %4333 = vmatprep.mubr.f32.mxu0 %v5945_v26  ;;  %4351 = vmatprep.mubr.f32.mxu1 %v1784_v8  ;;  %v1836_v28 = vmul.f32 %v1820_v12, %v1784_v8  ;;  %v1791_v48 = vmul.f32 %v1789_v49, %v6963_v46  ;;  %v6969_v24 = vsub.f32 1.0, %v5959_v50  ;;  %v6971_v27 = vsub.f32 1.0, %v5977_v63  ;;  %v6976_v46 = vld [vmem:[#allocation14_spill] sm:$0xff] }
 0x5b5   : > { %4352 = vmatmul.mubr.f32.gmra.mrb[8].mxu1 %v1785_v54  ;;  %v1853_v47 = vmul.f32 %v1837_v1, %v5890_v44  ;;  %v1792_v26 = vmul.f32 %v1789_v49, %v6964_v9  ;;  %v1793_v54 = vmul.f32 %v1789_v49, %v6965_v2  ;;  %v6972_v30 = vsub.f32 1.0, %v6005_v59 }
 0x5b6   : > { %4354 = vmatprep.mubr.f32.mxu1 %v1790_v61  ;;  %v1852_v23 = vmul.f32 %v1836_v28, %v5890_v44  ;;  %v1797_v36 = vmul.f32 %v1789_v49, %v6969_v24  ;;  %v1799_v16 = vmul.f32 %v1789_v49, %v6971_v27  ;;  %v6974_v12 = vsub.f32 1.0, %v6023_v21 }
 0x5b7   : > { %4334 = vmatmul.mubr.f32.gmra.mrb[34].mxu0 %v5936_v58  ;;  %v1795_v58 = vmul.f32 %v1789_v49, %v6967_v42  ;;  %v1800_v53 = vmul.f32 %v1789_v49, %v6972_v30  ;;  %v1804_v14 = vmul.f32 %v1789_v49, %v1764_v0  ;;  %v1805_v63 = vmul.f32 %v1789_v49, %v1765_v43  ;;  %v6979_v42 = vld [vmem:[#allocation17_spill] sm:$0xff] }
 0x5b8   : > { %4336 = vmatprep.mubr.f32.mxu0 %v5970_v22  ;;  %v6968_v22 = vsub.f32 1.0, %v5964_v52  ;;  %v6973_v52 = vsub.f32 1.0, %v6000_v62  ;;  %v1802_v50 = vmul.f32 %v1789_v49, %v6974_v12  ;;  %v1838_v59 = vmul.f32 %v5928_v13, %v5890_v44 }
 0x5b9   : > { %4355 = vmatmul.mubr.f32.gmra.mrb[10].mxu1 %v1791_v48  ;;  %v1839_v62 = vmul.f32 %v5921_v31, %v5890_v44  ;;  %v1840_v21 = vmul.f32 %v5953_v57, %v5890_v44  ;;  %v1842_v0 = vmul.f32 %v5994_v17, %v5890_v44  ;;  %v1843_v13 = vmul.f32 %v6008_v51, %v5890_v44 }
 0x5ba   : > { %4357 = vmatprep.mubr.f32.mxu1 %v1792_v26  ;;  %v1796_v29 = vmul.f32 %v1789_v49, %v6968_v22  ;;  %v1801_v8 = vmul.f32 %v1789_v49, %v6973_v52  ;;  %v1844_v43 = vmul.f32 %v5996_v11, %v5890_v44  ;;  %v4786_v31 = vpack.c.bf16 %v5412_v33, %v5407_v32 }
 0x5bb   : > { %4337 = vmatmul.mubr.f32.gmra.mrb[36].mxu0 %v5982_v3  ;;  %v6970_v3 = vsub.f32 1.0, %v5987_v55  ;;  %v6975_v55 = vsub.f32 1.0, %v6015_v60  ;;  %v1841_v60 = vmul.f32 %v5956_v56, %v5890_v44  ;;  %v4790_v44 = vpack.c.bf16 %v5422_v35, %v5417_v34 }
 0x5bc   : > { %4787 = vmatprep.subr.bf16.mxu0 %v4786_v31  ;;  %v6124_v57 = vrot.slane %v5342_v19, %v5875_v15 }
 0x5bd   : > { %4358 = vmatmul.mubr.f32.gmra.mrb[12].mxu1 %v1793_v54  ;;  %v1798_v10 = vmul.f32 %v1789_v49, %v6970_v3  ;;  %v1803_v1 = vmul.f32 %v1789_v49, %v6975_v55  ;;  %4789 = vmatpush3.bf16.msra.mxu0 %v4786_v31  ;;  %v4798_v49 = vpack.c.bf16 %v5447_v40, %v5442_v39 }
 0x5be   : > { %4360 = vmatprep.mubr.f32.mxu1 %v1794_v41  ;;  %4791 = vmatprep.subr.bf16.mxu0 %v4790_v44  ;;  %v6978_v41 = vld [vmem:[#allocation16_spill] sm:$0xff] }
 0x5c1   : > { %4361 = vmatmul.mubr.f32.gmra.mrb[14].mxu1 %v1795_v58  ;;  %4793 = vmatpush3.bf16.msra.mxu0 %v4790_v44  ;;  %v4806_v58 = vpack.c.bf16 %v6979_v42, %v6978_v41 }
 0x5c2   : > { %4363 = vmatprep.mubr.f32.mxu1 %v1796_v29 }
 0x5c5   : > { %4364 = vmatmul.mubr.f32.gmra.mrb[16].mxu1 %v1797_v36 }
 0x5c6   : > { %4366 = vmatprep.mubr.f32.mxu1 %v1798_v10 }
 0x5c9   : > { %4367 = vmatmul.mubr.f32.gmra.mrb[18].mxu1 %v1799_v16 }
 0x5ca   : > { %4369 = vmatprep.mubr.f32.mxu1 %v1800_v53 }
 0x5cd   : > { %4370 = vmatmul.mubr.f32.gmra.mrb[20].mxu1 %v1801_v8 }
 0x5ce   : > { %4372 = vmatprep.mubr.f32.mxu1 %v1802_v50 }
 0x5d1   : > { %4373 = vmatmul.mubr.f32.gmra.mrb[22].mxu1 %v1803_v1 }
 0x5d2   : > { %4375 = vmatprep.mubr.f32.mxu1 %v1804_v14 }
 0x5d5   : > { %4376 = vmatmul.mubr.f32.gmra.mrb[24].mxu1 %v1805_v63 }
 0x5d6   : > { %4378 = vmatprep.mubr.f32.mxu1 %v1838_v59 }
 0x5d9   : > { %4379 = vmatmul.mubr.f32.gmra.mrb[26].mxu1 %v1839_v62 }
 0x5da   : > { %4381 = vmatprep.mubr.f32.mxu1 %v1840_v21 }
 0x5dd   : > { %4382 = vmatmul.mubr.f32.gmra.mrb[28].mxu1 %v1841_v60 }
 0x5de   : > { %4384 = vmatprep.mubr.f32.mxu1 %v1842_v0 }
 0x5e1   : > { %4385 = vmatmul.mubr.f32.gmra.mrb[30].mxu1 %v1843_v13 }
 0x5e2   : > { %4387 = vmatprep.mubr.f32.mxu1 %v1844_v43 }
 0x5e5   : > { %4388 = vmatmul.mubr.f32.gmra.mrb[32].mxu1 %v6018_v20 }
 0x5e6   : > { %4390 = vmatprep.mubr.f32.mxu1 %v6026_v4 }
 0x5e9   : > { %4391 = vmatmul.mubr.f32.gmra.mrb[34].mxu1 %v6040_v6 }
 0x5ea   : > { %4393 = vmatprep.mubr.f32.mxu1 %v6046_v7  ;;  %v4794_v7 = vpack.c.bf16 %v5437_v38, %v5432_v37  ;;  %v6977_v37 = vld [vmem:[#allocation15_spill] sm:$0xff] }
 0x5eb   : > { %v4802_v38 = vpack.c.bf16 %v6977_v37, %v6976_v46 }
 0x5ec   : > { %4795 = vmatprep.subr.bf16.mxu1 %v4794_v7 }
 0x5ed   : > { %4394 = vmatmul.mubr.f32.gmra.mrb[36].mxu1 %v6053_v45 }
 0x5ee   : > { %4396 = vmatprep.mubr.f32.mxu1 %v6060_v18  ;;  %4797 = vmatpush3.bf16.msra.mxu1 %v4794_v7 }
 0x5ef   : > { %4799 = vmatprep.subr.bf16.mxu1 %v4798_v49 }
 0x5f1   : > { %4397 = vmatmul.mubr.f32.gmra.mrb[38].mxu1 %v6056_v5 }
 0x5f2   : > { %4399 = vmatprep.mubr.f32.mxu1 %v1852_v23  ;;  %4801 = vmatpush3.bf16.msra.mxu1 %v4798_v49 }
 0x5f3   : > { %4803 = vmatprep.subr.bf16.mxu1 %v4802_v38 }
 0x5f5   : > { %4400 = vmatmul.mubr.f32.gmra.mrb[40].mxu1 %v1853_v47 }
 0x5f6   : > { %4805 = vmatpush3.bf16.msra.mxu1 %v4802_v38 }
 0x5f7   : > { %4807 = vmatprep.subr.bf16.mxu1 %v4806_v58 }
 0x5fa   : > { %4809 = vmatpush3.bf16.msra.mxu1 %v4806_v58 }
 0x666   : > { %v4308_v45 = vpop.f32.mrb[16].mxu0 }
 0x667   : > { %v2246_v32 = vadd.f32 %v4308_v45, %v6124_v57  ;;  %v1920_v33 = vpop.f32.mrb[17].mxu0 }
 0x668   : > { %v2245_v56 = vadd.f32 %v6124_v57, %v1920_v33 }
 0x66a   : > { %5056 = vtanh.f32 %v2245_v56  ;;  %v4311_v4 = vpop.f32.mrb[18].mxu0 }
 0x66b   : > { %5058 = vtanh.f32 %v2246_v32  ;;  %v2248_v17 = vadd.f32 %v4311_v4, %v6124_v57  ;;  %v1930_v11 = vpop.f32.mrb[19].mxu0 }
 0x66c   : > { %v2247_v34 = vadd.f32 %v6124_v57, %v1930_v11 }
 0x66e   : > { %5060 = vtanh.f32 %v2247_v34  ;;  %v4314_v35 = vpop.f32.mrb[20].mxu0 }
 0x66f   : > { %5062 = vtanh.f32 %v2248_v17  ;;  %v2250_v19 = vadd.f32 %v4314_v35, %v6124_v57  ;;  %v1940_v51 = vpop.f32.mrb[21].mxu0 }
 0x670   : > { %v2249_v6 = vadd.f32 %v6124_v57, %v1940_v51 }
 0x671   : > { %5064 = vtanh.f32 %v2250_v19 }
 0x672   : > { %5066 = vtanh.f32 %v2249_v6  ;;  %v4317_v20 = vpop.f32.mrb[22].mxu0 }
 0x673   : > { %v2252_v5 = vadd.f32 %v4317_v20, %v6124_v57  ;;  %v1950_v18 = vpop.f32.mrb[23].mxu0 }
 0x674   : > { %v5057_v61 = vpop.eup %5056  ;;  %v2251_v28 = vadd.f32 %v6124_v57, %v1950_v18 }
 0x675   : > { %v5059_v47 = vpop.eup %5058  ;;  %5068 = vtanh.f32 %v2252_v5  ;;  %4434 = vmatprep.mubr.f32.mxu0 %v5057_v61  ;;  %v2277_v3 = vmul.f32 %v5057_v61, %v5057_v61  ;;  %v6156_v50 = vmul.f32 2.0, %v5057_v61 }
 0x676   : > { %5070 = vtanh.f32 %v2251_v28  ;;  %v4320_v23 = vpop.f32.mrb[24].mxu0  ;;  %4435 = vmatmul.mubr.f32.vlgmr.msra.gmra.mrb[38].mxu0 %v5059_v47  ;;  %v2278_v36 = vmul.f32 %v5059_v47, %v5059_v47  ;;  %v6154_v12 = vmul.f32 2.0, %v5059_v47 }
 0x677   : > { %v2254_v39 = vadd.f32 %v4320_v23, %v6124_v57  ;;  %v1960_v40 = vpop.f32.mrb[25].mxu0  ;;  %v6161_v59 = vsub.f32 1.0, %v2277_v3 }
 0x678   : > { %v5061_v48 = vpop.eup %5060  ;;  %v2253_v9 = vadd.f32 %v6124_v57, %v1960_v40  ;;  %v6142_v26 = vpop.f32.mrb[0].mxu1  ;;  %v6159_v63 = vsub.f32 1.0, %v2278_v36 }
 0x679   : > { %v5063_v2 = vpop.eup %5062  ;;  %5072 = vtanh.f32 %v2254_v39  ;;  %v6144_v54 = vpop.f32.mrb[1].mxu1  ;;  %4437 = vmatprep.mubr.f32.mxu0 %v5061_v48  ;;  %v2279_v52 = vmul.f32 %v5061_v48, %v5061_v48  ;;  %v6168_v31 = vmul.f32 2.0, %v5061_v48 }
 0x67a   : > { %5074 = vtanh.f32 %v2253_v9  ;;  %v4323_v25 = vpop.f32.mrb[26].mxu0  ;;  %4438 = vmatmul.mubr.f32.gmra.mrb[40].mxu0 %v5063_v2  ;;  %v2280_v53 = vmul.f32 %v5063_v2, %v5063_v2  ;;  %v6166_v43 = vmul.f32 2.0, %v5063_v2 }
 0x67b   : > { %v5065_v22 = vpop.eup %5064  ;;  %v2256_v29 = vadd.f32 %v4323_v25, %v6124_v57  ;;  %v1970_v24 = vpop.f32.mrb[27].mxu0  ;;  %v6174_v33 = vsub.f32 1.0, %v2279_v52 }
 0x67c   : > { %v5067_v10 = vpop.eup %5066  ;;  %v2255_v27 = vadd.f32 %v6124_v57, %v1970_v24  ;;  %v6150_v16 = vpop.f32.mrb[2].mxu1  ;;  %v2282_v62 = vmul.f32 %v5065_v22, %v5065_v22  ;;  %v6172_v32 = vsub.f32 1.0, %v2280_v53  ;;  %v6178_v17 = vmul.f32 2.0, %v5065_v22 }
 0x67d   : > { %5076 = vtanh.f32 %v2256_v29  ;;  %v6152_v30 = vpop.f32.mrb[3].mxu1  ;;  %4440 = vmatprep.mubr.f32.mxu0 %v5067_v10  ;;  %v2281_v11 = vmul.f32 %v5067_v10, %v5067_v10  ;;  %v6185_v20 = vmul.f32 2.0, %v5067_v10 }
 0x67e   : > { %5078 = vtanh.f32 %v2255_v27  ;;  %v4326_v8 = vpop.f32.mrb[28].mxu0  ;;  %4441 = vmatmul.mubr.f32.gmra.mrb[42].mxu0 %v5065_v22  ;;  %v6183_v6 = vsub.f32 1.0, %v2282_v62 }
 0x67f   : > { %v5069_v55 = vpop.eup %5068  ;;  %v2258_v1 = vadd.f32 %v4326_v8, %v6124_v57  ;;  %v1980_v14 = vpop.f32.mrb[29].mxu0 }
 0x680   : > { %v5071_v21 = vpop.eup %5070  ;;  %v2284_v60 = vmul.f32 %v5069_v55, %v5069_v55  ;;  %v2257_v0 = vadd.f32 %v6124_v57, %v1980_v14  ;;  %v6164_v13 = vpop.f32.mrb[4].mxu1  ;;  %v2348_v5 = vmul.f32 2.0, %v5069_v55 }
 0x681   : > { %v2283_v44 = vmul.f32 %v5071_v21, %v5071_v21  ;;  %5080 = vtanh.f32 %v2258_v1  ;;  %v6170_v45 = vpop.f32.mrb[5].mxu1  ;;  %4443 = vmatprep.mubr.f32.mxu0 %v5071_v21  ;;  %v2347_v23 = vmul.f32 2.0, %v5071_v21 }
 0x682   : > { %v6176_v56 = vsub.f32 1.0, %v2284_v60  ;;  %5082 = vtanh.f32 %v2257_v0  ;;  %v4329_v4 = vpop.f32.mrb[30].mxu0  ;;  %4444 = vmatmul.mubr.f32.gmra.mrb[44].mxu0 %v5069_v55 }
 0x683   : > { %v5073_v34 = vpop.eup %5072  ;;  %v6180_v35 = vsub.f32 1.0, %v2283_v44  ;;  %v2260_v19 = vadd.f32 %v4329_v4, %v6124_v57  ;;  %v1990_v51 = vpop.f32.mrb[31].mxu0 }
 0x684   : > { %v5075_v7 = vpop.eup %5074  ;;  %v6189_v49 = vmul.f32 %v6142_v26, %v6176_v56  ;;  %v2286_v18 = vmul.f32 %v5073_v34, %v5073_v34  ;;  %v2259_v61 = vadd.f32 %v6124_v57, %v1990_v51  ;;  %v6192_v28 = vpop.f32.mrb[6].mxu1  ;;  %v6203_v57 = vsub.f32 1.0, %v2281_v11 }
 0x685   : > { %v6196_v47 = vmul.f32 %v6180_v35, %v6144_v54  ;;  %v2285_v46 = vmul.f32 %v5075_v7, %v5075_v7  ;;  %5084 = vtanh.f32 %v2260_v19  ;;  %v6198_v37 = vpop.f32.mrb[7].mxu1  ;;  %4446 = vmatprep.mubr.f32.mxu0 %v5075_v7  ;;  %v2350_v2 = vmul.f32 2.0, %v5073_v34 }
 0x686   : > { %v2364_v38 = vmul.f32 %v2348_v5, %v6189_v49  ;;  %v6201_v39 = vsub.f32 1.0, %v2286_v18  ;;  %5086 = vtanh.f32 %v2259_v61  ;;  %v4332_v40 = vpop.f32.mrb[32].mxu0  ;;  %4447 = vmatmul.mubr.f32.gmra.mrb[46].mxu0 %v5073_v34  ;;  %v2349_v24 = vmul.f32 2.0, %v5075_v7 }
 0x687   : > { %v5077_v48 = vpop.eup %5076  ;;  %v2363_v9 = vmul.f32 %v2347_v23, %v6196_v47  ;;  %v6206_v25 = vsub.f32 1.0, %v2285_v46  ;;  %v6209_v41 = vmul.f32 %v4332_v40, %v6159_v63  ;;  %v2000_v42 = vpop.f32.mrb[33].mxu0 }
 0x688   : > { %v5079_v58 = vpop.eup %5078  ;;  %v6212_v22 = vmul.f32 %v6142_v26, %v2364_v38  ;;  %v6216_v29 = vmul.f32 %v6150_v16, %v6201_v39  ;;  %v2288_v36 = vmul.f32 %v5077_v48, %v5077_v48  ;;  %v6218_v3 = vpop.f32.mrb[8].mxu1  ;;  %v2352_v53 = vmul.f32 2.0, %v5077_v48 }
 0x689   : > { %v6221_v10 = vmul.f32 %v2363_v9, %v6144_v54  ;;  %v6225_v27 = vmul.f32 %v6206_v25, %v6152_v30  ;;  %v2287_v52 = vmul.f32 %v5079_v58, %v5079_v58  ;;  %v6227_v8 = vpop.f32.mrb[9].mxu1  ;;  %4449 = vmatprep.mubr.f32.mxu0 %v5079_v58  ;;  %v2358_v1 = vmul.f32 %v6154_v12, %v6209_v41 }
 0x68a   : > { %v2366_v26 = vmul.f32 %v2350_v2, %v6216_v29  ;;  %v6230_v55 = vsub.f32 1.0, %v2288_v36  ;;  %v2309_v14 = vmul.f32 %v6161_v59, %v2000_v42  ;;  %v4335_v54 = vpop.f32.mrb[34].mxu0  ;;  %4450 = vmatmul.mubr.f32.gmra.mrb[48].mxu0 %v5077_v48  ;;  %v2351_v0 = vmul.f32 2.0, %v5079_v58 }
 0x68b   : > { %v5081_v62 = vpop.eup %5080  ;;  %v2365_v21 = vmul.f32 %v2349_v24, %v6225_v27  ;;  %v6236_v60 = vsub.f32 1.0, %v2287_v52  ;;  %v6239_v44 = vmul.f32 %v4335_v54, %v6172_v32  ;;  %v2010_v4 = vpop.f32.mrb[35].mxu0  ;;  %v6258_v48 = vmul.f32 %v4332_v40, %v2358_v1 }
 0x68c   : > { %v5083_v11 = vpop.eup %5082  ;;  %v6242_v34 = vmul.f32 %v6150_v16, %v2366_v26  ;;  %v6246_v12 = vmul.f32 %v6164_v13, %v6230_v55  ;;  %v2290_v19 = vmul.f32 %v5081_v62, %v5081_v62  ;;  %v2354_v51 = vmul.f32 2.0, %v5081_v62  ;;  %v4356_v7 = vpop.f32.mrb[10].mxu1 }
 0x68d   : > { %v6249_v5 = vmul.f32 %v2365_v21, %v6152_v30  ;;  %v6253_v18 = vmul.f32 %v6236_v60, %v6170_v45  ;;  %v2289_v61 = vmul.f32 %v5083_v11, %v5083_v11  ;;  %v2353_v23 = vmul.f32 2.0, %v5083_v11  ;;  %v2080_v46 = vpop.f32.mrb[11].mxu1  ;;  %4452 = vmatprep.mubr.f32.mxu0 %v5083_v11 }
 0x68e   : > { %v2368_v16 = vmul.f32 %v2352_v53, %v6246_v12  ;;  %v6256_v38 = vsub.f32 1.0, %v2290_v19  ;;  %v2357_v9 = vmul.f32 %v6156_v50, %v2309_v14  ;;  %v4338_v2 = vpop.f32.mrb[36].mxu0  ;;  %4453 = vmatmul.mubr.f32.gmra.mrb[50].mxu0 %v5081_v62  ;;  %v2360_v36 = vmul.f32 %v6166_v43, %v6239_v44 }
 0x68f   : > { %v5085_v30 = vpop.eup %5084  ;;  %v2367_v58 = vmul.f32 %v2351_v0, %v6253_v18  ;;  %v6262_v24 = vsub.f32 1.0, %v2289_v61  ;;  %v2311_v52 = vmul.f32 %v6174_v33, %v2010_v4  ;;  %v2020_v26 = vpop.f32.mrb[37].mxu0 }
 0x690   : > { %v5087_v53 = vpop.eup %5086  ;;  %v6268_v21 = vmul.f32 %v6164_v13, %v2368_v16  ;;  %v6272_v50 = vmul.f32 %v6192_v28, %v6256_v38  ;;  %v6274_v40 = vmul.f32 %v2357_v9, %v2000_v42  ;;  %v2292_v1 = vmul.f32 %v5085_v30, %v5085_v30  ;;  %v4359_v62 = vpop.f32.mrb[12].mxu1 }
 0x691   : > { %v6277_v0 = vmul.f32 %v2367_v58, %v6170_v45  ;;  %v6281_v43 = vmul.f32 %v6262_v24, %v6198_v37  ;;  %v2356_v11 = vmul.f32 2.0, %v5085_v30  ;;  %v2291_v19 = vmul.f32 %v5087_v53, %v5087_v53  ;;  %v2090_v61 = vpop.f32.mrb[13].mxu1  ;;  %4455 = vmatprep.mubr.f32.mxu0 %v5087_v53 }
 0x692   : > { %6980 = vst [vmem:[#allocation9_spill] sm:$0xff] %v6268_v21  ;;  %v2370_v13 = vmul.f32 %v2354_v51, %v6272_v50  ;;  %v6284_v16 = vsub.f32 1.0, %v2292_v1  ;;  %v2355_v15 = vmul.f32 2.0, %v5087_v53  ;;  %v6286_v42 = vmul.f32 %v4335_v54, %v2360_v36  ;;  %4456 = vmatmul.mubr.f32.gmra.mrb[52].mxu0 %v5085_v30 }
 0x693   : > { %6981 = vst [vmem:[#allocation10_spill] sm:$0xff] %v6277_v0  ;;  %v2369_v9 = vmul.f32 %v2353_v23, %v6281_v43  ;;  %v6289_v45 = vsub.f32 1.0, %v2291_v19  ;;  %v2359_v58 = vmul.f32 %v6168_v31, %v2311_v52  ;;  %v6293_v0 = vmul.f32 %v4356_v7, %v6159_v63  ;;  %4458 = vmatprep.mubr.f32.mxu0 %v2309_v14 }
 0x694   : > { %v6296_v21 = vmul.f32 %v6192_v28, %v2370_v13  ;;  %v6300_v51 = vmul.f32 %v6218_v3, %v6284_v16  ;;  %v6303_v54 = vmul.f32 %v6161_v59, %v2080_v46  ;;  %v2314_v23 = vmul.f32 %v4338_v2, %v6183_v6  ;;  %v4362_v30 = vpop.f32.mrb[14].mxu1 }
 0x695   : > { %v6307_v36 = vmul.f32 %v2369_v9, %v6198_v37  ;;  %v2323_v31 = vmul.f32 %v6289_v45, %v6227_v8  ;;  %v6311_v14 = vmul.f32 %v2359_v58, %v2010_v4  ;;  %v2313_v28 = vmul.f32 %v6203_v57, %v2020_v26  ;;  %v2100_v7 = vpop.f32.mrb[15].mxu1 }
 0x696   : > { %v2372_v53 = vmul.f32 %v2356_v11, %v6300_v51  ;;  %v2362_v1 = vmul.f32 %v6178_v17, %v2314_v23  ;;  %v6317_v46 = vmul.f32 %v4359_v62, %v6172_v32  ;;  %v6320_v19 = vmul.f32 %v6174_v33, %v2090_v61  ;;  %4459 = vmatmul.mubr.f32.gmra.mrb[54].mxu0 %v6209_v41 }
 0x697   : > { %v2371_v37 = vmul.f32 %v2355_v15, %v2323_v31  ;;  %v2361_v13 = vmul.f32 %v6185_v20, %v2313_v28  ;;  %v6325_v4 = vmul.f32 %v4362_v30, %v6183_v6  ;;  %v6328_v9 = vmul.f32 %v6203_v57, %v2100_v7  ;;  %4461 = vmatprep.mubr.f32.mxu0 %v2311_v52 }
 0x698   : > { %v6331_v17 = vmul.f32 %v6218_v3, %v2372_v53  ;;  %v6333_v62 = vmul.f32 %v4338_v2, %v2362_v1  ;;  %v4365_v11 = vpop.f32.mrb[16].mxu1 }
 0x699   : > { %v6336_v61 = vmul.f32 %v2371_v37, %v6227_v8  ;;  %v6338_v41 = vmul.f32 %v2361_v13, %v2020_v26  ;;  %v6341_v15 = vmul.f32 %v4365_v11, %v6176_v56  ;;  %v2110_v20 = vpop.f32.mrb[17].mxu1 }
 0x69a   : > { %v6344_v58 = vmul.f32 %v6180_v35, %v2110_v20  ;;  %4462 = vmatmul.mubr.f32.gmra.mrb[56].mxu0 %v6239_v44 }
 0x69b   : > { %4464 = vmatprep.mubr.f32.mxu0 %v2313_v28 }
 0x69c   : > { %v4368_v3 = vpop.f32.mrb[18].mxu1 }
 0x69d   : > { %v6348_v2 = vmul.f32 %v4368_v3, %v6201_v39  ;;  %v2120_v52 = vpop.f32.mrb[19].mxu1 }
 0x69e   : > { %v6351_v8 = vmul.f32 %v6206_v25, %v2120_v52  ;;  %4465 = vmatmul.mubr.f32.gmra.mrb[58].mxu0 %v2314_v23 }
 0x69f   : > { %4467 = vmatprep.mubr.f32.mxu0 %v6196_v47 }
 0x6a0   : > { %v4371_v26 = vpop.f32.mrb[20].mxu1 }
 0x6a1   : > { %v6355_v30 = vmul.f32 %v4371_v26, %v6230_v55  ;;  %v2130_v7 = vpop.f32.mrb[21].mxu1 }
 0x6a2   : > { %v6358_v53 = vmul.f32 %v6236_v60, %v2130_v7  ;;  %4468 = vmatmul.mubr.f32.gmra.mrb[60].mxu0 %v6189_v49 }
 0x6a3   : > { %4470 = vmatprep.mubr.f32.mxu0 %v6225_v27 }
 0x6a4   : > { %v4374_v44 = vpop.f32.mrb[22].mxu1 }
 0x6a5   : > { %v6363_v28 = vmul.f32 %v4374_v44, %v6256_v38  ;;  %v2140_v1 = vpop.f32.mrb[23].mxu1 }
 0x6a6   : > { %v6366_v23 = vmul.f32 %v6262_v24, %v2140_v1  ;;  %4471 = vmatmul.mubr.f32.gmra.mrb[62].mxu0 %v6216_v29 }
 0x6a7   : > { %4473 = vmatprep.mubr.f32.mxu0 %v6253_v18 }
 0x6a8   : > { %v4377_v47 = vpop.f32.mrb[24].mxu1 }
 0x6a9   : > { %v6371_v37 = vmul.f32 %v4377_v47, %v6284_v16  ;;  %v2150_v13 = vpop.f32.mrb[25].mxu1 }
 0x6aa   : > { %v6374_v49 = vmul.f32 %v6289_v45, %v2150_v13  ;;  %4474 = vmatmul.mubr.f32.gmra.mrb[64].mxu0 %v6246_v12 }
 0x6ab   : > { %4476 = vmatprep.mubr.f32.mxu0 %v6281_v43 }
 0x6ac   : > { %v4380_v27 = vpop.f32.mrb[26].mxu1 }
 0x6ad   : > { %v6379_v11 = vmul.f32 %v4380_v27, %v6159_v63  ;;  %v2160_v20 = vpop.f32.mrb[27].mxu1 }
 0x6ae   : > { %v6382_v29 = vmul.f32 %v6161_v59, %v2160_v20  ;;  %4477 = vmatmul.mubr.f32.gmra.mrb[66].mxu0 %v6272_v50 }
 0x6af   : > { %v2390_v18 = vsub.f32 %v6379_v11, %v6258_v48  ;;  %4479 = vmatprep.mubr.f32.mxu0 %v2323_v31  ;;  %v6992_v48 = vld [vmem:[#allocation28_spill] sm:$0xff] }
 0x6b0   : > { %v2389_v3 = vsub.f32 %v6382_v29, %v6274_v40  ;;  %v4383_v12 = vpop.f32.mrb[28].mxu1  ;;  %v6993_v40 = vld [vmem:[#allocation13_spill] sm:$0xff] }
 0x6b1   : > { %v6390_v43 = vmul.f32 %v4383_v12, %v6172_v32  ;;  %v2170_v52 = vpop.f32.mrb[29].mxu1 }
 0x6b2   : > { %v6393_v63 = vmul.f32 %v6174_v33, %v2170_v52  ;;  %4480 = vmatmul.mubr.f32.gmra.mrb[68].mxu0 %v6300_v51 }
 0x6b3   : > { %v2392_v59 = vsub.f32 %v6390_v43, %v6286_v42  ;;  %4482 = vmatprep.mubr.f32.mxu0 %v6303_v54 }
 0x6b4   : > { %v2391_v50 = vsub.f32 %v6393_v63, %v6311_v14  ;;  %v4386_v31 = vpop.f32.mrb[30].mxu1 }
 0x6b5   : > { %v6402_v26 = vmul.f32 %v4386_v31, %v6183_v6  ;;  %v2180_v32 = vpop.f32.mrb[31].mxu1 }
 0x6b6   : > { %v6405_v7 = vmul.f32 %v6203_v57, %v2180_v32  ;;  %4483 = vmatmul.mubr.f32.gmra.mrb[70].mxu0 %v6293_v0 }
 0x6b7   : > { %v2394_v33 = vsub.f32 %v6402_v26, %v6333_v62  ;;  %4485 = vmatprep.mubr.f32.mxu0 %v6320_v19 }
 0x6b8   : > { %v2393_v51 = vsub.f32 %v6405_v7, %v6338_v41  ;;  %v4389_v54 = vpop.f32.mrb[32].mxu1 }
 0x6b9   : > { %v2332_v14 = vmul.f32 %v4389_v54, %v6176_v56  ;;  %v2190_v44 = vpop.f32.mrb[33].mxu1 }
 0x6ba   : > { %v2331_v6 = vmul.f32 %v6180_v35, %v2190_v44  ;;  %4486 = vmatmul.mubr.f32.gmra.mrb[72].mxu0 %v6317_v46 }
 0x6bb   : > { %v2396_v57 = vsub.f32 %v2332_v14, %v6212_v22  ;;  %4488 = vmatprep.mubr.f32.mxu0 %v6328_v9 }
 0x6bc   : > { %v2395_v0 = vsub.f32 %v2331_v6, %v6221_v10  ;;  %v4392_v62 = vpop.f32.mrb[34].mxu1 }
 0x6bd   : > { %v2334_v19 = vmul.f32 %v4392_v62, %v6201_v39  ;;  %v2200_v1 = vpop.f32.mrb[35].mxu1  ;;  %v6982_v39 = vld [vmem:[#allocation9_spill] sm:$0xff] }
 0x6be   : > { %v2333_v41 = vmul.f32 %v6206_v25, %v2200_v1  ;;  %4489 = vmatmul.mubr.f32.gmra.mrb[74].mxu0 %v6325_v4  ;;  %v6983_v25 = vld [vmem:[#allocation10_spill] sm:$0xff] }
 0x6bf   : > { %v2398_v56 = vsub.f32 %v2334_v19, %v6242_v34  ;;  %4491 = vmatprep.mubr.f32.mxu0 %v6344_v58 }
 0x6c0   : > { %v2397_v35 = vsub.f32 %v2333_v41, %v6249_v5  ;;  %v4395_v46 = vpop.f32.mrb[36].mxu1 }
 0x6c1   : > { %v2336_v22 = vmul.f32 %v4395_v46, %v6230_v55  ;;  %v2210_v9 = vpop.f32.mrb[37].mxu1 }
 0x6c2   : > { %v2335_v10 = vmul.f32 %v6236_v60, %v2210_v9  ;;  %4492 = vmatmul.mubr.f32.gmra.mrb[76].mxu0 %v6341_v15 }
 0x6c3   : > { %v2400_v47 = vsub.f32 %v2336_v22, %v6982_v39  ;;  %4494 = vmatprep.mubr.f32.mxu0 %v6351_v8 }
 0x6c4   : > { %v2399_v4 = vsub.f32 %v2335_v10, %v6983_v25  ;;  %v4398_v13 = vpop.f32.mrb[38].mxu1 }
 0x6c5   : > { %v2338_v34 = vmul.f32 %v4398_v13, %v6256_v38  ;;  %v2220_v58 = vpop.f32.mrb[39].mxu1 }
 0x6c6   : > { %v2337_v5 = vmul.f32 %v6262_v24, %v2220_v58  ;;  %4495 = vmatmul.mubr.f32.gmra.mrb[78].mxu0 %v6348_v2  ;;  %v6984_v2 = vld [vmem:[#allocation18_spill] sm:$0xff] }
 0x6c7   : > { %v2402_v55 = vsub.f32 %v2338_v34, %v6296_v21  ;;  %4497 = vmatprep.mubr.f32.mxu0 %v6358_v53  ;;  %v6985_v21 = vld [vmem:[#allocation19_spill] sm:$0xff]  ;;  %v6990_v53 = vld [vmem:[#allocation24_spill] sm:$0xff] }
 0x6c8   : > { %v2401_v60 = vsub.f32 %v2337_v5, %v6307_v36  ;;  %v4401_v15 = vpop.f32.mrb[40].mxu1  ;;  %v4810_v12 = vpack.c.bf16 %v6985_v21, %v6984_v2  ;;  %v6987_v36 = vld [vmem:[#allocation21_spill] sm:$0xff] }
 0x6c9   : > { %v2340_v27 = vmul.f32 %v4401_v15, %v6284_v16  ;;  %v2230_v8 = vpop.f32.mrb[41].mxu1  ;;  %v6986_v16 = vld [vmem:[#allocation20_spill] sm:$0xff] }
 0x6ca   : > { %v2339_v20 = vmul.f32 %v6289_v45, %v2230_v8  ;;  %4498 = vmatmul.mubr.f32.gmra.mrb[80].mxu0 %v6355_v30  ;;  %4811 = vmatprep.subr.bf16.mxu1 %v4810_v12  ;;  %v4814_v45 = vpack.c.bf16 %v6987_v36, %v6986_v16 }
 0x6cb   : > { %v2404_v38 = vsub.f32 %v2340_v27, %v6331_v17  ;;  %4500 = vmatprep.mubr.f32.mxu0 %v6366_v23  ;;  %4813 = vmatpush3.bf16.msra.mxu1 %v4810_v12  ;;  %v6988_v17 = vld [vmem:[#allocation22_spill] sm:$0xff] }
 0x6cc   : > { %v2403_v24 = vsub.f32 %v2339_v20, %v6336_v61  ;;  %4815 = vmatprep.subr.bf16.mxu1 %v4814_v45  ;;  %v6989_v61 = vld [vmem:[#allocation23_spill] sm:$0xff] }
 0x6cd   : > { %v4818_v30 = vpack.c.bf16 %v6989_v61, %v6988_v17 }
 0x6ce   : > { %4501 = vmatmul.mubr.f32.gmra.mrb[82].mxu0 %v6363_v28  ;;  %v6991_v28 = vld [vmem:[#allocation25_spill] sm:$0xff] }
 0x6cf   : > { %4503 = vmatprep.mubr.f32.mxu0 %v6374_v49  ;;  %4817 = vmatpush3.bf16.msra.mxu1 %v4814_v45  ;;  %v4822_v23 = vpack.c.bf16 %v6991_v28, %v6990_v53 }
 0x6d0   : > { %4819 = vmatprep.subr.bf16.mxu1 %v4818_v30 }
 0x6d2   : > { %4504 = vmatmul.mubr.f32.gmra.mrb[84].mxu0 %v6371_v37  ;;  %v6465_v37 = vrot.slane %v6993_v40, %v6992_v48 }
 0x6d3   : > { %4506 = vmatprep.mubr.f32.mxu0 %v2389_v3  ;;  %4821 = vmatpush3.bf16.msra.mxu1 %v4818_v30 }
 0x6d4   : > { %4823 = vmatprep.subr.bf16.mxu1 %v4822_v23 }
 0x6d6   : > { %4507 = vmatmul.mubr.f32.gmra.mrb[86].mxu0 %v2390_v18 }
 0x6d7   : > { %4509 = vmatprep.mubr.f32.mxu0 %v2391_v50  ;;  %4825 = vmatpush3.bf16.msra.mxu1 %v4822_v23 }
 0x6da   : > { %4510 = vmatmul.mubr.f32.gmra.mrb[88].mxu0 %v2392_v59 }
 0x6db   : > { %4512 = vmatprep.mubr.f32.mxu0 %v2393_v51 }
 0x6de   : > { %4513 = vmatmul.mubr.f32.gmra.mrb[90].mxu0 %v2394_v33 }
 0x6df   : > { %4515 = vmatprep.mubr.f32.mxu0 %v2395_v0 }
 0x6e2   : > { %4516 = vmatmul.mubr.f32.gmra.mrb[92].mxu0 %v2396_v57 }
 0x6e3   : > { %4518 = vmatprep.mubr.f32.mxu0 %v2397_v35 }
 0x6e6   : > { %4519 = vmatmul.mubr.f32.gmra.mrb[94].mxu0 %v2398_v56 }
 0x6e7   : > { %4521 = vmatprep.mubr.f32.mxu0 %v2399_v4 }
 0x6ea   : > { %4522 = vmatmul.mubr.f32.gmra.mrb[96].mxu0 %v2400_v47 }
 0x6eb   : > { %4524 = vmatprep.mubr.f32.mxu0 %v2401_v60 }
 0x6ee   : > { %4525 = vmatmul.mubr.f32.gmra.mrb[98].mxu0 %v2402_v55 }
 0x6ef   : > { %4527 = vmatprep.mubr.f32.mxu0 %v2403_v24 }
 0x6f2   : > { %4528 = vmatmul.mubr.f32.gmra.mrb[100].mxu0 %v2404_v38 }
 0x749   : > { %v4436_v42 = vpop.f32.mrb[38].mxu0 }
 0x74a   : > { %v2813_v49 = vadd.f32 %v4436_v42, %v6465_v37  ;;  %v2487_v11 = vpop.f32.mrb[39].mxu0 }
 0x74b   : > { %v2812_v29 = vadd.f32 %v6465_v37, %v2487_v11 }
 0x74d   : > { %5088 = vtanh.f32 %v2812_v29  ;;  %v4439_v18 = vpop.f32.mrb[40].mxu0 }
 0x74e   : > { %5090 = vtanh.f32 %v2813_v49  ;;  %v2815_v3 = vadd.f32 %v4439_v18, %v6465_v37  ;;  %v2497_v43 = vpop.f32.mrb[41].mxu0 }
 0x74f   : > { %v2814_v52 = vadd.f32 %v6465_v37, %v2497_v43 }
 0x751   : > { %5092 = vtanh.f32 %v2814_v52  ;;  %v4442_v63 = vpop.f32.mrb[42].mxu0 }
 0x752   : > { %5094 = vtanh.f32 %v2815_v3  ;;  %v2817_v59 = vadd.f32 %v4442_v63, %v6465_v37  ;;  %v2507_v50 = vpop.f32.mrb[43].mxu0 }
 0x753   : > { %v2816_v31 = vadd.f32 %v6465_v37, %v2507_v50 }
 0x755   : > { %5096 = vtanh.f32 %v2816_v31  ;;  %v4445_v26 = vpop.f32.mrb[44].mxu0 }
 0x756   : > { %5098 = vtanh.f32 %v2817_v59  ;;  %v2819_v32 = vadd.f32 %v4445_v26, %v6465_v37  ;;  %v2517_v7 = vpop.f32.mrb[45].mxu0 }
 0x757   : > { %v5089_v33 = vpop.eup %5088  ;;  %v2818_v51 = vadd.f32 %v6465_v37, %v2517_v7 }
 0x758   : > { %v5091_v54 = vpop.eup %5090  ;;  %4562 = vmatprep.mubr.f32.mxu1 %v5089_v33  ;;  %v2844_v34 = vmul.f32 %v5089_v33, %v5089_v33  ;;  %v2908_v45 = vmul.f32 2.0, %v5089_v33 }
 0x759   : > { %5100 = vtanh.f32 %v2818_v51  ;;  %v4448_v14 = vpop.f32.mrb[46].mxu0  ;;  %4563 = vmatmul.mubr.f32.vlgmr.msra.gmra.mrb[42].mxu1 %v5091_v54  ;;  %v2845_v4 = vmul.f32 %v5091_v54, %v5091_v54  ;;  %v2909_v21 = vmul.f32 2.0, %v5091_v54 }
 0x75a   : > { %5102 = vtanh.f32 %v2819_v32  ;;  %v2821_v44 = vadd.f32 %v4448_v14, %v6465_v37  ;;  %v2527_v6 = vpop.f32.mrb[47].mxu0  ;;  %v6506_v38 = vsub.f32 1.0, %v2844_v34 }
 0x75b   : > { %v6476_v57 = vpop.eup %5092  ;;  %v2820_v0 = vadd.f32 %v6465_v37, %v2527_v6  ;;  %v6503_v27 = vsub.f32 1.0, %v2845_v4 }
 0x75c   : > { %v5095_v62 = vpop.eup %5094  ;;  %4565 = vmatprep.mubr.f32.mxu1 %v6476_v57  ;;  %v2846_v24 = vmul.f32 %v6476_v57, %v6476_v57  ;;  %v2910_v52 = vmul.f32 2.0, %v6476_v57 }
 0x75d   : > { %5104 = vtanh.f32 %v2820_v0  ;;  %v4451_v19 = vpop.f32.mrb[48].mxu0  ;;  %4566 = vmatmul.mubr.f32.gmra.mrb[44].mxu1 %v5095_v62  ;;  %v2847_v8 = vmul.f32 %v5095_v62, %v5095_v62  ;;  %v2911_v11 = vmul.f32 2.0, %v5095_v62 }
 0x75e   : > { %5106 = vtanh.f32 %v2821_v44  ;;  %v2823_v1 = vadd.f32 %v4451_v19, %v6465_v37  ;;  %v2537_v41 = vpop.f32.mrb[49].mxu0  ;;  %v6525_v40 = vsub.f32 1.0, %v2846_v24 }
 0x75f   : > { %v6481_v56 = vpop.eup %5096  ;;  %v2822_v35 = vadd.f32 %v6465_v37, %v2537_v41  ;;  %v6520_v30 = vsub.f32 1.0, %v2847_v8 }
 0x760   : > { %v6484_v46 = vpop.eup %5098  ;;  %4568 = vmatprep.mubr.f32.mxu1 %v6481_v56  ;;  %v2912_v62 = vmul.f32 2.0, %v6481_v56 }
 0x761   : > { %5108 = vtanh.f32 %v2822_v35  ;;  %v4454_v22 = vpop.f32.mrb[50].mxu0  ;;  %4569 = vmatmul.mubr.f32.gmra.mrb[46].mxu1 %v6484_v46  ;;  %v2849_v53 = vmul.f32 %v6484_v46, %v6484_v46  ;;  %v2913_v14 = vmul.f32 2.0, %v6484_v46 }
 0x762   : > { %5110 = vtanh.f32 %v2823_v1  ;;  %v2825_v9 = vadd.f32 %v4454_v22, %v6465_v37  ;;  %v2547_v10 = vpop.f32.mrb[51].mxu0 }
 0x763   : > { %v6489_v39 = vpop.eup %5100  ;;  %v2824_v47 = vadd.f32 %v6465_v37, %v2547_v10  ;;  %v6544_v50 = vsub.f32 1.0, %v2849_v53 }
 0x764   : > { %v6492_v25 = vpop.eup %5102  ;;  %4571 = vmatprep.mubr.f32.mxu1 %v6489_v39  ;;  %v2850_v33 = vmul.f32 %v6489_v39, %v6489_v39 }
 0x765   : > { %5112 = vtanh.f32 %v2824_v47  ;;  %v4457_v13 = vpop.f32.mrb[52].mxu0  ;;  %4572 = vmatmul.mubr.f32.gmra.mrb[48].mxu1 %v6492_v25  ;;  %v2851_v31 = vmul.f32 %v6492_v25, %v6492_v25  ;;  %v2915_v4 = vmul.f32 2.0, %v6492_v25 }
 0x766   : > { %5114 = vtanh.f32 %v2825_v9  ;;  %v2827_v58 = vadd.f32 %v4457_v13, %v6465_v37  ;;  %v2557_v5 = vpop.f32.mrb[53].mxu0  ;;  %v6571_v9 = vsub.f32 1.0, %v2850_v33 }
 0x767   : > { %v6497_v55 = vpop.eup %5104  ;;  %v2826_v60 = vadd.f32 %v6465_v37, %v2557_v5  ;;  %v2848_v37 = vmul.f32 %v6481_v56, %v6481_v56  ;;  %v6566_v41 = vsub.f32 1.0, %v2851_v31  ;;  %v2914_v5 = vmul.f32 2.0, %v6489_v39 }
 0x768   : > { %v6500_v15 = vpop.eup %5106  ;;  %4574 = vmatprep.mubr.f32.mxu1 %v6497_v55  ;;  %v2852_v10 = vmul.f32 %v6497_v55, %v6497_v55 }
 0x769   : > { %5116 = vtanh.f32 %v2826_v60  ;;  %v4460_v20 = vpop.f32.mrb[54].mxu0  ;;  %4575 = vmatmul.mubr.f32.gmra.mrb[50].mxu1 %v6500_v15  ;;  %v6549_v7 = vsub.f32 1.0, %v2848_v37  ;;  %v2853_v35 = vmul.f32 %v6500_v15, %v6500_v15  ;;  %v2917_v39 = vmul.f32 2.0, %v6500_v15 }
 0x76a   : > { %5118 = vtanh.f32 %v2827_v58  ;;  %v6511_v2 = vmul.f32 %v4460_v20, %v6503_v27  ;;  %v2567_v12 = vpop.f32.mrb[55].mxu0 }
 0x76b   : > { %v6513_v16 = vpop.eup %5108  ;;  %v2876_v36 = vmul.f32 %v6506_v38, %v2567_v12  ;;  %v6583_v8 = vsub.f32 1.0, %v2853_v35 }
 0x76c   : > { %v6516_v17 = vpop.eup %5110  ;;  %v2925_v61 = vmul.f32 %v2909_v21, %v6511_v2  ;;  %4577 = vmatprep.mubr.f32.mxu1 %v6513_v16  ;;  %v2854_v25 = vmul.f32 %v6513_v16, %v6513_v16 }
 0x76d   : > { %v2924_v28 = vmul.f32 %v2908_v45, %v2876_v36  ;;  %v4463_v23 = vpop.f32.mrb[56].mxu0  ;;  %4578 = vmatmul.mubr.f32.gmra.mrb[52].mxu1 %v6516_v17 }
 0x76e   : > { %v6529_v42 = vmul.f32 %v4460_v20, %v2925_v61  ;;  %v6532_v49 = vmul.f32 %v4463_v23, %v6520_v30  ;;  %v2577_v29 = vpop.f32.mrb[57].mxu0  ;;  %v2855_v20 = vmul.f32 %v6516_v17, %v6516_v17 }
 0x76f   : > { %v6534_v18 = vpop.eup %5112  ;;  %v6536_v3 = vmul.f32 %v2924_v28, %v2567_v12  ;;  %v2878_v43 = vmul.f32 %v6525_v40, %v2577_v29  ;;  %v6588_v12 = vsub.f32 1.0, %v2852_v10 }
 0x770   : > { %v6540_v63 = vpop.eup %5114  ;;  %v2927_v59 = vmul.f32 %v2911_v11, %v6532_v49  ;;  %4580 = vmatprep.mubr.f32.mxu1 %v6534_v18  ;;  %v6600_v37 = vsub.f32 1.0, %v2855_v20  ;;  %v2856_v15 = vmul.f32 %v6534_v18, %v6534_v18 }
 0x771   : > { %v2926_v26 = vmul.f32 %v2910_v52, %v2878_v43  ;;  %v4466_v32 = vpop.f32.mrb[58].mxu0  ;;  %4581 = vmatmul.mubr.f32.gmra.mrb[54].mxu1 %v6540_v63  ;;  %v2857_v11 = vmul.f32 %v6540_v63, %v6540_v63 }
 0x772   : > { %v6553_v51 = vmul.f32 %v4463_v23, %v2927_v59  ;;  %v2881_v54 = vmul.f32 %v4466_v32, %v6544_v50  ;;  %v2587_v44 = vpop.f32.mrb[59].mxu0  ;;  %v2916_v23 = vmul.f32 2.0, %v6497_v55  ;;  %v6605_v59 = vsub.f32 1.0, %v2854_v25 }
 0x773   : > { %v6557_v6 = vpop.eup %5116  ;;  %v6559_v57 = vmul.f32 %v2926_v26, %v2577_v29  ;;  %v2880_v0 = vmul.f32 %v6549_v7, %v2587_v44  ;;  %v2919_v55 = vmul.f32 2.0, %v6516_v17 }
 0x774   : > { %v6563_v19 = vpop.eup %5118  ;;  %v2929_v1 = vmul.f32 %v2913_v14, %v2881_v54  ;;  %4583 = vmatprep.mubr.f32.mxu1 %v6557_v6  ;;  %v2918_v14 = vmul.f32 2.0, %v6513_v16  ;;  %v2858_v17 = vmul.f32 %v6557_v6, %v6557_v6  ;;  %v2921_v16 = vmul.f32 2.0, %v6540_v63 }
 0x775   : > { %v2928_v46 = vmul.f32 %v2912_v62, %v2880_v0  ;;  %v4469_v22 = vpop.f32.mrb[60].mxu0  ;;  %4584 = vmatmul.mubr.f32.gmra.mrb[56].mxu1 %v6563_v19  ;;  %v2859_v62 = vmul.f32 %v6563_v19, %v6563_v19 }
 0x776   : > { %v6575_v56 = vmul.f32 %v4466_v32, %v2929_v1  ;;  %v2883_v47 = vmul.f32 %v4469_v22, %v6566_v41  ;;  %v2597_v13 = vpop.f32.mrb[61].mxu0  ;;  %4586 = vmatprep.mubr.f32.mxu1 %v2876_v36 }
 0x777   : > { %v6579_v34 = vmul.f32 %v2928_v46, %v2587_v44  ;;  %v2882_v58 = vmul.f32 %v6571_v9, %v2597_v13  ;;  %v6617_v44 = vsub.f32 1.0, %v2857_v11  ;;  %v6621_v46 = vsub.f32 1.0, %v2856_v15 }
 0x778   : > { %v2931_v60 = vmul.f32 %v2915_v4, %v2883_v47 }
 0x779   : > { %v2930_v24 = vmul.f32 %v2914_v5, %v2882_v58  ;;  %v4472_v21 = vpop.f32.mrb[62].mxu0  ;;  %4587 = vmatmul.mubr.f32.gmra.mrb[58].mxu1 %v6511_v2  ;;  %v2920_v5 = vmul.f32 2.0, %v6534_v18 }
 0x77a   : > { %v6592_v36 = vmul.f32 %v4469_v22, %v2931_v60  ;;  %v2885_v45 = vmul.f32 %v4472_v21, %v6583_v8  ;;  %v2607_v61 = vpop.f32.mrb[63].mxu0  ;;  %4589 = vmatprep.mubr.f32.mxu1 %v2878_v43  ;;  %v6633_v60 = vsub.f32 1.0, %v2859_v62 }
 0x77b   : > { %v6596_v53 = vmul.f32 %v2930_v24, %v2597_v13  ;;  %v2884_v28 = vmul.f32 %v6588_v12, %v2607_v61 }
 0x77c   : > { %v2933_v2 = vmul.f32 %v2917_v39, %v2885_v45 }
 0x77d   : > { %v2932_v29 = vmul.f32 %v2916_v23, %v2884_v28  ;;  %v4475_v52 = vpop.f32.mrb[64].mxu0  ;;  %4590 = vmatmul.mubr.f32.gmra.mrb[60].mxu1 %v6532_v49  ;;  %v2922_v23 = vmul.f32 2.0, %v6557_v6 }
 0x77e   : > { %v6609_v43 = vmul.f32 %v4472_v21, %v2933_v2  ;;  %v2887_v31 = vmul.f32 %v4475_v52, %v6600_v37  ;;  %v2617_v26 = vpop.f32.mrb[65].mxu0  ;;  %4592 = vmatprep.mubr.f32.mxu1 %v2880_v0  ;;  %v6635_v21 = vsub.f32 1.0, %v2858_v17 }
 0x77f   : > { %v6613_v32 = vmul.f32 %v2932_v29, %v2607_v61  ;;  %v2886_v33 = vmul.f32 %v6605_v59, %v2617_v26 }
 0x780   : > { %v2935_v49 = vmul.f32 %v2919_v55, %v2887_v31 }
 0x781   : > { %v2934_v1 = vmul.f32 %v2918_v14, %v2886_v33  ;;  %v4478_v35 = vpop.f32.mrb[66].mxu0  ;;  %4593 = vmatmul.mubr.f32.gmra.mrb[62].mxu1 %v2881_v54 }
 0x782   : > { %v6625_v0 = vmul.f32 %v4475_v52, %v2935_v49  ;;  %v2889_v22 = vmul.f32 %v4478_v35, %v6617_v44  ;;  %v2627_v10 = vpop.f32.mrb[67].mxu0  ;;  %4595 = vmatprep.mubr.f32.mxu1 %v2882_v58  ;;  %v2923_v58 = vmul.f32 2.0, %v6563_v19 }
 0x783   : > { %v6629_v4 = vmul.f32 %v2934_v1, %v2617_v26  ;;  %v2888_v13 = vmul.f32 %v6621_v46, %v2627_v10 }
 0x784   : > { %v2937_v54 = vmul.f32 %v2921_v16, %v2889_v22 }
 0x785   : > { %v2936_v20 = vmul.f32 %v2920_v5, %v2888_v13  ;;  %v4481_v24 = vpop.f32.mrb[68].mxu0  ;;  %4596 = vmatmul.mubr.f32.gmra.mrb[64].mxu1 %v2883_v47 }
 0x786   : > { %v6637_v25 = vmul.f32 %v4478_v35, %v2937_v54  ;;  %v2891_v63 = vmul.f32 %v4481_v24, %v6633_v60  ;;  %v2637_v39 = vpop.f32.mrb[69].mxu0  ;;  %4598 = vmatprep.mubr.f32.mxu1 %v2884_v28 }
 0x787   : > { %v6641_v61 = vmul.f32 %v2936_v20, %v2627_v10  ;;  %v2890_v18 = vmul.f32 %v6635_v21, %v2637_v39 }
 0x788   : > { %v2939_v2 = vmul.f32 %v2923_v58, %v2891_v63 }
 0x789   : > { %v2938_v11 = vmul.f32 %v2922_v23, %v2890_v18  ;;  %v4484_v29 = vpop.f32.mrb[70].mxu0  ;;  %4599 = vmatmul.mubr.f32.gmra.mrb[66].mxu1 %v2885_v45 }
 0x78a   : > { %v6645_v47 = vmul.f32 %v4481_v24, %v2939_v2  ;;  %v6648_v52 = vmul.f32 %v4484_v29, %v6503_v27  ;;  %v2647_v15 = vpop.f32.mrb[71].mxu0  ;;  %4601 = vmatprep.mubr.f32.mxu1 %v2886_v33 }
 0x78b   : > { %v6650_v19 = vmul.f32 %v2938_v11, %v2637_v39  ;;  %v2972_v28 = vmul.f32 %v6506_v38, %v2647_v15 }
 0x78d   : > { %v4487_v55 = vpop.f32.mrb[72].mxu0  ;;  %4602 = vmatmul.mubr.f32.gmra.mrb[68].mxu1 %v2887_v31 }
 0x78e   : > { %v6654_v26 = vmul.f32 %v4487_v55, %v6520_v30  ;;  %v2657_v6 = vpop.f32.mrb[73].mxu0  ;;  %4604 = vmatprep.mubr.f32.mxu1 %v2888_v13 }
 0x78f   : > { %v6657_v45 = vmul.f32 %v6525_v40, %v2657_v6 }
 0x791   : > { %v4490_v14 = vpop.f32.mrb[74].mxu0  ;;  %4605 = vmatmul.mubr.f32.gmra.mrb[70].mxu1 %v2889_v22 }
 0x792   : > { %v6660_v49 = vmul.f32 %v4490_v14, %v6544_v50  ;;  %v2667_v33 = vpop.f32.mrb[75].mxu0  ;;  %4607 = vmatprep.mubr.f32.mxu1 %v2890_v18  ;;  %v6697_v14 = vstv %s5242_s11  ;;  %s3614_s11 = sshll.u32 %s5237_s26, 7 }
 0x793   : > { %v6663_v62 = vmul.f32 %v6549_v7, %v2667_v33 }
 0x795   : > { %v4493_v1 = vpop.f32.mrb[76].mxu0  ;;  %4608 = vmatmul.mubr.f32.gmra.mrb[72].mxu1 %v2891_v63 }
 0x796   : > { %v6666_v31 = vmul.f32 %v4493_v1, %v6566_v41  ;;  %v2677_v35 = vpop.f32.mrb[77].mxu0 }
 0x797   : > { %v6669_v17 = vmul.f32 %v6571_v9, %v2677_v35 }
 0x799   : > { %v4496_v16 = vpop.f32.mrb[78].mxu0 }
 0x79a   : > { %v6672_v22 = vmul.f32 %v4496_v16, %v6583_v8  ;;  %v2687_v10 = vpop.f32.mrb[79].mxu0 }
 0x79b   : > { %v6675_v13 = vmul.f32 %v6588_v12, %v2687_v10 }
 0x79d   : > { %v4499_v5 = vpop.f32.mrb[80].mxu0 }
 0x79e   : > { %v6678_v54 = vmul.f32 %v4499_v5, %v6600_v37  ;;  %v2697_v20 = vpop.f32.mrb[81].mxu0 }
 0x79f   : > { %v6681_v24 = vmul.f32 %v6605_v59, %v2697_v20 }
 0x7a1   : > { %v4502_v63 = vpop.f32.mrb[82].mxu0 }
 0x7a2   : > { %v6684_v58 = vmul.f32 %v4502_v63, %v6617_v44  ;;  %v2707_v39 = vpop.f32.mrb[83].mxu0 }
 0x7a3   : > { %v6687_v18 = vmul.f32 %v6621_v46, %v2707_v39 }
 0x7a5   : > { %v4505_v23 = vpop.f32.mrb[84].mxu0 }
 0x7a6   : > { %v6690_v2 = vmul.f32 %v4505_v23, %v6633_v60  ;;  %v2717_v11 = vpop.f32.mrb[85].mxu0 }
 0x7a7   : > { %v6693_v29 = vmul.f32 %v6635_v21, %v2717_v11 }
 0x7a9   : > { %v4508_v15 = vpop.f32.mrb[86].mxu0 }
 0x7aa   : > { %v2893_v55 = vmul.f32 %v4508_v15, %v6503_v27  ;;  %v2727_v6 = vpop.f32.mrb[87].mxu0 }
 0x7ab   : > { %v2892_v33 = vmul.f32 %v6506_v38, %v2727_v6 }
 0x7ac   : > { %v2957_v1 = vsub.f32 %v2893_v55, %v6529_v42 }
 0x7ad   : > { %v2956_v35 = vsub.f32 %v2892_v33, %v6536_v3  ;;  %v4511_v16 = vpop.f32.mrb[88].mxu0 }
 0x7ae   : > { %v2990_v10 = vmul.f32 %v6697_v14, %v2957_v1  ;;  %v2895_v5 = vmul.f32 %v4511_v16, %v6520_v30  ;;  %v2737_v20 = vpop.f32.mrb[89].mxu0 }
 0x7af   : > { %v2989_v63 = vmul.f32 %v6697_v14, %v2956_v35  ;;  %v2894_v39 = vmul.f32 %v6525_v40, %v2737_v20 }
 0x7b0   : > { %v2959_v27 = vsub.f32 %v2895_v5, %v6553_v51  ;;  %v3006_v23 = vsub.f32 %v6648_v52, %v2990_v10 }
 0x7b1   : > { %v2958_v38 = vsub.f32 %v2894_v39, %v6559_v57  ;;  %v4514_v11 = vpop.f32.mrb[90].mxu0  ;;  %v3005_v42 = vsub.f32 %v2972_v28, %v2989_v63 }
 0x7b2   : > { %v2992_v3 = vmul.f32 %v6697_v14, %v2959_v27  ;;  %v2897_v15 = vmul.f32 %v4514_v11, %v6544_v50  ;;  %v2747_v55 = vpop.f32.mrb[91].mxu0 }
 0x7b3   : > { %v2991_v30 = vmul.f32 %v6697_v14, %v2958_v38  ;;  %v2896_v6 = vmul.f32 %v6549_v7, %v2747_v55  ;;  %4610 = vmatprep.mubr.f32.mxu1 %v3005_v42 }
 0x7b4   : > { %v2961_v40 = vsub.f32 %v2897_v15, %v6575_v56  ;;  %4611 = vmatmul.mubr.f32.gmra.mrb[74].mxu1 %v3006_v23  ;;  %v3008_v51 = vsub.f32 %v6654_v26, %v2992_v3 }
 0x7b5   : > { %v2960_v52 = vsub.f32 %v2896_v6, %v6579_v34  ;;  %v4517_v57 = vpop.f32.mrb[92].mxu0  ;;  %v3007_v28 = vsub.f32 %v6657_v45, %v2991_v30 }
 0x7b6   : > { %v2994_v33 = vmul.f32 %v6697_v14, %v2961_v40  ;;  %v2899_v50 = vmul.f32 %v4517_v57, %v6566_v41  ;;  %v2757_v1 = vpop.f32.mrb[93].mxu0 }
 0x7b7   : > { %v2993_v35 = vmul.f32 %v6697_v14, %v2960_v52  ;;  %v2898_v7 = vmul.f32 %v6571_v9, %v2757_v1  ;;  %4613 = vmatprep.mubr.f32.mxu1 %v3007_v28 }
 0x7b8   : > { %v2963_v56 = vsub.f32 %v2899_v50, %v6592_v36  ;;  %4614 = vmatmul.mubr.f32.gmra.mrb[76].mxu1 %v3008_v51  ;;  %v3010_v26 = vsub.f32 %v6660_v49, %v2994_v33 }
 0x7b9   : > { %v2962_v34 = vsub.f32 %v2898_v7, %v6596_v53  ;;  %v4520_v16 = vpop.f32.mrb[94].mxu0  ;;  %v3009_v45 = vsub.f32 %v6663_v62, %v2993_v35 }
 0x7ba   : > { %v2996_v10 = vmul.f32 %v6697_v14, %v2963_v56  ;;  %v2901_v41 = vmul.f32 %v4520_v16, %v6583_v8  ;;  %v2767_v5 = vpop.f32.mrb[95].mxu0 }
 0x7bb   : > { %v2995_v20 = vmul.f32 %v6697_v14, %v2962_v34  ;;  %v2900_v9 = vmul.f32 %v6588_v12, %v2767_v5  ;;  %4616 = vmatprep.mubr.f32.mxu1 %v3009_v45 }
 0x7bc   : > { %v2965_v36 = vsub.f32 %v2901_v41, %v6609_v43  ;;  %4617 = vmatmul.mubr.f32.gmra.mrb[78].mxu1 %v3010_v26  ;;  %v3012_v49 = vsub.f32 %v6666_v31, %v2996_v10 }
 0x7bd   : > { %v2964_v53 = vsub.f32 %v2900_v9, %v6613_v32  ;;  %v4523_v63 = vpop.f32.mrb[96].mxu0  ;;  %v3011_v62 = vsub.f32 %v6669_v17, %v2995_v20 }
 0x7be   : > { %v2998_v39 = vmul.f32 %v6697_v14, %v2965_v36  ;;  %v2903_v8 = vmul.f32 %v4523_v63, %v6600_v37  ;;  %v2777_v27 = vpop.f32.mrb[97].mxu0 }
 0x7bf   : > { %v2997_v23 = vmul.f32 %v6697_v14, %v2964_v53  ;;  %v2902_v12 = vmul.f32 %v6605_v59, %v2777_v27  ;;  %4619 = vmatprep.mubr.f32.mxu1 %v3011_v62 }
 0x7c0   : > { %v2967_v43 = vsub.f32 %v2903_v8, %v6625_v0  ;;  %4620 = vmatmul.mubr.f32.gmra.mrb[80].mxu1 %v3012_v49  ;;  %v3014_v31 = vsub.f32 %v6672_v22, %v2998_v39 }
 0x7c1   : > { %v2966_v32 = vsub.f32 %v2902_v12, %v6629_v4  ;;  %v4526_v38 = vpop.f32.mrb[98].mxu0  ;;  %v3013_v17 = vsub.f32 %v6675_v13, %v2997_v23 }
 0x7c2   : > { %v3000_v11 = vmul.f32 %v6697_v14, %v2967_v43  ;;  %v2905_v37 = vmul.f32 %v4526_v38, %v6617_v44  ;;  %v2787_v42 = vpop.f32.mrb[99].mxu0 }
 0x7c3   : > { %v2999_v3 = vmul.f32 %v6697_v14, %v2966_v32  ;;  %v2904_v59 = vmul.f32 %v6621_v46, %v2787_v42  ;;  %4622 = vmatprep.mubr.f32.mxu1 %v3013_v17 }
 0x7c4   : > { %v2969_v0 = vsub.f32 %v2905_v37, %v6637_v25  ;;  %4623 = vmatmul.mubr.f32.gmra.mrb[82].mxu1 %v3014_v31  ;;  %v3016_v22 = vsub.f32 %v6678_v54, %v3000_v11 }
 0x7c5   : > { %v2968_v4 = vsub.f32 %v2904_v59, %v6641_v61  ;;  %v4529_v15 = vpop.f32.mrb[100].mxu0  ;;  %v3015_v13 = vsub.f32 %v6681_v24, %v2999_v3 }
 0x7c6   : > { %v3002_v55 = vmul.f32 %v6697_v14, %v2969_v0  ;;  %v2907_v44 = vmul.f32 %v4529_v15, %v6633_v60  ;;  %v2797_v30 = vpop.f32.mrb[101].mxu0 }
 0x7c7   : > { %v3001_v6 = vmul.f32 %v6697_v14, %v2968_v4  ;;  %v2906_v46 = vmul.f32 %v6635_v21, %v2797_v30  ;;  %4625 = vmatprep.mubr.f32.mxu1 %v3015_v13 }
 0x7c8   : > { %v2971_v25 = vsub.f32 %v2907_v44, %v6645_v47  ;;  %4626 = vmatmul.mubr.f32.gmra.mrb[84].mxu1 %v3016_v22  ;;  %v3018_v54 = vsub.f32 %v6684_v58, %v3002_v55 }
 0x7c9   : > { %v2970_v61 = vsub.f32 %v2906_v46, %v6650_v19  ;;  %v3017_v40 = vsub.f32 %v6687_v18, %v3001_v6 }
 0x7ca   : > { %v3004_v24 = vmul.f32 %v6697_v14, %v2971_v25 }
 0x7cb   : > { %v3003_v51 = vmul.f32 %v6697_v14, %v2970_v61  ;;  %4628 = vmatprep.mubr.f32.mxu1 %v3017_v40 }
 0x7cc   : > { %4629 = vmatmul.mubr.f32.gmra.mrb[86].mxu1 %v3018_v54  ;;  %v3020_v60 = vsub.f32 %v6690_v2, %v3004_v24  ;;  %v6994_v2 = vld [vmem:[#allocation26_spill] sm:$0xff] }
 0x7cd   : > { %v3019_v21 = vsub.f32 %v6693_v29, %v3003_v51  ;;  %v3330_v26 = vrot.slane %v6994_v2, %v6992_v48 }
 0x7cf   : > { %4631 = vmatprep.mubr.f32.mxu1 %v3019_v21 }
 0x7d0   : > { %4632 = vmatmul.mubr.f32.gmra.mrb[88].mxu1 %v3020_v60 }
 0x82c   : > { %v4564_v47 = vpop.f32.mrb[42].mxu1 }
 0x82d   : > { %v3087_v52 = vpop.f32.mrb[43].mxu1  ;;  %v3333_v16 = vadd.f32 %v4564_v47, %v3330_v26 }
 0x82e   : > { %v3332_v45 = vadd.f32 %v3330_v26, %v3087_v52 }
 0x830   : > { %v4567_v57 = vpop.f32.mrb[44].mxu1 }
 0x831   : > { %v3097_v58 = vpop.f32.mrb[45].mxu1  ;;  %v3335_v9 = vadd.f32 %v4567_v57, %v3330_v26  ;;  %v6995_v57 = vld [vmem:[#allocation27_spill] sm:$0xff] }
 0x832   : > { %v3334_v36 = vadd.f32 %v3330_v26, %v3097_v58  ;;  %v3382_v58 = vadd.s32 8, %v6995_v57 }
 0x834   : > { %v4570_v28 = vpop.f32.mrb[46].mxu1 }
 0x835   : > { %v3107_v19 = vpop.f32.mrb[47].mxu1  ;;  %v3337_v39 = vadd.f32 %v4570_v28, %v3330_v26  ;;  %v6793_v28 = vstv %s3614_s11 }
 0x836   : > { %v3336_v8 = vadd.f32 %v3330_v26, %v3107_v19  ;;  %v3400_v19 = vadd.s32 %v6793_v28, %v3382_v58 }
 0x838   : > { %v4573_v33 = vpop.f32.mrb[48].mxu1  ;;  %vm3416_vm6 = vcmp.lt.s32.totalorder %v3400_v19, 256 }
 0x839   : > { %v3117_v18 = vpop.f32.mrb[49].mxu1  ;;  %v3339_v43 = vadd.f32 %v4573_v33, %v3330_v26  ;;  %v3384_v33 = vadd.s32 24, %v6995_v57 }
 0x83a   : > { %v3338_v31 = vadd.f32 %v3330_v26, %v3117_v18  ;;  %v3399_v18 = vadd.s32 %v6793_v28, %v6995_v57 }
 0x83c   : > { %v4576_v50 = vpop.f32.mrb[50].mxu1  ;;  %vm3415_vm7 = vcmp.lt.s32.totalorder %v3399_v18, 256 }
 0x83d   : > { %v3127_v1 = vpop.f32.mrb[51].mxu1  ;;  %v3341_v37 = vadd.f32 %v4576_v50, %v3330_v26  ;;  %v3383_v50 = vadd.s32 16, %v6995_v57 }
 0x83e   : > { %v3340_v42 = vadd.f32 %v3330_v26, %v3127_v1  ;;  %v3386_v1 = vadd.s32 40, %v6995_v57 }
 0x83f   : > { %v3401_v2 = vadd.s32 %v6793_v28, %v3383_v50 }
 0x840   : > { %v4579_v35 = vpop.f32.mrb[52].mxu1 }
 0x841   : > { %v3137_v14 = vpop.f32.mrb[53].mxu1  ;;  %v3343_v4 = vadd.f32 %v4579_v35, %v3330_v26  ;;  %vm3417_vm10 = vcmp.lt.s32.totalorder %v3401_v2, 256 }
 0x842   : > { %v3342_v15 = vadd.f32 %v3330_v26, %v3137_v14  ;;  %v3402_v14 = vadd.s32 %v6793_v28, %v3384_v33 }
 0x844   : > { %v4582_v7 = vpop.f32.mrb[54].mxu1  ;;  %vm3418_vm9 = vcmp.lt.s32.totalorder %v3402_v14, 256 }
 0x845   : > { %v3147_v56 = vpop.f32.mrb[55].mxu1  ;;  %v3345_v6 = vadd.f32 %v4582_v7, %v3330_v26 }
 0x846   : > { %v3344_v46 = vadd.f32 %v3330_v26, %v3147_v56 }
 0x848   : > { %v4585_v29 = vpop.f32.mrb[56].mxu1 }
 0x849   : > { %v3157_v34 = vpop.f32.mrb[57].mxu1  ;;  %v3347_v24 = vadd.f32 %v4585_v29, %v3330_v26 }
 0x84a   : > { %v3346_v51 = vadd.f32 %v3330_v26, %v3157_v34  ;;  %v3385_v26 = vadd.s32 32, %v6995_v57  ;;  %v3404_v34 = vadd.s32 %v6793_v28, %v3386_v1 }
 0x84c   : > { %v4588_v10 = vpop.f32.mrb[58].mxu1  ;;  %vm3420_vm11 = vcmp.lt.s32.totalorder %v3404_v34, 256 }
 0x84d   : > { %v3349_v41 = vmul.f32 %v4588_v10, %v3333_v16  ;;  %v3167_v5 = vpop.f32.mrb[59].mxu1  ;;  %v3387_v10 = vadd.s32 48, %v6995_v57 }
 0x84e   : > { %v3348_v20 = vmul.f32 %v3332_v45, %v3167_v5  ;;  %v3388_v45 = vadd.s32 56, %v6995_v57 }
 0x850   : > { %v4591_v49 = vpop.f32.mrb[60].mxu1 }
 0x851   : > { %v6763_v53 = vmul.f32 %v4591_v49, %v3335_v9  ;;  %v3177_v63 = vpop.f32.mrb[61].mxu1 }
 0x852   : > { %v6765_v62 = vmul.f32 %v3334_v36, %v3177_v63 }
 0x854   : > { %v4594_v27 = vpop.f32.mrb[62].mxu1 }
 0x855   : > { %v6767_v48 = vmul.f32 %v4594_v27, %v3337_v39  ;;  %v3187_v23 = vpop.f32.mrb[63].mxu1  ;;  %v3403_v39 = vadd.s32 %v6793_v28, %v3385_v26 }
 0x856   : > { %v6769_v12 = vmul.f32 %v3336_v8, %v3187_v23 }
 0x857   : > { %vm3419_vm12 = vcmp.lt.s32.totalorder %v3403_v39, 256 }
 0x858   : > { %v4597_v32 = vpop.f32.mrb[64].mxu1 }
 0x859   : > { %v6771_v38 = vmul.f32 %v4597_v32, %v3339_v43  ;;  %v3197_v17 = vpop.f32.mrb[65].mxu1  ;;  %v3406_v43 = vadd.s32 %v6793_v28, %v3388_v45 }
 0x85a   : > { %v6773_v11 = vmul.f32 %v3338_v31, %v3197_v17  ;;  %v3405_v31 = vadd.s32 %v6793_v28, %v3387_v10 }
 0x85b   : > { %vm3422_vm13 = vcmp.lt.s32.totalorder %v3406_v43, 256 }
 0x85c   : > { %v4600_v3 = vpop.f32.mrb[66].mxu1  ;;  %vm3421_vm14 = vcmp.lt.s32.totalorder %v3405_v31, 256 }
 0x85d   : > { %v6775_v59 = vmul.f32 %v4600_v3, %v3341_v37  ;;  %v3207_v0 = vpop.f32.mrb[67].mxu1 }
 0x85e   : > { %v6777_v22 = vmul.f32 %v3340_v42, %v3207_v0  ;;  %v3389_v42 = vadd.s32 64, %v6995_v57 }
 0x860   : > { %v4603_v13 = vpop.f32.mrb[68].mxu1 }
 0x861   : > { %v6779_v55 = vmul.f32 %v4603_v13, %v3343_v4  ;;  %v3217_v44 = vpop.f32.mrb[69].mxu1  ;;  %v3392_v13 = vadd.s32 88, %v6995_v57 }
 0x862   : > { %v6781_v30 = vmul.f32 %v3342_v15, %v3217_v44  ;;  %v3391_v44 = vadd.s32 80, %v6995_v57 }
 0x863   : > { %v3410_v50 = vadd.s32 %v6793_v28, %v3392_v13 }
 0x864   : > { %v4606_v25 = vpop.f32.mrb[70].mxu1  ;;  %v3409_v1 = vadd.s32 %v6793_v28, %v3391_v44 }
 0x865   : > { %v6783_v54 = vmul.f32 %v4606_v25, %v3345_v6  ;;  %v3227_v61 = vpop.f32.mrb[71].mxu1  ;;  %vm3426_vm1 = vcmp.lt.s32.totalorder %v3410_v50, 256 }
 0x866   : > { %v6785_v40 = vmul.f32 %v3344_v46, %v3227_v61  ;;  %vm3425_vm2 = vcmp.lt.s32.totalorder %v3409_v1, 256 }
 0x868   : > { %v4609_v60 = vpop.f32.mrb[72].mxu1 }
 0x869   : > { %v6787_v21 = vmul.f32 %v4609_v60, %v3347_v24  ;;  %v3237_v47 = vpop.f32.mrb[73].mxu1 }
 0x86a   : > { %v6789_v52 = vmul.f32 %v3346_v51, %v3237_v47 }
 0x887   : > { %v4612_v35 = vpop.f32.mrb[74].mxu1 }
 0x888   : > { %v3365_v7 = vadd.f32 %v4612_v35, %v3349_v41  ;;  %v3247_v56 = vpop.f32.mrb[75].mxu1 }
 0x889   : > { %v3364_v29 = vadd.f32 %v3348_v20, %v3247_v56  ;;  %v3393_v56 = vadd.s32 96, %v6995_v57 }
 0x88a   : > { %v3432_v16 = vsel %vm3416_vm6, %v3365_v7, 0.0  ;;  %v3394_v7 = vadd.s32 104, %v6995_v57 }
 0x88b   : > { %v3449_v5 = vmul.f32 %v3432_v16, %v3432_v16  ;;  %v3431_v9 = vsel %vm3415_vm7, %v3364_v29, 0.0  ;;  %v4615_v36 = vpop.f32.mrb[76].mxu1  ;;  %vm3507_vm7 = vcmask 0  }
 0x88c   : > { %v3448_v41 = vmul.f32 %v3431_v9, %v3431_v9  ;;  %v3367_v49 = vadd.f32 %v4615_v36, %v6763_v53  ;;  %v3257_v63 = vpop.f32.mrb[77].mxu1  ;;  %v3390_v53 = vadd.s32 72, %v6995_v57 }
 0x88d   : > { %v3466_v20 = vsel %vm3464_vm8, %v3449_v5, 0.0  ;;  %v3366_v8 = vadd.f32 %v6765_v62, %v3257_v63 }
 0x88e   : > { %v3465_v27 = vsel %vm3464_vm8, %v3448_v41, 0.0  ;;  %v3434_v23 = vsel %vm3418_vm9, %v3367_v49, 0.0  ;;  %v3408_v51 = vadd.s32 %v6793_v28, %v3390_v53  ;;  %v3412_v41 = vadd.s32 %v6793_v28, %v3394_v7 }
 0x88f   : > { %v3467_v32 = vadd.f32 %v3466_v20, %v3465_v27  ;;  %v3433_v17 = vsel %vm3417_vm10, %v3366_v8, 0.0  ;;  %v4618_v37 = vpop.f32.mrb[78].mxu1  ;;  %v3451_v3 = vmul.f32 %v3434_v23, %v3434_v23  ;;  %v3411_v49 = vadd.s32 %v6793_v28, %v3393_v56 }
 0x890   : > { %v3450_v0 = vmul.f32 %v3433_v17, %v3433_v17  ;;  %v3369_v4 = vadd.f32 %v4618_v37, %v6767_v48  ;;  %v3267_v62 = vpop.f32.mrb[79].mxu1  ;;  %v3407_v48 = vadd.s32 %v6793_v28, %v3389_v42  ;;  %vm3424_vm15 = vcmp.lt.s32.totalorder %v3408_v51, 256 }
 0x891   : > { %v3368_v15 = vadd.f32 %v6769_v12, %v3267_v62  ;;  %v3470_v60 = vsel %vm3464_vm8, %v3451_v3, 0.0  ;;  %v3396_v8 = vadd.s32 120, %v6995_v57  ;;  %vm3428_vm3 = vcmp.lt.s32.totalorder %v3412_v41, 256 }
 0x892   : > { %v3468_v6 = vsel %vm3464_vm8, %v3450_v0, 0.0  ;;  %v3436_v46 = vsel %vm3420_vm11, %v3369_v4, 0.0  ;;  %vm3423_vm0 = vcmp.lt.s32.totalorder %v3407_v48, 256  ;;  %vm3427_vm4 = vcmp.lt.s32.totalorder %v3411_v49, 256 }
 0x893   : > { %v3469_v25 = vadd.f32 %v3468_v6, %v3467_v32  ;;  %v3435_v61 = vsel %vm3419_vm12, %v3368_v15, 0.0  ;;  %v4621_v24 = vpop.f32.mrb[80].mxu1  ;;  %v3453_v12 = vmul.f32 %v3436_v46, %v3436_v46  ;;  %v3414_v0 = vadd.s32 %v6793_v28, %v3396_v8 }
 0x894   : > { %v3452_v47 = vmul.f32 %v3435_v61, %v3435_v61  ;;  %v3371_v58 = vadd.f32 %v4621_v24, %v6771_v38  ;;  %v3277_v19 = vpop.f32.mrb[81].mxu1 }
 0x895   : > { %v3471_v33 = vadd.f32 %v3470_v60, %v3469_v25  ;;  %v3370_v18 = vadd.f32 %v6773_v11, %v3277_v19  ;;  %v3474_v11 = vsel %vm3464_vm8, %v3453_v12, 0.0  ;;  %vm3430_vm5 = vcmp.lt.s32.totalorder %v3414_v0, 256 }
 0x896   : > { %v3472_v35 = vsel %vm3464_vm8, %v3452_v47, 0.0  ;;  %v3438_v14 = vsel %vm3422_vm13, %v3371_v58, 0.0 }
 0x897   : > { %v3473_v2 = vadd.f32 %v3472_v35, %v3471_v33  ;;  %v3437_v26 = vsel %vm3421_vm14, %v3370_v18, 0.0  ;;  %v4624_v38 = vpop.f32.mrb[82].mxu1  ;;  %v3455_v29 = vmul.f32 %v3438_v14, %v3438_v14 }
 0x898   : > { %v3454_v34 = vmul.f32 %v3437_v26, %v3437_v26  ;;  %v3373_v16 = vadd.f32 %v4624_v38, %v6775_v59  ;;  %v3287_v45 = vpop.f32.mrb[83].mxu1  ;;  %v3395_v59 = vadd.s32 112, %v6995_v57 }
 0x899   : > { %v3475_v10 = vadd.f32 %v3474_v11, %v3473_v2  ;;  %v3372_v5 = vadd.f32 %v6777_v22, %v3287_v45  ;;  %v3478_v27 = vsel %vm3464_vm8, %v3455_v29, 0.0  ;;  %v3447_v45 = vld [vmem:[#allocation2] sm:$0x1] }
 0x89a   : > { %v3476_v9 = vsel %vm3464_vm8, %v3454_v34, 0.0  ;;  %v3440_v36 = vsel %vm3424_vm15, %v3373_v16, 0.0  ;;  %v3413_v4 = vadd.s32 %v6793_v28, %v3395_v59 }
 0x89b   : > { %v3477_v63 = vadd.f32 %v3476_v9, %v3475_v10  ;;  %v3439_v39 = vsel %vm3423_vm0, %v3372_v5, 0.0  ;;  %v4627_v20 = vpop.f32.mrb[84].mxu1  ;;  %v3457_v23 = vmul.f32 %v3440_v36, %v3440_v36  ;;  %v3516_v36 = vld [vmem:[#allocation3] sm:$0x1] (!%p3615_p5) }
 0x89c   : > { %v3456_v22 = vmul.f32 %v3439_v39, %v3439_v39  ;;  %v3375_v43 = vadd.f32 %v4627_v20, %v6779_v55  ;;  %v3297_v31 = vpop.f32.mrb[85].mxu1  ;;  %vm3429_vm6 = vcmp.lt.s32.totalorder %v3413_v4, 256 }
 0x89d   : > { %v3479_v32 = vadd.f32 %v3478_v27, %v3477_v63  ;;  %v3374_v17 = vadd.f32 %v6781_v30, %v3297_v31  ;;  %v3482_v55 = vsel %vm3464_vm8, %v3457_v23, 0.0 }
 0x89e   : > { %v3480_v37 = vsel %vm3464_vm8, %v3456_v22, 0.0  ;;  %v3442_v53 = vsel %vm3426_vm1, %v3375_v43, 0.0 }
 0x89f   : > { %v3481_v42 = vadd.f32 %v3480_v37, %v3479_v32  ;;  %v3441_v3 = vsel %vm3425_vm2, %v3374_v17, 0.0  ;;  %v4630_v57 = vpop.f32.mrb[86].mxu1  ;;  %v3459_v62 = vmul.f32 %v3442_v53, %v3442_v53 }
 0x8a0   : > { %v3458_v15 = vmul.f32 %v3441_v3, %v3441_v3  ;;  %v3377_v30 = vadd.f32 %v4630_v57, %v6783_v54  ;;  %v3307_v13 = vpop.f32.mrb[87].mxu1 }
 0x8a1   : > { %v3483_v44 = vadd.f32 %v3482_v55, %v3481_v42  ;;  %v3376_v6 = vadd.f32 %v6785_v40, %v3307_v13  ;;  %v3486_v28 = vsel %vm3464_vm8, %v3459_v62, 0.0 }
 0x8a2   : > { %v3484_v46 = vsel %vm3464_vm8, %v3458_v15, 0.0  ;;  %v3444_v25 = vsel %vm3428_vm3, %v3377_v30, 0.0 }
 0x8a3   : > { %v3485_v61 = vadd.f32 %v3484_v46, %v3483_v44  ;;  %v3443_v24 = vsel %vm3427_vm4, %v3376_v6, 0.0  ;;  %v4633_v51 = vpop.f32.mrb[88].mxu1  ;;  %v3461_v48 = vmul.f32 %v3444_v25, %v3444_v25 }
 0x8a4   : > { %v3460_v60 = vmul.f32 %v3443_v24, %v3443_v24  ;;  %v3379_v12 = vadd.f32 %v4633_v51, %v6787_v21  ;;  %v3317_v54 = vpop.f32.mrb[89].mxu1 }
 0x8a5   : > { %v3487_v47 = vadd.f32 %v3486_v28, %v3485_v61  ;;  %v3378_v58 = vadd.f32 %v6789_v52, %v3317_v54  ;;  %v3490_v50 = vsel %vm3464_vm8, %v3461_v48, 0.0 }
 0x8a6   : > { %v3488_v40 = vsel %vm3464_vm8, %v3460_v60, 0.0  ;;  %v3446_v19 = vsel %vm3430_vm5, %v3379_v12, 0.0 }
 0x8a7   : > { %v3489_v33 = vadd.f32 %v3488_v40, %v3487_v47  ;;  %v3445_v18 = vsel %vm3429_vm6, %v3378_v58, 0.0  ;;  %v3463_v1 = vmul.f32 %v3446_v19, %v3446_v19 }
 0x8a8   : > { %v3462_v35 = vmul.f32 %v3445_v18, %v3445_v18 }
 0x8a9   : > { %v3491_v14 = vadd.f32 %v3490_v50, %v3489_v33  ;;  %v3494_v2 = vsel %vm3464_vm8, %v3463_v1, 0.0 }
 0x8aa   : > { %v3492_v7 = vsel %vm3464_vm8, %v3462_v35, 0.0 }
 0x8ab   : > { %v3493_v56 = vadd.f32 %v3492_v7, %v3491_v14 }
 0x8ad   : > { %v3495_v21 = vadd.f32 %v3494_v2, %v3493_v56 }
 0x8af   : > { %3496 = vadd.xlane.f32.xlu0 %v3495_v21 }
 0x93c   : > { %v3497_v26 = vpop.xlane.xlu0 %3496 }
 0x93d   : > { %v3498_v38 = vrot.slane %v3497_v26, 4 }
 0x93f   : > { %v3499_v52 = vadd.f32 %v3498_v38, %v3497_v26 }
 0x941   : > { %v3500_v11 = vrot.slane %v3499_v52, 2 }
 0x943   : > { %v3501_v29 = vadd.f32 %v3500_v11, %v3499_v52 }
 0x945   : > { %v3502_v34 = vrot.slane %v3501_v29, 1 }
 0x947   : > { %v3503_v16 = vadd.f32 %v3502_v34, %v3501_v29 }
 0x949   : > { %4862 = vpush %v3503_v16 }
 0x978   : > { %3512 = sbr.rel (%p3615_p5) target bundleno = 2443 (0x98b), region = 76 }
 0x97a   : > { %s4863_s14 = spop %4862 }
 0x97b   : > { %v3505_v10 = vstv %s4863_s14 }
 0x97c   : > { %v3506_v5 = vadd.f32 %v3505_v10, %v3447_v45 }
 0x97e   : > { %3508 = vst.msk [vmem:[#allocation2] sm:$0x1] %vm3507_vm7, %v3506_v5 }
 0x985   : > { %v3513_v9 = vld [vmem:[#allocation2] sm:$0x1] }
 0x986   : > { %v3515_v41 = vmul.f32 0.00390625, %v3513_v9 }
 0x988   : > { %v3517_v49 = vadd.f32 %v3516_v36, %v3515_v41 }
 0x98a   : > { %3518 = vst.msk [vmem:[#allocation6] sm:$0x1] %vm3507_vm7, %v3517_v49 }
 0x98b PF: > { %p4868_p6 = scmp.eq.s32.totalorder %s5237_s26, 1  ;;  %s5159_s21 = smov [#allocation6]  }
 0x98c   : > { %s3526_s23 = sshll.u32 %s5159_s21, 4  ;;  %s3527_s23 = int_to_ptr.vmem [resolvable:$true] %s3526_s23 }
 0x98d   : > { %s5120_s24 = scalar_lea.vmem %s3527_s23, 16  ;;  %s5126_s27 = scalar_lea.vmem %s3527_s23, 32 }
 0x98e   : > { %p5121_p7 = scmp.ne.s32.totalorder %s3527_s23, %s5120_s24  ;;  %p5127_p10 = scmp.lt.s32.totalorder %s3527_s23, %s3527_s23 }
 0x98f   : > { %p5128_p11 = scmp.lt.s32.totalorder %s5126_s27, %s5120_s24 }
 0x990   : > { %p5122_p8 = pnand %p5121_p7, %p4868_p6 }
 0x991   : > { %p5129_p12 = por %p5128_p11, %p5127_p10 }
 0x992   : > { %p5123_p9 = pneg %p5122_p8 }
 0x994   : > { %p5130_p13 = pnand %p5129_p12, %p5123_p9 }
 0x996   : > { %5133 = shalt.err (!%p5130_p13)
}
 0x997   : > { %s5134_s30 = scalar_lea.hbm %s6901_s12, 16 }
 0x998   : > { %p5135_p0 = scmp.ne.s32.totalorder %s6901_s12, %s5134_s30  ;;  %p5140_p3 = scmp.lt.u32.totalorder %s5134_s30, %s6901_s12 }
 0x99a   : > { %p5136_p1 = pnand %p5135_p0, %p4868_p6 }
 0x99c   : > { %p5137_p2 = pneg %p5136_p1 }
 0x99e   : > { %p5142_p4 = pnand %p5140_p3, %p5137_p2 }
 0x9a0   : > { %5145 = shalt.err (!%p5142_p4)
}
 0x9a1   : > { %4865 = dma.vmem_to_hbm [thread:$0]  (%p4868_p6), %s3527_s23, 16, %s6901_s12, [#allocation7]  }
 0x9a2   : > { %5151 = dma.done.wait (%p4868_p6), [#allocation7], 16  }
 0x9a3   : > { %5153 = vsyncadd (%p4868_p6), [#allocation7], 4294967280 }
 0x9a4 PF: > { %s26_s25 = sadd.s32 1, %s5156_s25  }
 0x9a5   : > { %p23_p5 = scmp.ge.s32.totalorder %s26_s25, 4  }
 0x9a7   :  { %25 = sbr.rel (!%p23_p5) target bundleno = 4 (0x4), region = 103 }
 0x9ae   :  { %3539 = vsyncpa [#allocation7], 1 }
 0x9af   :  { %3541 = vsyncpa [#allocation7 + $0x1], 1 }

</bundles_post_ra>
